<compile_context>
chip_gen: v6e
topology: v6e:2x2x1
jax: 0.10.0
libtpu: 0.0.40
codegen_flags: <defaults>
</compile_context>

<pallas_src>
import functools

import jax
import jax.numpy as jnp
import numpy as np
from jax.experimental import pallas as pl
from jax.experimental.pallas import tpu as pltpu

DEG = 4            # Fourier(4) harmonics
NTRIG = 2 * DEG    # cos(d=0..3), sin(d=0..3)
IN_FEAT = 6        # GalLinear in_features
AUG = 8            # augmented-state width in the kernel: 6 feats + ones col + zero pad
GALK = NTRIG * AUG # 64: contraction width of the fused first layer
HID = 64           # hidden width
OUT = 3            # output dim


def _softplus(x):
    # matches torch.nn.Softplus(beta=1, threshold=20)
    return jnp.where(x > 20.0, x, jnp.log1p(jnp.exp(jnp.minimum(x, 20.0))))


def odenet_kernel(trig_ref,            # VMEM (St, 64): column k holds trig[s, k//8] (repeat done in wrapper)
                  xa_ref,              # VMEM (St, B, 8): augmented states for this step chunk
                  cgal_ref,            # VMEM (64, 64): flattened Galerkin coeffs C[d*8+f, o]
                  w2_ref, b2_ref,      # VMEM (64, 64), (1, 64)
                  w3_ref, b3_ref,      # VMEM (64, 3),  (1, 3)
                  o_ref):              # VMEM (St, B, 3)
    st, b, aug = xa_ref.shape
    ntrig = trig_ref.shape[1] // aug

    xa = xa_ref[...]                                     # (St, B, 8)
    # Lane-tile the augmented state: column k of xa_rep holds feature k % 8.
    xa_rep = jnp.concatenate([xa] * ntrig, axis=-1)      # (St, B, 64)  lane concat
    # Galerkin outer product: z[s, b, d*8+f] = trig[s, d] * xa[s, b, f].
    z = trig_ref[...][:, None, :] * xa_rep               # (St, B, 64)
    z = z.reshape(st * b, ntrig * aug)                   # (St*B, 64)  (B=8 -> layout no-op)

    # Depth-dependent first layer collapses to one well-shaped MXU matmul.
    h = jnp.dot(z, cgal_ref[...], preferred_element_type=jnp.float32)              # (St*B, 64)
    h = _softplus(h)
    h = jnp.dot(h, w2_ref[...], preferred_element_type=jnp.float32) + b2_ref[...]  # (St*B, 64)
    h = _softplus(h)
    out = jnp.dot(h, w3_ref[...], preferred_element_type=jnp.float32) + b3_ref[...]  # (St*B, 3)

    o_ref[...] = out.reshape(st, b, o_ref.shape[-1]).astype(o_ref.dtype)


@functools.partial(jax.jit, static_argnames=("num_blocks",))
def odenet_forward_steps(ts, xs, params, *, num_blocks=1):
    """Evaluate the ODE RHS for many (t_k, x_k) pairs in a single pallas_call.

    ts: (S,) scalar depths/times.  xs: (S, B, 3) ODE state batches per step.
    Returns (S, B, 3).  num_blocks=1 (default) is best on v5e/v6e; use
    num_blocks=2 on v7x so both TensorCores pick up a block.
    """
    ts = jnp.asarray(ts, jnp.float32)
    xs = jnp.asarray(xs, jnp.float32)
    S, B, _ = xs.shape
    mult = 8 * num_blocks                       # keeps per-block step count a multiple of 8
    S_pad = ((S + mult - 1) // mult) * mult
    ST = S_pad // num_blocks
    if S_pad != S:
        xs = jnp.pad(xs, ((0, S_pad - S), (0, 0), (0, 0)))
        ts = jnp.pad(ts, (0, S_pad - S))

    # Lane-dense augmented state: [x0, x1, x2, x0*x1, x1*x2, x0*x2, 1, 0]
    x0, x1, x2 = xs[..., 0], xs[..., 1], xs[..., 2]
    xa = jnp.stack([x0, x1, x2, x0 * x1, x1 * x2, x0 * x2,
                    jnp.ones_like(x0), jnp.zeros_like(x0)], axis=-1)      # (S_pad, B, 8)

    # Per-step Fourier basis values (vectorized; no in-kernel transcendentals).
    s_val = ts * params["dilation"] + params["shift"]                      # (S_pad,)
    n_range = jnp.linspace(0.0, float(DEG), DEG)                           # torch.linspace(0, 4, 4)
    ang = s_val[:, None] * n_range[None, :]                                # (S_pad, DEG)
    trig = jnp.concatenate([jnp.cos(ang), jnp.sin(ang)], axis=1)           # (S_pad, NTRIG)
    # Element-wise repeat so column k = d*8+f carries harmonic d = k // 8.
    trig_rep = jnp.repeat(trig, AUG, axis=1).astype(jnp.float32)           # (S_pad, 64)

    out = pl.pallas_call(
        odenet_kernel,
        out_shape=jax.ShapeDtypeStruct((S_pad, B, OUT), jnp.float32),
        grid=(num_blocks,),
        in_specs=[
            pl.BlockSpec((ST, GALK), lambda i: (i, 0)),          # per-chunk trig table
            pl.BlockSpec((ST, B, AUG), lambda i: (i, 0, 0)),     # per-chunk states
            pl.BlockSpec((GALK, HID), lambda i: (0, 0)),         # resident weights below
            pl.BlockSpec((HID, HID), lambda i: (0, 0)),
            pl.BlockSpec((1, HID), lambda i: (0, 0)),
            pl.BlockSpec((HID, OUT), lambda i: (0, 0)),
            pl.BlockSpec((1, OUT), lambda i: (0, 0)),
        ],
        out_specs=pl.BlockSpec((ST, B, OUT), lambda i: (i, 0, 0)),
        compiler_params=pltpu.CompilerParams(
            dimension_semantics=("parallel",)),   # harmless at grid=1; lets v7x shard a 2-block grid
    )(trig_rep, xa, params["cgal64"], params["w2"], params["b2"],
      params["w3"], params["b3"])
    return out[:S]


def odenet_forward(t, x, params):
    """Single RHS evaluation (B, 3) -> (B, 3), matching the torch forward."""
    out = odenet_forward_steps(jnp.asarray(t, jnp.float32)[None], x[None], params)
    return out[0]


def init_params(key):
    """Deterministic synthetic parameters matching the torch module's shapes."""
    k = jax.random.split(key, 5)
    # GalLinear coeffs: ((in_features+1)*out_features, deg, n_eig) = (448, 4, 2)
    coeffs = 0.1 * jax.random.normal(k[0], ((IN_FEAT + 1) * HID, DEG, 2), jnp.float32)
    Wpart = coeffs[: IN_FEAT * HID].reshape(HID, IN_FEAT, DEG, 2)   # [out, in, d, eig]
    bpart = coeffs[IN_FEAT * HID:].reshape(HID, DEG, 2)             # [out, d, eig]
    cw = jnp.transpose(Wpart, (3, 2, 1, 0))                         # [eig, d, in, out]
    cb = jnp.transpose(bpart, (2, 1, 0))[:, :, None, :]             # [eig, d, 1, out]
    c_all = jnp.concatenate([cw, cb], axis=2)                       # [eig, d, in+1, out]
    cw_cos, cw_sin = c_all[0], c_all[1]                             # (4, 7, 64) each
    # Stacked coeffs: [cos d=0..3, sin d=0..3], feature dim padded 7 -> 8 (zero row),
    # then flattened so row d*8+f matches the kernel's z packing.
    cgal = jnp.concatenate([cw_cos, cw_sin], axis=0)                # (8, 7, 64)
    cgal = jnp.pad(cgal, ((0, 0), (0, 1), (0, 0)))                  # (8, 8, 64)
    return dict(
        cw_cos=cw_cos,
        cw_sin=cw_sin,
        cgal64=cgal.reshape(GALK, HID),                             # (64, 64)
        w2=0.1 * jax.random.normal(k[1], (HID, HID), jnp.float32),  # stored (in, out)
        b2=0.1 * jax.random.normal(k[2], (1, HID), jnp.float32),
        w3=0.1 * jax.random.normal(k[3], (HID, OUT), jnp.float32),  # stored (in, out)
        b3=0.1 * jax.random.normal(k[4], (1, OUT), jnp.float32),
        dilation=jnp.float32(1.0),
        shift=jnp.float32(0.0),
    )


def odenet_ref(t, x, params):
    """Pure-JAX reference of the same forward (high-precision matmuls)."""
    hi = jax.lax.Precision.HIGHEST
    x0, x1, x2 = x[:, 0:1], x[:, 1:2], x[:, 2:3]
    xa = jnp.concatenate([x, x0 * x1, x1 * x2, x0 * x2, jnp.ones_like(x0)], axis=1)
    s = t * params["dilation"] + params["shift"]
    n = jnp.linspace(0.0, float(DEG), DEG)
    w = (jnp.einsum("d,dio->io", jnp.cos(s * n), params["cw_cos"], precision=hi)
         + jnp.einsum("d,dio->io", jnp.sin(s * n), params["cw_sin"], precision=hi))
    h = _softplus(jnp.dot(xa, w, precision=hi))
    h = _softplus(jnp.dot(h, params["w2"], precision=hi) + params["b2"])
    return jnp.dot(h, params["w3"], precision=hi) + params["b3"]


if __name__ == "__main__":
    key = jax.random.PRNGKey(0)
    kp, kx = jax.random.split(key)
    params = init_params(kp)

    # Many ODE RHS evaluations (e.g. solver steps / RK stages) in one kernel call.
    S, B = 50, 8                                   # S not a multiple of 8 -> exercises padding
    xs = jax.random.normal(kx, (S, B, 3), jnp.float32)
    ts = jnp.linspace(0.0, 1.0, S).astype(jnp.float32)

    out = odenet_forward_steps(ts, xs, params)
    out = jax.block_until_ready(out)
    assert out.shape == (S, B, OUT)

    ref = jax.vmap(odenet_ref, in_axes=(0, 0, None))(ts, xs, params)
    # Tolerance accounts for the MXU's default (bf16-input) rounding of f32 matmuls.
    np.testing.assert_allclose(np.asarray(out), np.asarray(ref), rtol=1e-2, atol=5e-3)

    # 2-block grid (v7x-style: one block per TensorCore) gives identical results.
    out2 = jax.block_until_ready(odenet_forward_steps(ts, xs, params, num_blocks=2))
    np.testing.assert_allclose(np.asarray(out2), np.asarray(ref), rtol=1e-2, atol=5e-3)

    # Single-evaluation path (original module API) still works.
    out1 = jax.block_until_ready(odenet_forward(jnp.float32(0.5), xs[0], params))
    ref1 = odenet_ref(jnp.float32(0.5), xs[0], params)
    np.testing.assert_allclose(np.asarray(out1), np.asarray(ref1), rtol=1e-2, atol=5e-3)

    print("KERNEL_OK")
</pallas_src>

<mosaic_0001>
module attributes {stable_mosaic.version = 11 : i64} {
  func.func @odenet_kernel(%arg0: i32, %arg1: memref<56x64xf32, #tpu.memory_space<vmem>>, %arg2: memref<56x8x8xf32, #tpu.memory_space<vmem>>, %arg3: memref<64x64xf32, #tpu.memory_space<vmem>>, %arg4: memref<64x64xf32, #tpu.memory_space<vmem>>, %arg5: memref<1x64xf32, #tpu.memory_space<vmem>>, %arg6: memref<64x3xf32, #tpu.memory_space<vmem>>, %arg7: memref<1x3xf32, #tpu.memory_space<vmem>>, %arg8: memref<56x8x3xf32, #tpu.memory_space<vmem>>) attributes {dimension_semantics = [#tpu.dimension_semantics<parallel>], iteration_bounds = array<i64: 1>, scalar_prefetch = 0 : i64, scratch_operands = 0 : i64, tpu.core_type = #tpu.core_type<tc>, window_params = [{transform_indices = @transform_0, window_bounds = array<i64: 56, 64>}, {transform_indices = @transform_1, window_bounds = array<i64: 56, 8, 8>}, {pipeline_mode = #tpu.pipeline_mode<synchronous>, transform_indices = @transform_2, window_bounds = array<i64: 64, 64>}, {pipeline_mode = #tpu.pipeline_mode<synchronous>, transform_indices = @transform_3, window_bounds = array<i64: 64, 64>}, {pipeline_mode = #tpu.pipeline_mode<synchronous>, transform_indices = @transform_4, window_bounds = array<i64: 1, 64>}, {pipeline_mode = #tpu.pipeline_mode<synchronous>, transform_indices = @transform_5, window_bounds = array<i64: 64, 3>}, {pipeline_mode = #tpu.pipeline_mode<synchronous>, transform_indices = @transform_6, window_bounds = array<i64: 1, 3>}, {transform_indices = @transform_7, window_bounds = array<i64: 56, 8, 3>}]} {
    %c0 = arith.constant 0 : index
    %c0_0 = arith.constant 0 : index
    %c0_1 = arith.constant 0 : index
    %0 = vector.load %arg2[%c0, %c0_0, %c0_1] : memref<56x8x8xf32, #tpu.memory_space<vmem>>, vector<56x8x8xf32>
    %1 = tpu.concatenate %0, %0, %0, %0, %0, %0, %0, %0 in 2 : vector<56x8x8xf32>, vector<56x8x8xf32>, vector<56x8x8xf32>, vector<56x8x8xf32>, vector<56x8x8xf32>, vector<56x8x8xf32>, vector<56x8x8xf32>, vector<56x8x8xf32> -> vector<56x8x64xf32>
    %c0_2 = arith.constant 0 : index
    %c0_3 = arith.constant 0 : index
    %2 = vector.load %arg1[%c0_2, %c0_3] : memref<56x64xf32, #tpu.memory_space<vmem>>, vector<56x64xf32>
    %3 = vector.shape_cast %2 : vector<56x64xf32> to vector<56x1x64xf32>
    %4 = vector.broadcast %3 : vector<56x1x64xf32> to vector<56x8x64xf32>
    %5 = arith.mulf %4, %1 : vector<56x8x64xf32>
    %6 = vector.shape_cast %5 : vector<56x8x64xf32> to vector<448x64xf32>
    %c0_4 = arith.constant 0 : index
    %c0_5 = arith.constant 0 : index
    %7 = vector.load %arg3[%c0_4, %c0_5] : memref<64x64xf32, #tpu.memory_space<vmem>>, vector<64x64xf32>
    %cst = arith.constant dense<0.000000e+00> : vector<448x64xf32>
    %8 = tpu.matmul %6, %7, %cst {dimension_numbers = #tpu.dot_dimension_numbers<[1], [0], [0], [1], [0, 0, 1, 1], [], []>} : vector<448x64xf32>, vector<64x64xf32>, vector<448x64xf32> -> vector<448x64xf32>
    %cst_6 = arith.constant 2.000000e+01 : f32
    %9 = vector.broadcast %cst_6 : f32 to vector<448x64xf32>
    %10 = arith.cmpf ogt, %8, %9 : vector<448x64xf32>
    %cst_7 = arith.constant 2.000000e+01 : f32
    %11 = vector.broadcast %cst_7 : f32 to vector<448x64xf32>
    %12 = arith.minimumf %8, %11 : vector<448x64xf32>
    %13 = math.exp %12 : vector<448x64xf32>
    %14 = math.log1p %13 : vector<448x64xf32>
    %15 = arith.select %10, %8, %14 : vector<448x64xi1>, vector<448x64xf32>
    %c0_8 = arith.constant 0 : index
    %c0_9 = arith.constant 0 : index
    %16 = vector.load %arg4[%c0_8, %c0_9] : memref<64x64xf32, #tpu.memory_space<vmem>>, vector<64x64xf32>
    %cst_10 = arith.constant dense<0.000000e+00> : vector<448x64xf32>
    %17 = tpu.matmul %15, %16, %cst_10 {dimension_numbers = #tpu.dot_dimension_numbers<[1], [0], [0], [1], [0, 0, 1, 1], [], []>} : vector<448x64xf32>, vector<64x64xf32>, vector<448x64xf32> -> vector<448x64xf32>
    %c0_11 = arith.constant 0 : index
    %c0_12 = arith.constant 0 : index
    %18 = vector.load %arg5[%c0_11, %c0_12] : memref<1x64xf32, #tpu.memory_space<vmem>>, vector<1x64xf32>
    %19 = vector.broadcast %18 : vector<1x64xf32> to vector<448x64xf32>
    %20 = arith.addf %17, %19 : vector<448x64xf32>
    %cst_13 = arith.constant 2.000000e+01 : f32
    %21 = vector.broadcast %cst_13 : f32 to vector<448x64xf32>
    %22 = arith.cmpf ogt, %20, %21 : vector<448x64xf32>
    %cst_14 = arith.constant 2.000000e+01 : f32
    %23 = vector.broadcast %cst_14 : f32 to vector<448x64xf32>
    %24 = arith.minimumf %20, %23 : vector<448x64xf32>
    %25 = math.exp %24 : vector<448x64xf32>
    %26 = math.log1p %25 : vector<448x64xf32>
    %27 = arith.select %22, %20, %26 : vector<448x64xi1>, vector<448x64xf32>
    %c0_15 = arith.constant 0 : index
    %c0_16 = arith.constant 0 : index
    %28 = vector.load %arg6[%c0_15, %c0_16] : memref<64x3xf32, #tpu.memory_space<vmem>>, vector<64x3xf32>
    %cst_17 = arith.constant dense<0.000000e+00> : vector<448x3xf32>
    %29 = tpu.matmul %27, %28, %cst_17 {dimension_numbers = #tpu.dot_dimension_numbers<[1], [0], [0], [1], [0, 0, 1, 1], [], []>} : vector<448x64xf32>, vector<64x3xf32>, vector<448x3xf32> -> vector<448x3xf32>
    %c0_18 = arith.constant 0 : index
    %c0_19 = arith.constant 0 : index
    %30 = vector.load %arg7[%c0_18, %c0_19] : memref<1x3xf32, #tpu.memory_space<vmem>>, vector<1x3xf32>
    %31 = vector.broadcast %30 : vector<1x3xf32> to vector<448x3xf32>
    %32 = arith.addf %29, %31 : vector<448x3xf32>
    %33 = vector.shape_cast %32 : vector<448x3xf32> to vector<56x8x3xf32>
    %c0_20 = arith.constant 0 : index
    %c0_21 = arith.constant 0 : index
    %c0_22 = arith.constant 0 : index
    %34 = vector.load %arg8[%c0_20, %c0_21, %c0_22] : memref<56x8x3xf32, #tpu.memory_space<vmem>>, vector<56x8x3xf32>
    tpu.vector_store %arg8[%c0_20, %c0_21, %c0_22], %33 {strides = array<i32>} : memref<56x8x3xf32, #tpu.memory_space<vmem>>, vector<56x8x3xf32>,
    return
  }
  func.func @transform_0(%arg0: i32) -> (i32, i32) {
    %c0_i32 = arith.constant 0 : i32
    %c0_i32_0 = arith.constant 0 : i32
    return %arg0, %c0_i32 : i32, i32
  }
  func.func @transform_1(%arg0: i32) -> (i32, i32, i32) {
    %c0_i32 = arith.constant 0 : i32
    %c0_i32_0 = arith.constant 0 : i32
    %c0_i32_1 = arith.constant 0 : i32
    return %arg0, %c0_i32, %c0_i32_0 : i32, i32, i32
  }
  func.func @transform_2(%arg0: i32) -> (i32, i32) {
    %c0_i32 = arith.constant 0 : i32
    %c0_i32_0 = arith.constant 0 : i32
    %c0_i32_1 = arith.constant 0 : i32
    return %c0_i32, %c0_i32_0 : i32, i32
  }
  func.func @transform_3(%arg0: i32) -> (i32, i32) {
    %c0_i32 = arith.constant 0 : i32
    %c0_i32_0 = arith.constant 0 : i32
    %c0_i32_1 = arith.constant 0 : i32
    return %c0_i32, %c0_i32_0 : i32, i32
  }
  func.func @transform_4(%arg0: i32) -> (i32, i32) {
    %c0_i32 = arith.constant 0 : i32
    %c0_i32_0 = arith.constant 0 : i32
    %c0_i32_1 = arith.constant 0 : i32
    return %c0_i32, %c0_i32_0 : i32, i32
  }
  func.func @transform_5(%arg0: i32) -> (i32, i32) {
    %c0_i32 = arith.constant 0 : i32
    %c0_i32_0 = arith.constant 0 : i32
    %c0_i32_1 = arith.constant 0 : i32
    return %c0_i32, %c0_i32_0 : i32, i32
  }
  func.func @transform_6(%arg0: i32) -> (i32, i32) {
    %c0_i32 = arith.constant 0 : i32
    %c0_i32_0 = arith.constant 0 : i32
    %c0_i32_1 = arith.constant 0 : i32
    return %c0_i32, %c0_i32_0 : i32, i32
  }
  func.func @transform_7(%arg0: i32) -> (i32, i32, i32) {
    %c0_i32 = arith.constant 0 : i32
    %c0_i32_0 = arith.constant 0 : i32
    %c0_i32_1 = arith.constant 0 : i32
    return %arg0, %c0_i32, %c0_i32_0 : i32, i32, i32
  }
}

</mosaic_0001>

<bundles_post_ra>
// kernel: odenet_forward_steps.1
= control target key start
LH: loop header
LB: loop body
LE: loop exit
PB: predicated region body
PF: predicated region fallthrough
CT: control target
= control target key end

     0   :  { %s6760_s26 = smov 16   ;;  %s6761_s27 = smov 8   ;;  %v6767_v25 = vmov 1966171168   ;;  %v1731_v27 = vlaneseq  ;;  %vm1314_vm0 = vcmask 64512   ;;  %vm1371_vm1 = vcmask 130048   ;;  %s11454_s1 = inlined_call_operand.vmem [shape: f32[56,8,8], index: 1, kind: input, shape index: {}]   ;;  %s11455_s2 = inlined_call_operand.vmem [shape: f32[64,64], index: 2, kind: input, shape index: {}]   ;;  %s11456_s0 = inlined_call_operand.vmem [shape: f32[56,64], index: 0, kind: input, shape index: {}]   ;;  %s11457_s3 = inlined_call_operand.vmem [shape: f32[64,64], index: 3, kind: input, shape index: {}]   ;;  %s11458_s5 = inlined_call_operand.vmem [shape: f32[64,3], index: 5, kind: input, shape index: {}]   ;;  %s11459_s4 = inlined_call_operand.vmem [shape: f32[1,64], index: 4, kind: input, shape index: {}]   ;;  %s11460_s6 = inlined_call_operand.vmem [shape: f32[1,3], index: 6, kind: input, shape index: {}]   ;;  %s11461_s7 = inlined_call_operand.vmem [shape: f32[56,8,3], index: 7, kind: output, shape index: {}]  }
   0x1   :  { %v6811_v0 = vld [vmem:[%s11454_s1] sm:$0xff]  ;;  %v6820_v1 = vld [vmem:[%s11454_s1 + $0x8] sm:$0xff]  ;;  %s6762_s30 = smov 24   ;;  %v6833_v2 = vld [vmem:[%s11454_s1 + $0x10] sm:$0xff]  ;;  %s6763_s10 = smov 32   ;;  %v1729_v26 = vunpack.c.l.s4 %v6767_v25  ;;  %vm1428_vm2 = vcmask 195584  }
   0x2   :  { %306 = vrot.lane.b32.xlu1 %v6811_v0, %s6760_s26  ;;  %138 = vrot.lane.b32.xlu0 %v6811_v0, %s6761_s27  ;;  %v2413_v3 = vld [vmem:[%s11455_s2 + $0x38] sm:$0xff]  ;;  %v2412_v4 = vld [vmem:[%s11455_s2 + $0x30] sm:$0xff]  ;;  %s6764_s15 = smov 40   ;;  %s6765_s24 = smov 48   ;;  %v1732_v31 = vshrl.u32 %v1731_v27, 7  ;;  %vm1485_vm3 = vcmask 261120  }
   0x3   :  { %5975 = vmatprep.subr.mxu0 %v2413_v3  ;;  %6275 = vmatprep.subr.mxu1 %v2413_v3  ;;  %v2411_v5 = vld [vmem:[%s11455_s2 + $0x28] sm:$0xff]  ;;  %v6855_v6 = vld [vmem:[%s11454_s1 + $0x18] sm:$0xff]  ;;  %v2410_v7 = vld [vmem:[%s11455_s2 + $0x20] sm:$0xff]  ;;  %s6766_s12 = smov 56   ;;  %v1730_v30 = vunpack.c.0.s8 %v1729_v26  ;;  %vm1542_vm4 = vcmask 326656   ;;  %vm1599_vm5 = vcmask 392192  }
   0x4   :  { %5976 = vmatpush3.msra.mxu0 %v2413_v3  ;;  %6283 = vmatpush3.msra.mxu1 %v2413_v3  ;;  %v2409_v8 = vld [vmem:[%s11455_s2 + $0x18] sm:$0xff]  ;;  %v2408_v9 = vld [vmem:[%s11455_s2 + $0x10] sm:$0xff]  ;;  %v2407_v10 = vld [vmem:[%s11455_s2 + $0x8] sm:$0xff]  ;;  %v7060_v44 = vsub.s32 0, %v1732_v31  ;;  %vm1656_vm6 = vcmask 457728   ;;  %vm2414_vm7 = vcmask 523264  }
   0x5   :  { %5977 = vmatprep.subr.mxu0 %v2412_v4  ;;  %6276 = vmatprep.subr.mxu1 %v2412_v4  ;;  %v2406_v11 = vld [vmem:[%s11455_s2] sm:$0xff]  ;;  %v6908_v13 = vld [vmem:[%s11454_s1 + $0x28] sm:$0xff]  ;;  %v6933_v14 = vld [vmem:[%s11454_s1 + $0x30] sm:$0xff]  ;;  %v7034_v35 = vsub.s32 %v1730_v30, %v1732_v31 }
   0x6   :  { %308 = vrot.lane.b32.xlu1 %v6820_v1, %s6760_s26  ;;  %140 = vrot.lane.b32.xlu0 %v6820_v1, %s6761_s27  ;;  %v6895_v12 = vld [vmem:[%s11454_s1 + $0x20] sm:$0xff]  ;;  %v6946_v15 = vld [vmem:[%s11454_s1 + $0x38] sm:$0xff] }
   0x7   :  { %5978 = vmatpush3.msra.mxu0 %v2412_v4  ;;  %6284 = vmatpush3.msra.mxu1 %v2412_v4  ;;  %v6971_v16 = vld [vmem:[%s11454_s1 + $0x40] sm:$0xff]  ;;  %v6984_v17 = vld [vmem:[%s11454_s1 + $0x48] sm:$0xff]  ;;  %v7011_v22 = vld [vmem:[%s11454_s1 + $0x50] sm:$0xff] }
   0x8   :  { %5979 = vmatprep.subr.mxu0 %v2411_v5  ;;  %6277 = vmatprep.subr.mxu1 %v2411_v5  ;;  %v7028_v32 = vld [vmem:[%s11454_s1 + $0x58] sm:$0xff]  ;;  %v7039_v36 = vld [vmem:[%s11456_s0] sm:$0xff] }
   0x9   :  { %5980 = vmatpush3.msra.mxu0 %v2411_v5  ;;  %6285 = vmatpush3.msra.mxu1 %v2411_v5  ;;  %v1734_v39 = vrot.slane %v7039_v36, %v7034_v35  ;;  %v7088_v60 = vld [vmem:[%s11454_s1 + $0x60] sm:$0xff] }
   0xa   :  { %476 = vrot.lane.b32.xlu1 %v6820_v1, %s6762_s30  ;;  %474 = vrot.lane.b32.xlu0 %v6811_v0, %s6762_s30 }
   0xb   :  { %5981 = vmatprep.subr.mxu0 %v2410_v7  ;;  %6278 = vmatprep.subr.mxu1 %v2410_v7  ;;  %v7058_v43 = vrot.slane %v1734_v39, %v7034_v35  ;;  %v1742_v51 = vcombine.high %v1734_v39, %v1734_v39 }
   0xc   :  { %5982 = vmatpush3.msra.mxu0 %v2410_v7  ;;  %6286 = vmatpush3.msra.mxu1 %v2410_v7 }
   0xd   :  { %5983 = vmatprep.subr.mxu0 %v2409_v8  ;;  %6279 = vmatprep.subr.mxu1 %v2409_v8  ;;  %v2073_v50 = vrot.slane %v7058_v43, %v7060_v44  ;;  %v7083_v59 = vrot.slane %v1742_v51, %v7034_v35  ;;  %v1772_v25 = vcombine.high %v7058_v43, %v7058_v43 }
   0xe   :  { %142 = vrot.lane.b32.xlu1 %v6833_v2, %s6761_s27  ;;  %642 = vrot.lane.b32.xlu0 %v6811_v0, %s6763_s10 }
   0xf   :  { %5984 = vmatpush3.msra.mxu0 %v2409_v8  ;;  %6287 = vmatpush3.msra.mxu1 %v2409_v8  ;;  %v2077_v3 = vrot.slane %v7083_v59, %v7060_v44 }
  0x10   :  { %5985 = vmatprep.subr.mxu0 %v2408_v9  ;;  %6280 = vmatprep.subr.mxu1 %v2408_v9 }
  0x11   :  { %5986 = vmatpush3.msra.mxu0 %v2408_v9  ;;  %6288 = vmatpush3.msra.mxu1 %v2408_v9 }
  0x12   :  { %810 = vrot.lane.b32.xlu1 %v6811_v0, %s6764_s15  ;;  %644 = vrot.lane.b32.xlu0 %v6820_v1, %s6763_s10 }
  0x13   :  { %5987 = vmatprep.subr.mxu0 %v2407_v10  ;;  %6281 = vmatprep.subr.mxu1 %v2407_v10 }
  0x14   :  { %5988 = vmatpush3.msra.mxu0 %v2407_v10  ;;  %6289 = vmatpush3.msra.mxu1 %v2407_v10 }
  0x15   :  { %5989 = vmatprep.subr.mxu0 %v2406_v11  ;;  %6282 = vmatprep.subr.mxu1 %v2406_v11 }
  0x16   :  { %310 = vrot.lane.b32.xlu1 %v6833_v2, %s6760_s26  ;;  %144 = vrot.lane.b32.xlu0 %v6855_v6, %s6761_s27 }
  0x17   :  { %5990 = vmatpush3.msra.mxu0 %v2406_v11  ;;  %6290 = vmatpush3.msra.mxu1 %v2406_v11  ;;  %v7114_v11 = vld [vmem:[%s11454_s1 + $0x68] sm:$0xff] }
  0x1a   :  { %978 = vrot.lane.b32.xlu1 %v6811_v0, %s6765_s24  ;;  %812 = vrot.lane.b32.xlu0 %v6820_v1, %s6764_s15 }
  0x1e   :  { %478 = vrot.lane.b32.xlu1 %v6833_v2, %s6762_s30  ;;  %312 = vrot.lane.b32.xlu0 %v6855_v6, %s6760_s26 }
  0x22   :  { %1146 = vrot.lane.b32.xlu1 %v6811_v0, %s6766_s12  ;;  %980 = vrot.lane.b32.xlu0 %v6820_v1, %s6765_s24 }
  0x26   :  { %646 = vrot.lane.b32.xlu1 %v6833_v2, %s6763_s10  ;;  %480 = vrot.lane.b32.xlu0 %v6855_v6, %s6762_s30 }
  0x2a   :  { %146 = vrot.lane.b32.xlu1 %v6895_v12, %s6761_s27  ;;  %1148 = vrot.lane.b32.xlu0 %v6820_v1, %s6766_s12 }
  0x2e   :  { %814 = vrot.lane.b32.xlu1 %v6833_v2, %s6764_s15  ;;  %648 = vrot.lane.b32.xlu0 %v6855_v6, %s6763_s10 }
  0x32   :  { %314 = vrot.lane.b32.xlu1 %v6895_v12, %s6760_s26  ;;  %148 = vrot.lane.b32.xlu0 %v6908_v13, %s6761_s27 }
  0x36   :  { %982 = vrot.lane.b32.xlu1 %v6833_v2, %s6765_s24  ;;  %816 = vrot.lane.b32.xlu0 %v6855_v6, %s6764_s15 }
  0x3a   :  { %482 = vrot.lane.b32.xlu1 %v6895_v12, %s6762_s30  ;;  %316 = vrot.lane.b32.xlu0 %v6908_v13, %s6760_s26 }
  0x3e   :  { %1150 = vrot.lane.b32.xlu1 %v6833_v2, %s6766_s12  ;;  %984 = vrot.lane.b32.xlu0 %v6855_v6, %s6765_s24 }
  0x42   :  { %650 = vrot.lane.b32.xlu1 %v6895_v12, %s6763_s10  ;;  %484 = vrot.lane.b32.xlu0 %v6908_v13, %s6762_s30 }
  0x46   :  { %150 = vrot.lane.b32.xlu1 %v6933_v14, %s6761_s27  ;;  %1152 = vrot.lane.b32.xlu0 %v6855_v6, %s6766_s12 }
  0x4a   :  { %818 = vrot.lane.b32.xlu1 %v6895_v12, %s6764_s15  ;;  %652 = vrot.lane.b32.xlu0 %v6908_v13, %s6763_s10 }
  0x4e   :  { %318 = vrot.lane.b32.xlu1 %v6933_v14, %s6760_s26  ;;  %152 = vrot.lane.b32.xlu0 %v6946_v15, %s6761_s27 }
  0x52   :  { %986 = vrot.lane.b32.xlu1 %v6895_v12, %s6765_s24  ;;  %820 = vrot.lane.b32.xlu0 %v6908_v13, %s6764_s15 }
  0x56   :  { %486 = vrot.lane.b32.xlu1 %v6933_v14, %s6762_s30  ;;  %320 = vrot.lane.b32.xlu0 %v6946_v15, %s6760_s26 }
  0x5a   :  { %1154 = vrot.lane.b32.xlu1 %v6895_v12, %s6766_s12  ;;  %988 = vrot.lane.b32.xlu0 %v6908_v13, %s6765_s24 }
  0x5e   :  { %654 = vrot.lane.b32.xlu1 %v6933_v14, %s6763_s10  ;;  %488 = vrot.lane.b32.xlu0 %v6946_v15, %s6762_s30 }
  0x62   :  { %154 = vrot.lane.b32.xlu1 %v6971_v16, %s6761_s27  ;;  %1156 = vrot.lane.b32.xlu0 %v6908_v13, %s6766_s12 }
  0x66   :  { %822 = vrot.lane.b32.xlu1 %v6933_v14, %s6764_s15  ;;  %656 = vrot.lane.b32.xlu0 %v6946_v15, %s6763_s10 }
  0x6a   :  { %322 = vrot.lane.b32.xlu1 %v6971_v16, %s6760_s26  ;;  %156 = vrot.lane.b32.xlu0 %v6984_v17, %s6761_s27 }
  0x6e   :  { %990 = vrot.lane.b32.xlu1 %v6933_v14, %s6765_s24  ;;  %824 = vrot.lane.b32.xlu0 %v6946_v15, %s6764_s15 }
  0x72   :  { %490 = vrot.lane.b32.xlu1 %v6971_v16, %s6762_s30  ;;  %324 = vrot.lane.b32.xlu0 %v6984_v17, %s6760_s26 }
  0x74   :  { %v307_v18 = vpop.permute.xlu1 %306  ;;  %v139_v19 = vpop.permute.xlu0 %138 }
  0x75   :  { %v1315_v42 = vsel %vm1314_vm0, %v6811_v0, %v139_v19 }
  0x76   :  { %1158 = vrot.lane.b32.xlu1 %v6933_v14, %s6766_s12  ;;  %992 = vrot.lane.b32.xlu0 %v6946_v15, %s6765_s24  ;;  %v1372_v45 = vsel %vm1371_vm1, %v1315_v42, %v307_v18  ;;  %v1774_v42 = vcombine.high %v7083_v59, %v7083_v59  ;;  %v1727_v59 = vcombine.high %v7039_v36, %v7039_v36 }
  0x78   :  { %v7002_v20 = vpop.permute.xlu1 %308  ;;  %v141_v21 = vpop.permute.xlu0 %140 }
  0x79   :  { %v1316_v56 = vsel %vm1314_vm0, %v6820_v1, %v141_v21 }
  0x7a   :  { %658 = vrot.lane.b32.xlu1 %v6971_v16, %s6763_s10  ;;  %492 = vrot.lane.b32.xlu0 %v6984_v17, %s6762_s30  ;;  %v1373_v61 = vsel %vm1371_vm1, %v1316_v56, %v7002_v20  ;;  %v7188_v56 = vld [vmem:[%s11454_s1 + $0x78] sm:$0xff] }
  0x7c   :  { %v7013_v23 = vpop.permute.xlu1 %476  ;;  %v475_v24 = vpop.permute.xlu0 %474 }
  0x7d   :  { %v1429_v48 = vsel %vm1428_vm2, %v1372_v45, %v475_v24  ;;  %v1430_v0 = vsel %vm1428_vm2, %v1373_v61, %v7013_v23  ;;  %v7164_v45 = vld [vmem:[%s11454_s1 + $0x70] sm:$0xff] }
  0x7e   :  { %158 = vrot.lane.b32.xlu1 %v7011_v22, %s6761_s27  ;;  %1160 = vrot.lane.b32.xlu0 %v6946_v15, %s6766_s12 }
  0x80   :  { %v7019_v28 = vpop.permute.xlu1 %142  ;;  %v643_v29 = vpop.permute.xlu0 %642 }
  0x81   :  { %v1486_v49 = vsel %vm1485_vm3, %v1429_v48, %v643_v29  ;;  %v1317_v26 = vsel %vm1314_vm0, %v6833_v2, %v7019_v28 }
  0x82   :  { %826 = vrot.lane.b32.xlu1 %v6971_v16, %s6764_s15  ;;  %660 = vrot.lane.b32.xlu0 %v6984_v17, %s6763_s10 }
  0x84   :  { %v811_v33 = vpop.permute.xlu1 %810  ;;  %v645_v34 = vpop.permute.xlu0 %644 }
  0x85   :  { %v1543_v52 = vsel %vm1542_vm4, %v1486_v49, %v811_v33  ;;  %v1487_v1 = vsel %vm1485_vm3, %v1430_v0, %v645_v34  ;;  %v2081_v34 = vrot.slane %v1772_v25, %v7060_v44 }
  0x86   :  { %326 = vrot.lane.b32.xlu1 %v7011_v22, %s6760_s26  ;;  %160 = vrot.lane.b32.xlu0 %v7028_v32, %s6761_s27 }
  0x88   :  { %v7041_v37 = vpop.permute.xlu1 %310  ;;  %v7043_v38 = vpop.permute.xlu0 %144 }
  0x89   :  { %v1374_v27 = vsel %vm1371_vm1, %v1317_v26, %v7041_v37  ;;  %v1318_v43 = vsel %vm1314_vm0, %v6855_v6, %v7043_v38  ;;  %v2085_v6 = vrot.slane %v1774_v42, %v7060_v44  ;;  %v7269_v42 = vld [vmem:[%s11454_s1 + $0x88] sm:$0xff] }
  0x8a   :  { %994 = vrot.lane.b32.xlu1 %v6971_v16, %s6765_s24  ;;  %828 = vrot.lane.b32.xlu0 %v6984_v17, %s6764_s15 }
  0x8c   :  { %v979_v40 = vpop.permute.xlu1 %978  ;;  %v813_v41 = vpop.permute.xlu0 %812 }
  0x8d   :  { %v1600_v53 = vsel %vm1599_vm5, %v1543_v52, %v979_v40  ;;  %v1544_v4 = vsel %vm1542_vm4, %v1487_v1, %v813_v41 }
  0x8e   :  { %494 = vrot.lane.b32.xlu1 %v7011_v22, %s6762_s30  ;;  %328 = vrot.lane.b32.xlu0 %v7028_v32, %s6760_s26 }
  0x90   :  { %v479_v46 = vpop.permute.xlu1 %478  ;;  %v7063_v47 = vpop.permute.xlu0 %312 }
  0x91   :  { %v1431_v31 = vsel %vm1428_vm2, %v1374_v27, %v479_v46  ;;  %v1375_v46 = vsel %vm1371_vm1, %v1318_v43, %v7063_v47 }
  0x92   :  { %1162 = vrot.lane.b32.xlu1 %v6971_v16, %s6766_s12  ;;  %996 = vrot.lane.b32.xlu0 %v6984_v17, %s6765_s24 }
  0x94   :  { %v1147_v54 = vpop.permute.xlu1 %1146  ;;  %v981_v55 = vpop.permute.xlu0 %980 }
  0x95   :  { %v1657_v57 = vsel %vm1656_vm6, %v1600_v53, %v1147_v54  ;;  %v1601_v5 = vsel %vm1599_vm5, %v1544_v4, %v981_v55 }
  0x96   :  { %662 = vrot.lane.b32.xlu1 %v7011_v22, %s6763_s10  ;;  %496 = vrot.lane.b32.xlu0 %v7028_v32, %s6762_s30  ;;  %v2350_v58 = vmul.f32 %v2073_v50, %v1657_v57 }
  0x98   :  { %v647_v62 = vpop.permute.xlu1 %646  ;;  %v481_v63 = vpop.permute.xlu0 %480  ;;  %5991 = vmatprep.mubr.msk.f32.mxu0 %vm2414_vm7, %v2350_v58 }
  0x99   :  { %v1488_v33 = vsel %vm1485_vm3, %v1431_v31, %v647_v62  ;;  %v1432_v50 = vsel %vm1428_vm2, %v1375_v46, %v481_v63  ;;  %v1741_v63 = vrot.slane %v1727_v59, %v7034_v35 }
  0x9a   :  { %162 = vrot.lane.b32.xlu1 %v7088_v60, %s6761_s27  ;;  %1164 = vrot.lane.b32.xlu0 %v6984_v17, %s6766_s12 }
  0x9b   :  { %v7211_v1 = vrot.slane %v1741_v63, %v7034_v35 }
  0x9c   :  { %v7104_v7 = vpop.permute.xlu1 %146  ;;  %v1149_v8 = vpop.permute.xlu0 %1148 }
  0x9d   :  { %v1658_v9 = vsel %vm1656_vm6, %v1601_v5, %v1149_v8 }
  0x9e   :  { %v2351_v10 = vmul.f32 %v2077_v3, %v1658_v9  ;;  %830 = vrot.lane.b32.xlu1 %v7011_v22, %s6764_s15  ;;  %664 = vrot.lane.b32.xlu0 %v7028_v32, %s6763_s10  ;;  %v1319_v3 = vsel %vm1314_vm0, %v6895_v12, %v7104_v7  ;;  %v1743_v12 = vcombine.high %v1741_v63, %v1741_v63 }
  0xa0   :  { %v815_v18 = vpop.permute.xlu1 %814  ;;  %v649_v19 = vpop.permute.xlu0 %648  ;;  %5992 = vmatmul.mubr.msk.f32.vlgmr.msra.gmra.mxu0 %vm2414_vm7, %v2351_v10  ;;  %v7236_v26 = vrot.slane %v1743_v12, %v7034_v35 }
  0xa1   :  { %v1545_v2 = vsel %vm1542_vm4, %v1488_v33, %v815_v18  ;;  %v1489_v51 = vsel %vm1485_vm3, %v1432_v50, %v649_v19  ;;  %v2089_v18 = vrot.slane %v7211_v1, %v7060_v44 }
  0xa2   :  { %330 = vrot.lane.b32.xlu1 %v7088_v60, %s6760_s26  ;;  %164 = vrot.lane.b32.xlu0 %v7114_v11, %s6761_s27 }
  0xa4   :  { %v7121_v20 = vpop.permute.xlu1 %314  ;;  %v7123_v21 = vpop.permute.xlu0 %148 }
  0xa5   :  { %v1376_v4 = vsel %vm1371_vm1, %v1319_v3, %v7121_v20  ;;  %v1320_v27 = vsel %vm1314_vm0, %v6908_v13, %v7123_v21  ;;  %v2093_v13 = vrot.slane %v7236_v26, %v7060_v44  ;;  %v7319_v3 = vld [vmem:[%s11454_s1 + $0x90] sm:$0xff] }
  0xa6   :  { %998 = vrot.lane.b32.xlu1 %v7011_v22, %s6765_s24  ;;  %832 = vrot.lane.b32.xlu0 %v7028_v32, %s6764_s15 }
  0xa8   :  { %v983_v23 = vpop.permute.xlu1 %982  ;;  %v817_v24 = vpop.permute.xlu0 %816 }
  0xa9   :  { %v1602_v28 = vsel %vm1599_vm5, %v1545_v2, %v983_v23  ;;  %v1546_v38 = vsel %vm1542_vm4, %v1489_v51, %v817_v24 }
  0xaa   :  { %498 = vrot.lane.b32.xlu1 %v7088_v60, %s6762_s30  ;;  %332 = vrot.lane.b32.xlu0 %v7114_v11, %s6760_s26 }
  0xac   :  { %v483_v29 = vpop.permute.xlu1 %482  ;;  %v7140_v30 = vpop.permute.xlu0 %316 }
  0xad   :  { %v1433_v9 = vsel %vm1428_vm2, %v1376_v4, %v483_v29  ;;  %v7244_v29 = vld [vmem:[%s11454_s1 + $0x80] sm:$0xff]  ;;  %v1377_v31 = vsel %vm1371_vm1, %v1320_v27, %v7140_v30 }
  0xae   :  { %1166 = vrot.lane.b32.xlu1 %v7011_v22, %s6766_s12  ;;  %1000 = vrot.lane.b32.xlu0 %v7028_v32, %s6765_s24 }
  0xb0   :  { %v1151_v37 = vpop.permute.xlu1 %1150  ;;  %v985_v39 = vpop.permute.xlu0 %984 }
  0xb1   :  { %v1659_v40 = vsel %vm1656_vm6, %v1602_v28, %v1151_v37  ;;  %v1603_v47 = vsel %vm1599_vm5, %v1546_v38, %v985_v39 }
  0xb2   :  { %v2352_v41 = vmul.f32 %v2081_v34, %v1659_v40  ;;  %666 = vrot.lane.b32.xlu1 %v7088_v60, %s6763_s10  ;;  %500 = vrot.lane.b32.xlu0 %v7114_v11, %s6762_s30 }
  0xb4   :  { %v651_v48 = vpop.permute.xlu1 %650  ;;  %v485_v49 = vpop.permute.xlu0 %484  ;;  %5994 = vmatprep.mubr.msk.f32.mxu0 %vm2414_vm7, %v2352_v41 }
  0xb5   :  { %v1490_v10 = vsel %vm1485_vm3, %v1433_v9, %v651_v48  ;;  %v1434_v2 = vsel %vm1428_vm2, %v1377_v31, %v485_v49 }
  0xb6   :  { %166 = vrot.lane.b32.xlu1 %v7164_v45, %s6761_s27  ;;  %1168 = vrot.lane.b32.xlu0 %v7028_v32, %s6766_s12 }
  0xb8   :  { %v7178_v52 = vpop.permute.xlu1 %150  ;;  %v1153_v53 = vpop.permute.xlu0 %1152 }
  0xb9   :  { %v1660_v54 = vsel %vm1656_vm6, %v1603_v47, %v1153_v53  ;;  %v1321_v38 = vsel %vm1314_vm0, %v6933_v14, %v7178_v52 }
  0xba   :  { %v2353_v55 = vmul.f32 %v2085_v6, %v1660_v54  ;;  %834 = vrot.lane.b32.xlu1 %v7088_v60, %s6764_s15  ;;  %668 = vrot.lane.b32.xlu0 %v7114_v11, %s6763_s10  ;;  %v1773_v6 = vcombine.high %v7211_v1, %v7211_v1 }
  0xbc   :  { %v819_v57 = vpop.permute.xlu1 %818  ;;  %v653_v58 = vpop.permute.xlu0 %652  ;;  %5995 = vmatmul.mubr.msk.f32.gmra.mxu0 %vm2414_vm7, %v2353_v55 }
  0xbd   :  { %v1547_v7 = vsel %vm1542_vm4, %v1490_v10, %v819_v57  ;;  %v1491_v28 = vsel %vm1485_vm3, %v1434_v2, %v653_v58  ;;  %v2097_v58 = vrot.slane %v1773_v6, %v7060_v44 }
  0xbe   :  { %334 = vrot.lane.b32.xlu1 %v7164_v45, %s6760_s26  ;;  %168 = vrot.lane.b32.xlu0 %v7188_v56, %s6761_s27 }
  0xc0   :  { %v7197_v61 = vpop.permute.xlu1 %318  ;;  %v7199_v62 = vpop.permute.xlu0 %152 }
  0xc1   :  { %v1378_v47 = vsel %vm1371_vm1, %v1321_v38, %v7197_v61  ;;  %v1322_v1 = vsel %vm1314_vm0, %v6946_v15, %v7199_v62 }
  0xc2   :  { %1002 = vrot.lane.b32.xlu1 %v7088_v60, %s6765_s24  ;;  %836 = vrot.lane.b32.xlu0 %v7114_v11, %s6764_s15 }
  0xc4   :  { %v987_v0 = vpop.permute.xlu1 %986  ;;  %v821_v36 = vpop.permute.xlu0 %820 }
  0xc5   :  { %v1604_v19 = vsel %vm1599_vm5, %v1547_v7, %v987_v0  ;;  %v1548_v21 = vsel %vm1542_vm4, %v1491_v28, %v821_v36  ;;  %v1775_v36 = vcombine.high %v7236_v26, %v7236_v26  ;;  %v7353_v26 = vld [vmem:[%s11456_s0 + $0x8] sm:$0xff] }
  0xc6   :  { %502 = vrot.lane.b32.xlu1 %v7164_v45, %s6762_s30  ;;  %336 = vrot.lane.b32.xlu0 %v7188_v56, %s6760_s26 }
  0xc7   :  { %v2101_v15 = vrot.slane %v1775_v36, %v7060_v44  ;;  %v7428_v36 = vld [vmem:[%s11454_s1 + $0xa8] sm:$0xff] }
  0xc8   :  { %v487_v5 = vpop.permute.xlu1 %486  ;;  %v7218_v8 = vpop.permute.xlu0 %320 }
  0xc9   :  { %v1435_v55 = vsel %vm1428_vm2, %v1378_v47, %v487_v5  ;;  %v1379_v4 = vsel %vm1371_vm1, %v1322_v1, %v7218_v8 }
  0xca   :  { %1170 = vrot.lane.b32.xlu1 %v7088_v60, %s6766_s12  ;;  %1004 = vrot.lane.b32.xlu0 %v7114_v11, %s6765_s24 }
  0xcc   :  { %v1155_v20 = vpop.permute.xlu1 %1154  ;;  %v989_v23 = vpop.permute.xlu0 %988 }
  0xcd   :  { %v1661_v24 = vsel %vm1656_vm6, %v1604_v19, %v1155_v20  ;;  %v1605_v30 = vsel %vm1599_vm5, %v1548_v21, %v989_v23  ;;  %v7343_v23 = vld [vmem:[%s11454_s1 + $0x98] sm:$0xff] }
  0xce   :  { %v2354_v25 = vmul.f32 %v2089_v18, %v1661_v24  ;;  %670 = vrot.lane.b32.xlu1 %v7164_v45, %s6763_s10  ;;  %504 = vrot.lane.b32.xlu0 %v7188_v56, %s6762_s30 }
  0xd0   :  { %v655_v33 = vpop.permute.xlu1 %654  ;;  %v489_v34 = vpop.permute.xlu0 %488  ;;  %5997 = vmatprep.mubr.msk.f32.mxu0 %vm2414_vm7, %v2354_v25 }
  0xd1   :  { %v1492_v57 = vsel %vm1485_vm3, %v1435_v55, %v655_v33  ;;  %v1436_v10 = vsel %vm1428_vm2, %v1379_v4, %v489_v34  ;;  %v1783_v33 = vrot.slane %v7353_v26, %v7034_v35 }
  0xd2   :  { %170 = vrot.lane.b32.xlu1 %v7244_v29, %s6761_s27  ;;  %1172 = vrot.lane.b32.xlu0 %v7114_v11, %s6766_s12 }
  0xd3   :  { %v7370_v28 = vrot.slane %v1783_v33, %v7034_v35 }
  0xd4   :  { %v7259_v37 = vpop.permute.xlu1 %154  ;;  %v1157_v39 = vpop.permute.xlu0 %1156 }
  0xd5   :  { %v1662_v40 = vsel %vm1656_vm6, %v1605_v30, %v1157_v39 }
  0xd6   :  { %v2355_v41 = vmul.f32 %v2093_v13, %v1662_v40  ;;  %838 = vrot.lane.b32.xlu1 %v7164_v45, %s6764_s15  ;;  %672 = vrot.lane.b32.xlu0 %v7188_v56, %s6763_s10  ;;  %v1323_v13 = vsel %vm1314_vm0, %v6971_v16, %v7259_v37  ;;  %v1791_v16 = vcombine.high %v1783_v33, %v1783_v33 }
  0xd8   :  { %v823_v43 = vpop.permute.xlu1 %822  ;;  %v657_v46 = vpop.permute.xlu0 %656  ;;  %5998 = vmatmul.mubr.msk.f32.gmra.mxu0 %vm2414_vm7, %v2355_v41  ;;  %v7395_v38 = vrot.slane %v1791_v16, %v7034_v35 }
  0xd9   :  { %v1549_v14 = vsel %vm1542_vm4, %v1492_v57, %v823_v43  ;;  %v1493_v18 = vsel %vm1485_vm3, %v1436_v10, %v657_v46  ;;  %v2105_v43 = vrot.slane %v7370_v28, %v7060_v44 }
  0xda   :  { %338 = vrot.lane.b32.xlu1 %v7244_v29, %s6760_s26  ;;  %172 = vrot.lane.b32.xlu0 %v7269_v42, %s6761_s27 }
  0xdc   :  { %v7276_v48 = vpop.permute.xlu1 %322  ;;  %v7278_v49 = vpop.permute.xlu0 %156 }
  0xdd   :  { %v1380_v21 = vsel %vm1371_vm1, %v1323_v13, %v7276_v48  ;;  %v1324_v47 = vsel %vm1314_vm0, %v6984_v17, %v7278_v49  ;;  %v2109_v17 = vrot.slane %v7395_v38, %v7060_v44 }
  0xde   :  { %1006 = vrot.lane.b32.xlu1 %v7164_v45, %s6765_s24  ;;  %840 = vrot.lane.b32.xlu0 %v7188_v56, %s6764_s15 }
  0xe0   :  { %v991_v50 = vpop.permute.xlu1 %990  ;;  %v825_v51 = vpop.permute.xlu0 %824 }
  0xe1   :  { %v1606_v52 = vsel %vm1599_vm5, %v1549_v14, %v991_v50  ;;  %v1550_v62 = vsel %vm1542_vm4, %v1493_v18, %v825_v51 }
  0xe2   :  { %506 = vrot.lane.b32.xlu1 %v7244_v29, %s6762_s30  ;;  %340 = vrot.lane.b32.xlu0 %v7269_v42, %s6760_s26 }
  0xe4   :  { %v491_v53 = vpop.permute.xlu1 %490  ;;  %v7295_v54 = vpop.permute.xlu0 %324 }
  0xe5   :  { %v1437_v40 = vsel %vm1428_vm2, %v1380_v21, %v491_v53  ;;  %v7403_v53 = vld [vmem:[%s11454_s1 + $0xa0] sm:$0xff]  ;;  %v1381_v55 = vsel %vm1371_vm1, %v1324_v47, %v7295_v54  ;;  %v7478_v21 = vld [vmem:[%s11454_s1 + $0xb0] sm:$0xff]  ;;  %v1776_v47 = vcombine.high %v7353_v26, %v7353_v26 }
  0xe6   :  { %1174 = vrot.lane.b32.xlu1 %v7164_v45, %s6766_s12  ;;  %1008 = vrot.lane.b32.xlu0 %v7188_v56, %s6765_s24 }
  0xe8   :  { %v1159_v59 = vpop.permute.xlu1 %1158  ;;  %v993_v61 = vpop.permute.xlu0 %992 }
  0xe9   :  { %v1663_v63 = vsel %vm1656_vm6, %v1606_v52, %v1159_v59  ;;  %v1607_v8 = vsel %vm1599_vm5, %v1550_v62, %v993_v61 }
  0xea   :  { %v2356_v0 = vmul.f32 %v2097_v58, %v1663_v63  ;;  %674 = vrot.lane.b32.xlu1 %v7244_v29, %s6763_s10  ;;  %508 = vrot.lane.b32.xlu0 %v7269_v42, %s6762_s30 }
  0xec   :  { %v659_v5 = vpop.permute.xlu1 %658  ;;  %v493_v9 = vpop.permute.xlu0 %492  ;;  %6000 = vmatprep.mubr.msk.f32.mxu0 %vm2414_vm7, %v2356_v0 }
  0xed   :  { %v1494_v41 = vsel %vm1485_vm3, %v1437_v40, %v659_v5  ;;  %v1438_v14 = vsel %vm1428_vm2, %v1381_v55, %v493_v9 }
  0xee   :  { %174 = vrot.lane.b32.xlu1 %v7319_v3, %s6761_s27  ;;  %1176 = vrot.lane.b32.xlu0 %v7188_v56, %s6766_s12 }
  0xf0   :  { %v7333_v12 = vpop.permute.xlu1 %158  ;;  %v1161_v7 = vpop.permute.xlu0 %1160 }
  0xf1   :  { %v1664_v19 = vsel %vm1656_vm6, %v1607_v8, %v1161_v7  ;;  %v1325_v62 = vsel %vm1314_vm0, %v7011_v22, %v7333_v12 }
  0xf2   :  { %v2357_v20 = vmul.f32 %v2101_v15, %v1664_v19  ;;  %842 = vrot.lane.b32.xlu1 %v7244_v29, %s6764_s15  ;;  %676 = vrot.lane.b32.xlu0 %v7269_v42, %s6763_s10  ;;  %v1821_v15 = vcombine.high %v7370_v28, %v7370_v28  ;;  %v1823_v28 = vcombine.high %v7395_v38, %v7395_v38 }
  0xf4   :  { %v827_v24 = vpop.permute.xlu1 %826  ;;  %v661_v25 = vpop.permute.xlu0 %660  ;;  %6001 = vmatmul.mubr.msk.f32.gmra.mxu0 %vm2414_vm7, %v2357_v20 }
  0xf5   :  { %v1551_v37 = vsel %vm1542_vm4, %v1494_v41, %v827_v24  ;;  %v1495_v52 = vsel %vm1485_vm3, %v1438_v14, %v661_v25  ;;  %v2113_v25 = vrot.slane %v1821_v15, %v7060_v44 }
  0xf6   :  { %342 = vrot.lane.b32.xlu1 %v7319_v3, %s6760_s26  ;;  %176 = vrot.lane.b32.xlu0 %v7343_v23, %s6761_s27 }
  0xf8   :  { %v7355_v27 = vpop.permute.xlu1 %326  ;;  %v7357_v31 = vpop.permute.xlu0 %160 }
  0xf9   :  { %v1382_v8 = vsel %vm1371_vm1, %v1325_v62, %v7355_v27  ;;  %v1326_v13 = vsel %vm1314_vm0, %v7028_v32, %v7357_v31  ;;  %v2117_v32 = vrot.slane %v1823_v28, %v7060_v44  ;;  %v7583_v28 = vld [vmem:[%s11454_s1 + $0xc8] sm:$0xff] }
  0xfa   :  { %1010 = vrot.lane.b32.xlu1 %v7244_v29, %s6765_s24  ;;  %844 = vrot.lane.b32.xlu0 %v7269_v42, %s6764_s15 }
  0xfc   :  { %v995_v34 = vpop.permute.xlu1 %994  ;;  %v829_v2 = vpop.permute.xlu0 %828 }
  0xfd   :  { %v1608_v46 = vsel %vm1599_vm5, %v1551_v37, %v995_v34  ;;  %v1552_v49 = vsel %vm1542_vm4, %v1495_v52, %v829_v2 }
  0xfe   :  { %510 = vrot.lane.b32.xlu1 %v7319_v3, %s6762_s30  ;;  %344 = vrot.lane.b32.xlu0 %v7343_v23, %s6760_s26 }
 0x100   :  { %v495_v30 = vpop.permute.xlu1 %494  ;;  %v7377_v39 = vpop.permute.xlu0 %328 }
 0x101   :  { %v1439_v20 = vsel %vm1428_vm2, %v1382_v8, %v495_v30  ;;  %v1383_v30 = vsel %vm1371_vm1, %v1326_v13, %v7377_v39 }
 0x102   :  { %1178 = vrot.lane.b32.xlu1 %v7244_v29, %s6766_s12  ;;  %1012 = vrot.lane.b32.xlu0 %v7269_v42, %s6765_s24 }
 0x104   :  { %v1163_v48 = vpop.permute.xlu1 %1162  ;;  %v997_v50 = vpop.permute.xlu0 %996 }
 0x105   :  { %v1665_v51 = vsel %vm1656_vm6, %v1608_v46, %v1163_v48  ;;  %v1609_v54 = vsel %vm1599_vm5, %v1552_v49, %v997_v50 }
 0x106   :  { %v2358_v6 = vmul.f32 %v2105_v43, %v1665_v51  ;;  %678 = vrot.lane.b32.xlu1 %v7319_v3, %s6763_s10  ;;  %512 = vrot.lane.b32.xlu0 %v7343_v23, %s6762_s30  ;;  %v7502_v51 = vld [vmem:[%s11454_s1 + $0xb8] sm:$0xff] }
 0x108   :  { %v663_v57 = vpop.permute.xlu1 %662  ;;  %v497_v58 = vpop.permute.xlu0 %496  ;;  %6003 = vmatprep.mubr.msk.f32.mxu0 %vm2414_vm7, %v2358_v6 }
 0x109   :  { %v1496_v24 = vsel %vm1485_vm3, %v1439_v20, %v663_v57  ;;  %v1440_v43 = vsel %vm1428_vm2, %v1383_v30, %v497_v58  ;;  %v1790_v58 = vrot.slane %v1776_v47, %v7034_v35 }
 0x10a   :  { %178 = vrot.lane.b32.xlu1 %v7403_v53, %s6761_s27  ;;  %1180 = vrot.lane.b32.xlu0 %v7269_v42, %s6766_s12 }
 0x10b   :  { %v7525_v26 = vrot.slane %v1790_v58, %v7034_v35 }
 0x10c   :  { %v7418_v59 = vpop.permute.xlu1 %162  ;;  %v1165_v61 = vpop.permute.xlu0 %1164 }
 0x10d   :  { %v1666_v63 = vsel %vm1656_vm6, %v1609_v54, %v1165_v61 }
 0x10e   :  { %v2359_v0 = vmul.f32 %v2109_v17, %v1666_v63  ;;  %846 = vrot.lane.b32.xlu1 %v7319_v3, %s6764_s15  ;;  %680 = vrot.lane.b32.xlu0 %v7343_v23, %s6763_s10  ;;  %v1327_v17 = vsel %vm1314_vm0, %v7088_v60, %v7418_v59  ;;  %v1792_v60 = vcombine.high %v1790_v58, %v1790_v58 }
 0x110   :  { %v831_v1 = vpop.permute.xlu1 %830  ;;  %v665_v4 = vpop.permute.xlu0 %664  ;;  %6004 = vmatmul.mubr.msk.f32.gmra.mxu0 %vm2414_vm7, %v2359_v0  ;;  %v7550_v62 = vrot.slane %v1792_v60, %v7034_v35 }
 0x111   :  { %v1553_v22 = vsel %vm1542_vm4, %v1496_v24, %v831_v1  ;;  %v1497_v16 = vsel %vm1485_vm3, %v1440_v43, %v665_v4  ;;  %v2121_v1 = vrot.slane %v7525_v26, %v7060_v44 }
 0x112   :  { %346 = vrot.lane.b32.xlu1 %v7403_v53, %s6760_s26  ;;  %180 = vrot.lane.b32.xlu0 %v7428_v36, %s6761_s27 }
 0x114   :  { %v7435_v5 = vpop.permute.xlu1 %330  ;;  %v7437_v9 = vpop.permute.xlu0 %164 }
 0x115   :  { %v1384_v49 = vsel %vm1371_vm1, %v1327_v17, %v7435_v5  ;;  %v1328_v8 = vsel %vm1314_vm0, %v7114_v11, %v7437_v9  ;;  %v2125_v11 = vrot.slane %v7550_v62, %v7060_v44  ;;  %v7633_v17 = vld [vmem:[%s11454_s1 + $0xd0] sm:$0xff] }
 0x116   :  { %1014 = vrot.lane.b32.xlu1 %v7319_v3, %s6765_s24  ;;  %848 = vrot.lane.b32.xlu0 %v7343_v23, %s6764_s15 }
 0x118   :  { %v999_v10 = vpop.permute.xlu1 %998  ;;  %v833_v18 = vpop.permute.xlu0 %832 }
 0x119   :  { %v1610_v12 = vsel %vm1599_vm5, %v1553_v22, %v999_v10  ;;  %v1554_v31 = vsel %vm1542_vm4, %v1497_v16, %v833_v18 }
 0x11a   :  { %514 = vrot.lane.b32.xlu1 %v7403_v53, %s6762_s30  ;;  %348 = vrot.lane.b32.xlu0 %v7428_v36, %s6760_s26 }
 0x11c   :  { %v499_v7 = vpop.permute.xlu1 %498  ;;  %v7454_v19 = vpop.permute.xlu0 %332 }
 0x11d   :  { %v1441_v63 = vsel %vm1428_vm2, %v1384_v49, %v499_v7  ;;  %v7558_v7 = vld [vmem:[%s11454_s1 + $0xc0] sm:$0xff]  ;;  %v1385_v20 = vsel %vm1371_vm1, %v1328_v8, %v7454_v19 }
 0x11e   :  { %1182 = vrot.lane.b32.xlu1 %v7319_v3, %s6766_s12  ;;  %1016 = vrot.lane.b32.xlu0 %v7343_v23, %s6765_s24 }
 0x120   :  { %v1167_v27 = vpop.permute.xlu1 %1166  ;;  %v1001_v33 = vpop.permute.xlu0 %1000 }
 0x121   :  { %v1667_v34 = vsel %vm1656_vm6, %v1610_v12, %v1167_v27  ;;  %v1611_v39 = vsel %vm1599_vm5, %v1554_v31, %v1001_v33 }
 0x122   :  { %v2360_v2 = vmul.f32 %v2113_v25, %v1667_v34  ;;  %682 = vrot.lane.b32.xlu1 %v7403_v53, %s6763_s10  ;;  %516 = vrot.lane.b32.xlu0 %v7428_v36, %s6762_s30 }
 0x124   :  { %v667_v40 = vpop.permute.xlu1 %666  ;;  %v501_v41 = vpop.permute.xlu0 %500  ;;  %6006 = vmatprep.mubr.msk.f32.mxu0 %vm2414_vm7, %v2360_v2 }
 0x125   :  { %v1498_v0 = vsel %vm1485_vm3, %v1441_v63, %v667_v40  ;;  %v1442_v22 = vsel %vm1428_vm2, %v1385_v20, %v501_v41 }
 0x126   :  { %182 = vrot.lane.b32.xlu1 %v7478_v21, %s6761_s27  ;;  %1184 = vrot.lane.b32.xlu0 %v7343_v23, %s6766_s12 }
 0x128   :  { %v7492_v37 = vpop.permute.xlu1 %166  ;;  %v1169_v46 = vpop.permute.xlu0 %1168 }
 0x129   :  { %v1668_v48 = vsel %vm1656_vm6, %v1611_v39, %v1169_v46  ;;  %v1329_v31 = vsel %vm1314_vm0, %v7164_v45, %v7492_v37 }
 0x12a   :  { %v2361_v50 = vmul.f32 %v2117_v32, %v1668_v48  ;;  %850 = vrot.lane.b32.xlu1 %v7403_v53, %s6764_s15  ;;  %684 = vrot.lane.b32.xlu0 %v7428_v36, %s6763_s10  ;;  %v1822_v32 = vcombine.high %v7525_v26, %v7525_v26 }
 0x12c   :  { %v835_v6 = vpop.permute.xlu1 %834  ;;  %v669_v38 = vpop.permute.xlu0 %668  ;;  %6007 = vmatmul.mubr.msk.f32.gmra.mxu0 %vm2414_vm7, %v2361_v50 }
 0x12d   :  { %v1555_v59 = vsel %vm1542_vm4, %v1498_v0, %v835_v6  ;;  %v1499_v12 = vsel %vm1485_vm3, %v1442_v22, %v669_v38  ;;  %v2129_v38 = vrot.slane %v1822_v32, %v7060_v44 }
 0x12e   :  { %350 = vrot.lane.b32.xlu1 %v7478_v21, %s6760_s26  ;;  %184 = vrot.lane.b32.xlu0 %v7502_v51, %s6761_s27 }
 0x130   :  { %v7511_v55 = vpop.permute.xlu1 %334  ;;  %v7513_v57 = vpop.permute.xlu0 %168 }
 0x131   :  { %v1386_v39 = vsel %vm1371_vm1, %v1329_v31, %v7511_v55  ;;  %v1330_v26 = vsel %vm1314_vm0, %v7188_v56, %v7513_v57 }
 0x132   :  { %1018 = vrot.lane.b32.xlu1 %v7403_v53, %s6765_s24  ;;  %852 = vrot.lane.b32.xlu0 %v7428_v36, %s6764_s15 }
 0x134   :  { %v1003_v14 = vpop.permute.xlu1 %1002  ;;  %v837_v52 = vpop.permute.xlu0 %836 }
 0x135   :  { %v1612_v4 = vsel %vm1599_vm5, %v1555_v59, %v1003_v14  ;;  %v1556_v9 = vsel %vm1542_vm4, %v1499_v12, %v837_v52  ;;  %v1824_v52 = vcombine.high %v7550_v62, %v7550_v62  ;;  %v7667_v62 = vld [vmem:[%s11456_s0 + $0x10] sm:$0xff] }
 0x136   :  { %518 = vrot.lane.b32.xlu1 %v7478_v21, %s6762_s30  ;;  %352 = vrot.lane.b32.xlu0 %v7502_v51, %s6760_s26 }
 0x137   :  { %v2133_v56 = vrot.slane %v1824_v52, %v7060_v44  ;;  %v7742_v52 = vld [vmem:[%s11454_s1 + $0xe8] sm:$0xff] }
 0x138   :  { %v503_v54 = vpop.permute.xlu1 %502  ;;  %v7532_v61 = vpop.permute.xlu0 %336 }
 0x139   :  { %v1443_v50 = vsel %vm1428_vm2, %v1386_v39, %v503_v54  ;;  %v1387_v49 = vsel %vm1371_vm1, %v1330_v26, %v7532_v61 }
 0x13a   :  { %1186 = vrot.lane.b32.xlu1 %v7403_v53, %s6766_s12  ;;  %1020 = vrot.lane.b32.xlu0 %v7428_v36, %s6765_s24 }
 0x13c   :  { %v1171_v5 = vpop.permute.xlu1 %1170  ;;  %v1005_v10 = vpop.permute.xlu0 %1004 }
 0x13d   :  { %v1669_v18 = vsel %vm1656_vm6, %v1612_v4, %v1171_v5  ;;  %v1613_v19 = vsel %vm1599_vm5, %v1556_v9, %v1005_v10  ;;  %v7657_v10 = vld [vmem:[%s11454_s1 + $0xd8] sm:$0xff] }
 0x13e   :  { %v2362_v15 = vmul.f32 %v2121_v1, %v1669_v18  ;;  %686 = vrot.lane.b32.xlu1 %v7478_v21, %s6763_s10  ;;  %520 = vrot.lane.b32.xlu0 %v7502_v51, %s6762_s30 }
 0x140   :  { %v671_v24 = vpop.permute.xlu1 %670  ;;  %v505_v25 = vpop.permute.xlu0 %504  ;;  %6009 = vmatprep.mubr.msk.f32.mxu0 %vm2414_vm7, %v2362_v15 }
 0x141   :  { %v1500_v6 = vsel %vm1485_vm3, %v1443_v50, %v671_v24  ;;  %v1444_v0 = vsel %vm1428_vm2, %v1387_v49, %v505_v25  ;;  %v1832_v24 = vrot.slane %v7667_v62, %v7034_v35 }
 0x142   :  { %186 = vrot.lane.b32.xlu1 %v7558_v7, %s6761_s27  ;;  %1188 = vrot.lane.b32.xlu0 %v7428_v36, %s6766_s12 }
 0x143   :  { %v7684_v12 = vrot.slane %v1832_v24, %v7034_v35 }
 0x144   :  { %v7573_v27 = vpop.permute.xlu1 %170  ;;  %v1173_v33 = vpop.permute.xlu0 %1172 }
 0x145   :  { %v1670_v34 = vsel %vm1656_vm6, %v1613_v19, %v1173_v33 }
 0x146   :  { %v2363_v2 = vmul.f32 %v2125_v11, %v1670_v34  ;;  %854 = vrot.lane.b32.xlu1 %v7478_v21, %s6764_s15  ;;  %688 = vrot.lane.b32.xlu0 %v7502_v51, %s6763_s10  ;;  %v1331_v11 = vsel %vm1314_vm0, %v7244_v29, %v7573_v27  ;;  %v1840_v29 = vcombine.high %v1832_v24, %v1832_v24 }
 0x148   :  { %v839_v13 = vpop.permute.xlu1 %838  ;;  %v673_v30 = vpop.permute.xlu0 %672  ;;  %6010 = vmatmul.mubr.msk.f32.gmra.mxu0 %vm2414_vm7, %v2363_v2  ;;  %v7709_v31 = vrot.slane %v1840_v29, %v7034_v35 }
 0x149   :  { %v1557_v45 = vsel %vm1542_vm4, %v1500_v6, %v839_v13  ;;  %v1501_v1 = vsel %vm1485_vm3, %v1444_v0, %v673_v30  ;;  %v2137_v13 = vrot.slane %v7684_v12, %v7060_v44 }
 0x14a   :  { %354 = vrot.lane.b32.xlu1 %v7558_v7, %s6760_s26  ;;  %188 = vrot.lane.b32.xlu0 %v7583_v28, %s6761_s27 }
 0x14c   :  { %v7590_v40 = vpop.permute.xlu1 %338  ;;  %v7592_v41 = vpop.permute.xlu0 %172 }
 0x14d   :  { %v1388_v9 = vsel %vm1371_vm1, %v1331_v11, %v7590_v40  ;;  %v1332_v39 = vsel %vm1314_vm0, %v7269_v42, %v7592_v41  ;;  %v2141_v42 = vrot.slane %v7709_v31, %v7060_v44 }
 0x14e   :  { %1022 = vrot.lane.b32.xlu1 %v7478_v21, %s6765_s24  ;;  %856 = vrot.lane.b32.xlu0 %v7502_v51, %s6764_s15 }
 0x150   :  { %v1007_v43 = vpop.permute.xlu1 %1006  ;;  %v841_v16 = vpop.permute.xlu0 %840 }
 0x151   :  { %v1614_v37 = vsel %vm1599_vm5, %v1557_v45, %v1007_v43  ;;  %v1558_v57 = vsel %vm1542_vm4, %v1501_v1, %v841_v16 }
 0x152   :  { %522 = vrot.lane.b32.xlu1 %v7558_v7, %s6762_s30  ;;  %356 = vrot.lane.b32.xlu0 %v7583_v28, %s6760_s26 }
 0x154   :  { %v507_v46 = vpop.permute.xlu1 %506  ;;  %v7609_v48 = vpop.permute.xlu0 %340 }
 0x155   :  { %v1445_v34 = vsel %vm1428_vm2, %v1388_v9, %v507_v46  ;;  %v7717_v46 = vld [vmem:[%s11454_s1 + $0xe0] sm:$0xff]  ;;  %v1389_v50 = vsel %vm1371_vm1, %v1332_v39, %v7609_v48  ;;  %v7792_v9 = vld [vmem:[%s11454_s1 + $0xf0] sm:$0xff]  ;;  %v1825_v39 = vcombine.high %v7667_v62, %v7667_v62 }
 0x156   :  { %1190 = vrot.lane.b32.xlu1 %v7478_v21, %s6766_s12  ;;  %1024 = vrot.lane.b32.xlu0 %v7502_v51, %s6765_s24 }
 0x158   :  { %v1175_v47 = vpop.permute.xlu1 %1174  ;;  %v1009_v55 = vpop.permute.xlu0 %1008 }
 0x159   :  { %v1671_v58 = vsel %vm1656_vm6, %v1614_v37, %v1175_v47  ;;  %v1615_v61 = vsel %vm1599_vm5, %v1558_v57, %v1009_v55 }
 0x15a   :  { %v2364_v14 = vmul.f32 %v2129_v38, %v1671_v58  ;;  %690 = vrot.lane.b32.xlu1 %v7558_v7, %s6763_s10  ;;  %524 = vrot.lane.b32.xlu0 %v7583_v28, %s6762_s30 }
 0x15c   :  { %v675_v54 = vpop.permute.xlu1 %674  ;;  %v509_v63 = vpop.permute.xlu0 %508  ;;  %6012 = vmatprep.mubr.msk.f32.mxu0 %vm2414_vm7, %v2364_v14 }
 0x15d   :  { %v1502_v2 = vsel %vm1485_vm3, %v1445_v34, %v675_v54  ;;  %v1446_v45 = vsel %vm1428_vm2, %v1389_v50, %v509_v63 }
 0x15e   :  { %190 = vrot.lane.b32.xlu1 %v7633_v17, %s6761_s27  ;;  %1192 = vrot.lane.b32.xlu0 %v7502_v51, %s6766_s12 }
 0x160   :  { %v7647_v60 = vpop.permute.xlu1 %174  ;;  %v1177_v59 = vpop.permute.xlu0 %1176 }
 0x161   :  { %v1672_v4 = vsel %vm1656_vm6, %v1615_v61, %v1177_v59  ;;  %v1333_v57 = vsel %vm1314_vm0, %v7319_v3, %v7647_v60 }
 0x162   :  { %v2365_v5 = vmul.f32 %v2133_v56, %v1672_v4  ;;  %858 = vrot.lane.b32.xlu1 %v7558_v7, %s6764_s15  ;;  %692 = vrot.lane.b32.xlu0 %v7583_v28, %s6763_s10  ;;  %v1870_v56 = vcombine.high %v7684_v12, %v7684_v12  ;;  %v1872_v12 = vcombine.high %v7709_v31, %v7709_v31 }
 0x164   :  { %v843_v18 = vpop.permute.xlu1 %842  ;;  %v677_v15 = vpop.permute.xlu0 %676  ;;  %6013 = vmatmul.mubr.msk.f32.gmra.mxu0 %vm2414_vm7, %v2365_v5 }
 0x165   :  { %v1559_v27 = vsel %vm1542_vm4, %v1502_v2, %v843_v18  ;;  %v1503_v37 = vsel %vm1485_vm3, %v1446_v45, %v677_v15  ;;  %v2145_v15 = vrot.slane %v1870_v56, %v7060_v44 }
 0x166   :  { %358 = vrot.lane.b32.xlu1 %v7633_v17, %s6760_s26  ;;  %192 = vrot.lane.b32.xlu0 %v7657_v10, %s6761_s27 }
 0x168   :  { %v7669_v8 = vpop.permute.xlu1 %342  ;;  %v7671_v20 = vpop.permute.xlu0 %176 }
 0x169   :  { %v1390_v61 = vsel %vm1371_vm1, %v1333_v57, %v7669_v8  ;;  %v1334_v11 = vsel %vm1314_vm0, %v7343_v23, %v7671_v20  ;;  %v2149_v23 = vrot.slane %v1872_v12, %v7060_v44  ;;  %v7897_v12 = vld [vmem:[%s11454_s1 + $0x108] sm:$0xff] }
 0x16a   :  { %1026 = vrot.lane.b32.xlu1 %v7558_v7, %s6765_s24  ;;  %860 = vrot.lane.b32.xlu0 %v7583_v28, %s6764_s15 }
 0x16c   :  { %v1011_v25 = vpop.permute.xlu1 %1010  ;;  %v845_v22 = vpop.permute.xlu0 %844 }
 0x16d   :  { %v1616_v30 = vsel %vm1599_vm5, %v1559_v27, %v1011_v25  ;;  %v1560_v41 = vsel %vm1542_vm4, %v1503_v37, %v845_v22 }
 0x16e   :  { %526 = vrot.lane.b32.xlu1 %v7633_v17, %s6762_s30  ;;  %360 = vrot.lane.b32.xlu0 %v7657_v10, %s6760_s26 }
 0x170   :  { %v511_v19 = vpop.permute.xlu1 %510  ;;  %v7691_v33 = vpop.permute.xlu0 %344 }
 0x171   :  { %v1447_v5 = vsel %vm1428_vm2, %v1390_v61, %v511_v19  ;;  %v1391_v19 = vsel %vm1371_vm1, %v1334_v11, %v7691_v33 }
 0x172   :  { %1194 = vrot.lane.b32.xlu1 %v7558_v7, %s6766_s12  ;;  %1028 = vrot.lane.b32.xlu0 %v7583_v28, %s6765_s24 }
 0x174   :  { %v1179_v40 = vpop.permute.xlu1 %1178  ;;  %v1013_v43 = vpop.permute.xlu0 %1012 }
 0x175   :  { %v1673_v16 = vsel %vm1656_vm6, %v1616_v30, %v1179_v40  ;;  %v1617_v48 = vsel %vm1599_vm5, %v1560_v41, %v1013_v43 }
 0x176   :  { %v2366_v32 = vmul.f32 %v2137_v13, %v1673_v16  ;;  %694 = vrot.lane.b32.xlu1 %v7633_v17, %s6763_s10  ;;  %528 = vrot.lane.b32.xlu0 %v7657_v10, %s6762_s30  ;;  %v7816_v16 = vld [vmem:[%s11454_s1 + $0xf8] sm:$0xff] }
 0x178   :  { %v679_v6 = vpop.permute.xlu1 %678  ;;  %v513_v38 = vpop.permute.xlu0 %512  ;;  %6015 = vmatprep.mubr.msk.f32.mxu0 %vm2414_vm7, %v2366_v32 }
 0x179   :  { %v1504_v18 = vsel %vm1485_vm3, %v1447_v5, %v679_v6  ;;  %v1448_v13 = vsel %vm1428_vm2, %v1391_v19, %v513_v38  ;;  %v1839_v38 = vrot.slane %v1825_v39, %v7034_v35 }
 0x17a   :  { %194 = vrot.lane.b32.xlu1 %v7717_v46, %s6761_s27  ;;  %1196 = vrot.lane.b32.xlu0 %v7583_v28, %s6766_s12 }
 0x17b   :  { %v7839_v62 = vrot.slane %v1839_v38, %v7034_v35 }
 0x17c   :  { %v7732_v47 = vpop.permute.xlu1 %178  ;;  %v1181_v55 = vpop.permute.xlu0 %1180 }
 0x17d   :  { %v1674_v58 = vsel %vm1656_vm6, %v1617_v48, %v1181_v55 }
 0x17e   :  { %v2367_v14 = vmul.f32 %v2141_v42, %v1674_v58  ;;  %862 = vrot.lane.b32.xlu1 %v7633_v17, %s6764_s15  ;;  %696 = vrot.lane.b32.xlu0 %v7657_v10, %s6763_s10  ;;  %v1335_v42 = vsel %vm1314_vm0, %v7403_v53, %v7732_v47  ;;  %v1841_v53 = vcombine.high %v1839_v38, %v1839_v38 }
 0x180   :  { %v847_v26 = vpop.permute.xlu1 %846  ;;  %v681_v49 = vpop.permute.xlu0 %680  ;;  %6016 = vmatmul.mubr.msk.f32.gmra.mxu0 %vm2414_vm7, %v2367_v14  ;;  %v7864_v57 = vrot.slane %v1841_v53, %v7034_v35 }
 0x181   :  { %v1561_v3 = vsel %vm1542_vm4, %v1504_v18, %v847_v26  ;;  %v1505_v29 = vsel %vm1485_vm3, %v1448_v13, %v681_v49  ;;  %v2153_v26 = vrot.slane %v7839_v62, %v7060_v44 }
 0x182   :  { %362 = vrot.lane.b32.xlu1 %v7717_v46, %s6760_s26  ;;  %196 = vrot.lane.b32.xlu0 %v7742_v52, %s6761_s27 }
 0x184   :  { %v7749_v54 = vpop.permute.xlu1 %346  ;;  %v7751_v63 = vpop.permute.xlu0 %180 }
 0x185   :  { %v1392_v41 = vsel %vm1371_vm1, %v1335_v42, %v7749_v54  ;;  %v1336_v61 = vsel %vm1314_vm0, %v7428_v36, %v7751_v63  ;;  %v2157_v36 = vrot.slane %v7864_v57, %v7060_v44  ;;  %v7947_v42 = vld [vmem:[%s11454_s1 + $0x110] sm:$0xff] }
 0x186   :  { %1030 = vrot.lane.b32.xlu1 %v7633_v17, %s6765_s24  ;;  %864 = vrot.lane.b32.xlu0 %v7657_v10, %s6764_s15 }
 0x188   :  { %v1015_v0 = vpop.permute.xlu1 %1014  ;;  %v849_v1 = vpop.permute.xlu0 %848 }
 0x189   :  { %v1618_v60 = vsel %vm1599_vm5, %v1561_v3, %v1015_v0  ;;  %v1562_v20 = vsel %vm1542_vm4, %v1505_v29, %v849_v1 }
 0x18a   :  { %530 = vrot.lane.b32.xlu1 %v7717_v46, %s6762_s30  ;;  %364 = vrot.lane.b32.xlu0 %v7742_v52, %s6760_s26 }
 0x18c   :  { %v515_v59 = vpop.permute.xlu1 %514  ;;  %v7768_v4 = vpop.permute.xlu0 %348 }
 0x18d   :  { %v1449_v58 = vsel %vm1428_vm2, %v1392_v41, %v515_v59  ;;  %v7872_v59 = vld [vmem:[%s11454_s1 + $0x100] sm:$0xff]  ;;  %v1393_v5 = vsel %vm1371_vm1, %v1336_v61, %v7768_v4 }
 0x18e   :  { %1198 = vrot.lane.b32.xlu1 %v7633_v17, %s6766_s12  ;;  %1032 = vrot.lane.b32.xlu0 %v7657_v10, %s6765_s24 }
 0x190   :  { %v1183_v8 = vpop.permute.xlu1 %1182  ;;  %v1017_v24 = vpop.permute.xlu0 %1016 }
 0x191   :  { %v1675_v25 = vsel %vm1656_vm6, %v1618_v60, %v1183_v8  ;;  %v1619_v33 = vsel %vm1599_vm5, %v1562_v20, %v1017_v24 }
 0x192   :  { %v2368_v22 = vmul.f32 %v2145_v15, %v1675_v25  ;;  %698 = vrot.lane.b32.xlu1 %v7717_v46, %s6763_s10  ;;  %532 = vrot.lane.b32.xlu0 %v7742_v52, %s6762_s30 }
 0x194   :  { %v683_v34 = vpop.permute.xlu1 %682  ;;  %v517_v2 = vpop.permute.xlu0 %516  ;;  %6018 = vmatprep.mubr.msk.f32.mxu0 %vm2414_vm7, %v2368_v22 }
 0x195   :  { %v1506_v14 = vsel %vm1485_vm3, %v1449_v58, %v683_v34  ;;  %v1450_v3 = vsel %vm1428_vm2, %v1393_v5, %v517_v2 }
 0x196   :  { %198 = vrot.lane.b32.xlu1 %v7792_v9, %s6761_s27  ;;  %1200 = vrot.lane.b32.xlu0 %v7657_v10, %s6766_s12 }
 0x198   :  { %v7806_v27 = vpop.permute.xlu1 %182  ;;  %v1185_v30 = vpop.permute.xlu0 %1184 }
 0x199   :  { %v1676_v40 = vsel %vm1656_vm6, %v1619_v33, %v1185_v30  ;;  %v1337_v20 = vsel %vm1314_vm0, %v7478_v21, %v7806_v27 }
 0x19a   :  { %v2369_v43 = vmul.f32 %v2149_v23, %v1676_v40  ;;  %866 = vrot.lane.b32.xlu1 %v7717_v46, %s6764_s15  ;;  %700 = vrot.lane.b32.xlu0 %v7742_v52, %s6763_s10  ;;  %v1871_v23 = vcombine.high %v7839_v62, %v7839_v62 }
 0x19c   :  { %v851_v32 = vpop.permute.xlu1 %850  ;;  %v685_v31 = vpop.permute.xlu0 %684  ;;  %6019 = vmatmul.mubr.msk.f32.gmra.mxu0 %vm2414_vm7, %v2369_v43 }
 0x19d   :  { %v1563_v47 = vsel %vm1542_vm4, %v1506_v14, %v851_v32  ;;  %v1507_v60 = vsel %vm1485_vm3, %v1450_v3, %v685_v31  ;;  %v2161_v31 = vrot.slane %v1871_v23, %v7060_v44 }
 0x19e   :  { %366 = vrot.lane.b32.xlu1 %v7792_v9, %s6760_s26  ;;  %200 = vrot.lane.b32.xlu0 %v7816_v16, %s6761_s27 }
 0x1a0   :  { %v7825_v50 = vpop.permute.xlu1 %350  ;;  %v7827_v6 = vpop.permute.xlu0 %184 }
 0x1a1   :  { %v1394_v33 = vsel %vm1371_vm1, %v1337_v20, %v7825_v50  ;;  %v1338_v62 = vsel %vm1314_vm0, %v7502_v51, %v7827_v6 }
 0x1a2   :  { %1034 = vrot.lane.b32.xlu1 %v7717_v46, %s6765_s24  ;;  %868 = vrot.lane.b32.xlu0 %v7742_v52, %s6764_s15 }
 0x1a4   :  { %v1019_v45 = vpop.permute.xlu1 %1018  ;;  %v853_v37 = vpop.permute.xlu0 %852 }
 0x1a5   :  { %v1620_v49 = vsel %vm1599_vm5, %v1563_v47, %v1019_v45  ;;  %v1564_v63 = vsel %vm1542_vm4, %v1507_v60, %v853_v37  ;;  %v1873_v37 = vcombine.high %v7864_v57, %v7864_v57  ;;  %v7981_v57 = vld [vmem:[%s11456_s0 + $0x18] sm:$0xff] }
 0x1a6   :  { %534 = vrot.lane.b32.xlu1 %v7792_v9, %s6762_s30  ;;  %368 = vrot.lane.b32.xlu0 %v7816_v16, %s6760_s26 }
 0x1a7   :  { %v2165_v51 = vrot.slane %v1873_v37, %v7060_v44  ;;  %v8056_v37 = vld [vmem:[%s11454_s1 + $0x128] sm:$0xff] }
 0x1a8   :  { %v519_v48 = vpop.permute.xlu1 %518  ;;  %v7846_v55 = vpop.permute.xlu0 %352 }
 0x1a9   :  { %v1451_v43 = vsel %vm1428_vm2, %v1394_v33, %v519_v48  ;;  %v1395_v41 = vsel %vm1371_vm1, %v1338_v62, %v7846_v55 }
 0x1aa   :  { %1202 = vrot.lane.b32.xlu1 %v7717_v46, %s6766_s12  ;;  %1036 = vrot.lane.b32.xlu0 %v7742_v52, %s6765_s24 }
 0x1ac   :  { %v1187_v54 = vpop.permute.xlu1 %1186  ;;  %v1021_v0 = vpop.permute.xlu0 %1020 }
 0x1ad   :  { %v1677_v1 = vsel %vm1656_vm6, %v1620_v49, %v1187_v54  ;;  %v1621_v4 = vsel %vm1599_vm5, %v1564_v63, %v1021_v0  ;;  %v7971_v0 = vld [vmem:[%s11454_s1 + $0x118] sm:$0xff] }
 0x1ae   :  { %v2370_v56 = vmul.f32 %v2153_v26, %v1677_v1  ;;  %702 = vrot.lane.b32.xlu1 %v7792_v9, %s6763_s10  ;;  %536 = vrot.lane.b32.xlu0 %v7816_v16, %s6762_s30 }
 0x1b0   :  { %v687_v18 = vpop.permute.xlu1 %686  ;;  %v521_v15 = vpop.permute.xlu0 %520  ;;  %6021 = vmatprep.mubr.msk.f32.mxu0 %vm2414_vm7, %v2370_v56 }
 0x1b1   :  { %v1508_v32 = vsel %vm1485_vm3, %v1451_v43, %v687_v18  ;;  %v1452_v14 = vsel %vm1428_vm2, %v1395_v41, %v521_v15  ;;  %v1881_v18 = vrot.slane %v7981_v57, %v7034_v35 }
 0x1b2   :  { %202 = vrot.lane.b32.xlu1 %v7872_v59, %s6761_s27  ;;  %1204 = vrot.lane.b32.xlu0 %v7742_v52, %s6766_s12 }
 0x1b3   :  { %v7998_v60 = vrot.slane %v1881_v18, %v7034_v35 }
 0x1b4   :  { %v7887_v8 = vpop.permute.xlu1 %186  ;;  %v1189_v24 = vpop.permute.xlu0 %1188 }
 0x1b5   :  { %v1678_v25 = vsel %vm1656_vm6, %v1621_v4, %v1189_v24 }
 0x1b6   :  { %v2371_v22 = vmul.f32 %v2157_v36, %v1678_v25  ;;  %870 = vrot.lane.b32.xlu1 %v7792_v9, %s6764_s15  ;;  %704 = vrot.lane.b32.xlu0 %v7816_v16, %s6763_s10  ;;  %v1339_v36 = vsel %vm1314_vm0, %v7558_v7, %v7887_v8  ;;  %v1889_v7 = vcombine.high %v1881_v18, %v1881_v18 }
 0x1b8   :  { %v855_v11 = vpop.permute.xlu1 %854  ;;  %v689_v19 = vpop.permute.xlu0 %688  ;;  %6022 = vmatmul.mubr.msk.f32.gmra.mxu0 %vm2414_vm7, %v2371_v22  ;;  %v8023_v20 = vrot.slane %v1889_v7, %v7034_v35 }
 0x1b9   :  { %v1565_v21 = vsel %vm1542_vm4, %v1508_v32, %v855_v11  ;;  %v1509_v26 = vsel %vm1485_vm3, %v1452_v14, %v689_v19  ;;  %v2169_v11 = vrot.slane %v7998_v60, %v7060_v44 }
 0x1ba   :  { %370 = vrot.lane.b32.xlu1 %v7872_v59, %s6760_s26  ;;  %204 = vrot.lane.b32.xlu0 %v7897_v12, %s6761_s27 }
 0x1bc   :  { %v7904_v34 = vpop.permute.xlu1 %354  ;;  %v7906_v2 = vpop.permute.xlu0 %188 }
 0x1bd   :  { %v1396_v63 = vsel %vm1371_vm1, %v1339_v36, %v7904_v34  ;;  %v1340_v33 = vsel %vm1314_vm0, %v7583_v28, %v7906_v2  ;;  %v2173_v28 = vrot.slane %v8023_v20, %v7060_v44 }
 0x1be   :  { %1038 = vrot.lane.b32.xlu1 %v7792_v9, %s6765_s24  ;;  %872 = vrot.lane.b32.xlu0 %v7816_v16, %s6764_s15 }
 0x1c0   :  { %v1023_v13 = vpop.permute.xlu1 %1022  ;;  %v857_v29 = vpop.permute.xlu0 %856 }
 0x1c1   :  { %v1622_v27 = vsel %vm1599_vm5, %v1565_v21, %v1023_v13  ;;  %v1566_v6 = vsel %vm1542_vm4, %v1509_v26, %v857_v29 }
 0x1c2   :  { %538 = vrot.lane.b32.xlu1 %v7872_v59, %s6762_s30  ;;  %372 = vrot.lane.b32.xlu0 %v7897_v12, %s6760_s26 }
 0x1c4   :  { %v523_v30 = vpop.permute.xlu1 %522  ;;  %v7923_v40 = vpop.permute.xlu0 %356 }
 0x1c5   :  { %v1453_v25 = vsel %vm1428_vm2, %v1396_v63, %v523_v30  ;;  %v8031_v30 = vld [vmem:[%s11454_s1 + $0x120] sm:$0xff]  ;;  %v1397_v43 = vsel %vm1371_vm1, %v1340_v33, %v7923_v40  ;;  %v8106_v63 = vld [vmem:[%s11454_s1 + $0x130] sm:$0xff]  ;;  %v1874_v33 = vcombine.high %v7981_v57, %v7981_v57 }
 0x1c6   :  { %1206 = vrot.lane.b32.xlu1 %v7792_v9, %s6766_s12  ;;  %1040 = vrot.lane.b32.xlu0 %v7816_v16, %s6765_s24 }
 0x1c8   :  { %v1191_v39 = vpop.permute.xlu1 %1190  ;;  %v1025_v50 = vpop.permute.xlu0 %1024 }
 0x1c9   :  { %v1679_v38 = vsel %vm1656_vm6, %v1622_v27, %v1191_v39  ;;  %v1623_v55 = vsel %vm1599_vm5, %v1566_v6, %v1025_v50 }
 0x1ca   :  { %v2372_v45 = vmul.f32 %v2161_v31, %v1679_v38  ;;  %706 = vrot.lane.b32.xlu1 %v7872_v59, %s6763_s10  ;;  %540 = vrot.lane.b32.xlu0 %v7897_v12, %s6762_s30 }
 0x1cc   :  { %v691_v48 = vpop.permute.xlu1 %690  ;;  %v525_v58 = vpop.permute.xlu0 %524  ;;  %6024 = vmatprep.mubr.msk.f32.mxu0 %vm2414_vm7, %v2372_v45 }
 0x1cd   :  { %v1510_v22 = vsel %vm1485_vm3, %v1453_v25, %v691_v48  ;;  %v1454_v21 = vsel %vm1428_vm2, %v1397_v43, %v525_v58 }
 0x1ce   :  { %206 = vrot.lane.b32.xlu1 %v7947_v42, %s6761_s27  ;;  %1208 = vrot.lane.b32.xlu0 %v7816_v16, %s6766_s12 }
 0x1d0   :  { %v7961_v53 = vpop.permute.xlu1 %190  ;;  %v1193_v47 = vpop.permute.xlu0 %1192 }
 0x1d1   :  { %v1680_v49 = vsel %vm1656_vm6, %v1623_v55, %v1193_v47  ;;  %v1341_v6 = vsel %vm1314_vm0, %v7633_v17, %v7961_v53 }
 0x1d2   :  { %v2373_v54 = vmul.f32 %v2165_v51, %v1680_v49  ;;  %874 = vrot.lane.b32.xlu1 %v7872_v59, %s6764_s15  ;;  %708 = vrot.lane.b32.xlu0 %v7897_v12, %s6763_s10  ;;  %v1919_v51 = vcombine.high %v7998_v60, %v7998_v60  ;;  %v1921_v60 = vcombine.high %v8023_v20, %v8023_v20 }
 0x1d4   :  { %v859_v1 = vpop.permute.xlu1 %858  ;;  %v693_v56 = vpop.permute.xlu0 %692  ;;  %6025 = vmatmul.mubr.msk.f32.gmra.mxu0 %vm2414_vm7, %v2373_v54 }
 0x1d5   :  { %v1567_v8 = vsel %vm1542_vm4, %v1510_v22, %v859_v1  ;;  %v1511_v27 = vsel %vm1485_vm3, %v1454_v21, %v693_v56  ;;  %v2177_v56 = vrot.slane %v1919_v51, %v7060_v44 }
 0x1d6   :  { %374 = vrot.lane.b32.xlu1 %v7947_v42, %s6760_s26  ;;  %208 = vrot.lane.b32.xlu0 %v7971_v0, %s6761_s27 }
 0x1d8   :  { %v7983_v61 = vpop.permute.xlu1 %358  ;;  %v7985_v5 = vpop.permute.xlu0 %192 }
 0x1d9   :  { %v1398_v55 = vsel %vm1371_vm1, %v1341_v6, %v7983_v61  ;;  %v1342_v36 = vsel %vm1314_vm0, %v7657_v10, %v7985_v5  ;;  %v2181_v10 = vrot.slane %v1921_v60, %v7060_v44  ;;  %v8211_v60 = vld [vmem:[%s11454_s1 + $0x148] sm:$0xff] }
 0x1da   :  { %1042 = vrot.lane.b32.xlu1 %v7872_v59, %s6765_s24  ;;  %876 = vrot.lane.b32.xlu0 %v7897_v12, %s6764_s15 }
 0x1dc   :  { %v1027_v15 = vpop.permute.xlu1 %1026  ;;  %v861_v3 = vpop.permute.xlu0 %860 }
 0x1dd   :  { %v1624_v19 = vsel %vm1599_vm5, %v1567_v8, %v1027_v15  ;;  %v1568_v2 = vsel %vm1542_vm4, %v1511_v27, %v861_v3 }
 0x1de   :  { %542 = vrot.lane.b32.xlu1 %v7947_v42, %s6762_s30  ;;  %376 = vrot.lane.b32.xlu0 %v7971_v0, %s6760_s26 }
 0x1e0   :  { %v527_v4 = vpop.permute.xlu1 %526  ;;  %v8005_v24 = vpop.permute.xlu0 %360 }
 0x1e1   :  { %v1455_v54 = vsel %vm1428_vm2, %v1398_v55, %v527_v4  ;;  %v1399_v4 = vsel %vm1371_vm1, %v1342_v36, %v8005_v24 }
 0x1e2   :  { %1210 = vrot.lane.b32.xlu1 %v7872_v59, %s6766_s12  ;;  %1044 = vrot.lane.b32.xlu0 %v7897_v12, %s6765_s24 }
 0x1e4   :  { %v1195_v34 = vpop.permute.xlu1 %1194  ;;  %v1029_v13 = vpop.permute.xlu0 %1028 }
 0x1e5   :  { %v1681_v29 = vsel %vm1656_vm6, %v1624_v19, %v1195_v34  ;;  %v1625_v40 = vsel %vm1599_vm5, %v1568_v2, %v1029_v13 }
 0x1e6   :  { %v2374_v23 = vmul.f32 %v2169_v11, %v1681_v29  ;;  %710 = vrot.lane.b32.xlu1 %v7947_v42, %s6763_s10  ;;  %544 = vrot.lane.b32.xlu0 %v7971_v0, %s6762_s30  ;;  %v8130_v29 = vld [vmem:[%s11454_s1 + $0x138] sm:$0xff] }
 0x1e8   :  { %v695_v32 = vpop.permute.xlu1 %694  ;;  %v529_v31 = vpop.permute.xlu0 %528  ;;  %6027 = vmatprep.mubr.msk.f32.mxu0 %vm2414_vm7, %v2374_v23 }
 0x1e9   :  { %v1512_v1 = vsel %vm1485_vm3, %v1455_v54, %v695_v32  ;;  %v1456_v11 = vsel %vm1428_vm2, %v1399_v4, %v529_v31  ;;  %v1888_v31 = vrot.slane %v1874_v33, %v7034_v35 }
 0x1ea   :  { %210 = vrot.lane.b32.xlu1 %v8031_v30, %s6761_s27  ;;  %1212 = vrot.lane.b32.xlu0 %v7897_v12, %s6766_s12 }
 0x1eb   :  { %v8153_v57 = vrot.slane %v1888_v31, %v7034_v35 }
 0x1ec   :  { %v8046_v39 = vpop.permute.xlu1 %194  ;;  %v1197_v50 = vpop.permute.xlu0 %1196 }
 0x1ed   :  { %v1682_v38 = vsel %vm1656_vm6, %v1625_v40, %v1197_v50 }
 0x1ee   :  { %v2375_v45 = vmul.f32 %v2173_v28, %v1682_v38  ;;  %878 = vrot.lane.b32.xlu1 %v7947_v42, %s6764_s15  ;;  %712 = vrot.lane.b32.xlu0 %v7971_v0, %s6763_s10  ;;  %v1343_v28 = vsel %vm1314_vm0, %v7717_v46, %v8046_v39  ;;  %v1890_v46 = vcombine.high %v1888_v31, %v1888_v31 }
 0x1f0   :  { %v863_v62 = vpop.permute.xlu1 %862  ;;  %v697_v41 = vpop.permute.xlu0 %696  ;;  %6028 = vmatmul.mubr.msk.f32.gmra.mxu0 %vm2414_vm7, %v2375_v45  ;;  %v8178_v6 = vrot.slane %v1890_v46, %v7034_v35 }
 0x1f1   :  { %v1569_v17 = vsel %vm1542_vm4, %v1512_v1, %v863_v62  ;;  %v1513_v7 = vsel %vm1485_vm3, %v1456_v11, %v697_v41  ;;  %v2185_v62 = vrot.slane %v8153_v57, %v7060_v44 }
 0x1f2   :  { %378 = vrot.lane.b32.xlu1 %v8031_v30, %s6760_s26  ;;  %212 = vrot.lane.b32.xlu0 %v8056_v37, %s6761_s27 }
 0x1f4   :  { %v8063_v48 = vpop.permute.xlu1 %362  ;;  %v8065_v58 = vpop.permute.xlu0 %196 }
 0x1f5   :  { %v1400_v2 = vsel %vm1371_vm1, %v1343_v28, %v8063_v48  ;;  %v1344_v55 = vsel %vm1314_vm0, %v7742_v52, %v8065_v58  ;;  %v2189_v52 = vrot.slane %v8178_v6, %v7060_v44  ;;  %v8261_v28 = vld [vmem:[%s11454_s1 + $0x150] sm:$0xff] }
 0x1f6   :  { %1046 = vrot.lane.b32.xlu1 %v7947_v42, %s6765_s24  ;;  %880 = vrot.lane.b32.xlu0 %v7971_v0, %s6764_s15 }
 0x1f8   :  { %v1031_v14 = vpop.permute.xlu1 %1030  ;;  %v865_v26 = vpop.permute.xlu0 %864 }
 0x1f9   :  { %v1626_v53 = vsel %vm1599_vm5, %v1569_v17, %v1031_v14  ;;  %v1570_v5 = vsel %vm1542_vm4, %v1513_v7, %v865_v26 }
 0x1fa   :  { %546 = vrot.lane.b32.xlu1 %v8031_v30, %s6762_s30  ;;  %380 = vrot.lane.b32.xlu0 %v8056_v37, %s6760_s26 }
 0x1fc   :  { %v531_v47 = vpop.permute.xlu1 %530  ;;  %v8082_v49 = vpop.permute.xlu0 %364 }
 0x1fd   :  { %v1457_v38 = vsel %vm1428_vm2, %v1400_v2, %v531_v47  ;;  %v8186_v47 = vld [vmem:[%s11454_s1 + $0x140] sm:$0xff]  ;;  %v1401_v54 = vsel %vm1371_vm1, %v1344_v55, %v8082_v49 }
 0x1fe   :  { %1214 = vrot.lane.b32.xlu1 %v7947_v42, %s6766_s12  ;;  %1048 = vrot.lane.b32.xlu0 %v7971_v0, %s6765_s24 }
 0x200   :  { %v1199_v61 = vpop.permute.xlu1 %1198  ;;  %v1033_v18 = vpop.permute.xlu0 %1032 }
 0x201   :  { %v1683_v15 = vsel %vm1656_vm6, %v1626_v53, %v1199_v61  ;;  %v1627_v24 = vsel %vm1599_vm5, %v1570_v5, %v1033_v18 }
 0x202   :  { %v2376_v3 = vmul.f32 %v2177_v56, %v1683_v15  ;;  %714 = vrot.lane.b32.xlu1 %v8031_v30, %s6763_s10  ;;  %548 = vrot.lane.b32.xlu0 %v8056_v37, %s6762_s30 }
 0x204   :  { %v699_v25 = vpop.permute.xlu1 %698  ;;  %v533_v22 = vpop.permute.xlu0 %532  ;;  %6030 = vmatprep.mubr.msk.f32.mxu0 %vm2414_vm7, %v2376_v3 }
 0x205   :  { %v1514_v45 = vsel %vm1485_vm3, %v1457_v38, %v699_v25  ;;  %v1458_v17 = vsel %vm1428_vm2, %v1401_v54, %v533_v22 }
 0x206   :  { %214 = vrot.lane.b32.xlu1 %v8106_v63, %s6761_s27  ;;  %1216 = vrot.lane.b32.xlu0 %v7971_v0, %s6766_s12 }
 0x208   :  { %v8120_v8 = vpop.permute.xlu1 %198  ;;  %v1201_v19 = vpop.permute.xlu0 %1200 }
 0x209   :  { %v1684_v34 = vsel %vm1656_vm6, %v1627_v24, %v1201_v19  ;;  %v1345_v5 = vsel %vm1314_vm0, %v7792_v9, %v8120_v8 }
 0x20a   :  { %v2377_v13 = vmul.f32 %v2181_v10, %v1684_v34  ;;  %882 = vrot.lane.b32.xlu1 %v8031_v30, %s6764_s15  ;;  %716 = vrot.lane.b32.xlu0 %v8056_v37, %s6763_s10  ;;  %v1920_v10 = vcombine.high %v8153_v57, %v8153_v57 }
 0x20c   :  { %v867_v23 = vpop.permute.xlu1 %866  ;;  %v701_v20 = vpop.permute.xlu0 %700  ;;  %6031 = vmatmul.mubr.msk.f32.gmra.mxu0 %vm2414_vm7, %v2377_v13 }
 0x20d   :  { %v1571_v39 = vsel %vm1542_vm4, %v1514_v45, %v867_v23  ;;  %v1515_v53 = vsel %vm1485_vm3, %v1458_v17, %v701_v20  ;;  %v2193_v20 = vrot.slane %v1920_v10, %v7060_v44 }
 0x20e   :  { %382 = vrot.lane.b32.xlu1 %v8106_v63, %s6760_s26  ;;  %216 = vrot.lane.b32.xlu0 %v8130_v29, %s6761_s27 }
 0x210   :  { %v8139_v43 = vpop.permute.xlu1 %366  ;;  %v8141_v32 = vpop.permute.xlu0 %200 }
 0x211   :  { %v1402_v24 = vsel %vm1371_vm1, %v1345_v5, %v8139_v43  ;;  %v1346_v57 = vsel %vm1314_vm0, %v7816_v16, %v8141_v32 }
 0x212   :  { %1050 = vrot.lane.b32.xlu1 %v8031_v30, %s6765_s24  ;;  %884 = vrot.lane.b32.xlu0 %v8056_v37, %s6764_s15 }
 0x214   :  { %v1035_v21 = vpop.permute.xlu1 %1034  ;;  %v869_v27 = vpop.permute.xlu0 %868 }
 0x215   :  { %v1628_v41 = vsel %vm1599_vm5, %v1571_v39, %v1035_v21  ;;  %v1572_v58 = vsel %vm1542_vm4, %v1515_v53, %v869_v27  ;;  %v1922_v27 = vcombine.high %v8178_v6, %v8178_v6  ;;  %v8295_v6 = vld [vmem:[%s11456_s0 + $0x20] sm:$0xff] }
 0x216   :  { %550 = vrot.lane.b32.xlu1 %v8106_v63, %s6762_s30  ;;  %384 = vrot.lane.b32.xlu0 %v8130_v29, %s6760_s26 }
 0x217   :  { %v2197_v16 = vrot.slane %v1922_v27, %v7060_v44  ;;  %v8370_v27 = vld [vmem:[%s11454_s1 + $0x168] sm:$0xff] }
 0x218   :  { %v535_v40 = vpop.permute.xlu1 %534  ;;  %v8160_v50 = vpop.permute.xlu0 %368 }
 0x219   :  { %v1459_v13 = vsel %vm1428_vm2, %v1402_v24, %v535_v40  ;;  %v1403_v2 = vsel %vm1371_vm1, %v1346_v57, %v8160_v50 }
 0x21a   :  { %1218 = vrot.lane.b32.xlu1 %v8031_v30, %s6766_s12  ;;  %1052 = vrot.lane.b32.xlu0 %v8056_v37, %s6765_s24 }
 0x21c   :  { %v1203_v48 = vpop.permute.xlu1 %1202  ;;  %v1037_v14 = vpop.permute.xlu0 %1036 }
 0x21d   :  { %v1685_v26 = vsel %vm1656_vm6, %v1628_v41, %v1203_v48  ;;  %v1629_v49 = vsel %vm1599_vm5, %v1572_v58, %v1037_v14  ;;  %v8285_v14 = vld [vmem:[%s11454_s1 + $0x158] sm:$0xff] }
 0x21e   :  { %718 = vrot.lane.b32.xlu1 %v8106_v63, %s6763_s10  ;;  %552 = vrot.lane.b32.xlu0 %v8130_v29, %s6762_s30  ;;  %v2378_v51 = vmul.f32 %v2185_v62, %v1685_v26 }
 0x220   :  { %v703_v1 = vpop.permute.xlu1 %702  ;;  %v537_v56 = vpop.permute.xlu0 %536  ;;  %6033 = vmatprep.mubr.msk.f32.mxu1 %vm2414_vm7, %v2378_v51 }
 0x221   :  { %v1516_v23 = vsel %vm1485_vm3, %v1459_v13, %v703_v1  ;;  %v1460_v45 = vsel %vm1428_vm2, %v1403_v2, %v537_v56  ;;  %v1930_v1 = vrot.slane %v8295_v6, %v7034_v35 }
 0x222   :  { %218 = vrot.lane.b32.xlu1 %v8186_v47, %s6761_s27  ;;  %1220 = vrot.lane.b32.xlu0 %v8056_v37, %s6766_s12 }
 0x223   :  { %v8312_v53 = vrot.slane %v1930_v1, %v7034_v35 }
 0x224   :  { %v8201_v61 = vpop.permute.xlu1 %202  ;;  %v1205_v18 = vpop.permute.xlu0 %1204 }
 0x225   :  { %v1686_v15 = vsel %vm1656_vm6, %v1629_v49, %v1205_v18 }
 0x226   :  { %v2379_v3 = vmul.f32 %v2189_v52, %v1686_v15  ;;  %886 = vrot.lane.b32.xlu1 %v8106_v63, %s6764_s15  ;;  %720 = vrot.lane.b32.xlu0 %v8130_v29, %s6763_s10  ;;  %v1347_v52 = vsel %vm1314_vm0, %v7872_v59, %v8201_v61  ;;  %v1938_v59 = vcombine.high %v1930_v1, %v1930_v1 }
 0x228   :  { %v871_v36 = vpop.permute.xlu1 %870  ;;  %v705_v4 = vpop.permute.xlu0 %704  ;;  %6034 = vmatmul.mubr.msk.f32.vlgmr.msra.gmra.mxu1 %vm2414_vm7, %v2379_v3  ;;  %v8337_v5 = vrot.slane %v1938_v59, %v7034_v35 }
 0x229   :  { %v1573_v9 = vsel %vm1542_vm4, %v1516_v23, %v871_v36  ;;  %v1517_v62 = vsel %vm1485_vm3, %v1460_v45, %v705_v4  ;;  %v2201_v36 = vrot.slane %v8312_v53, %v7060_v44 }
 0x22a   :  { %386 = vrot.lane.b32.xlu1 %v8186_v47, %s6760_s26  ;;  %220 = vrot.lane.b32.xlu0 %v8211_v60, %s6761_s27 }
 0x22c   :  { %v8218_v25 = vpop.permute.xlu1 %370  ;;  %v8220_v22 = vpop.permute.xlu0 %204 }
 0x22d   :  { %v1404_v58 = vsel %vm1371_vm1, %v1347_v52, %v8218_v25  ;;  %v1348_v24 = vsel %vm1314_vm0, %v7897_v12, %v8220_v22  ;;  %v2205_v12 = vrot.slane %v8337_v5, %v7060_v44 }
 0x22e   :  { %1054 = vrot.lane.b32.xlu1 %v8106_v63, %s6765_s24  ;;  %888 = vrot.lane.b32.xlu0 %v8130_v29, %s6764_s15 }
 0x230   :  { %v1039_v11 = vpop.permute.xlu1 %1038  ;;  %v873_v7 = vpop.permute.xlu0 %872 }
 0x231   :  { %v1630_v8 = vsel %vm1599_vm5, %v1573_v9, %v1039_v11  ;;  %v1574_v32 = vsel %vm1542_vm4, %v1517_v62, %v873_v7 }
 0x232   :  { %554 = vrot.lane.b32.xlu1 %v8186_v47, %s6762_s30  ;;  %388 = vrot.lane.b32.xlu0 %v8211_v60, %s6760_s26 }
 0x234   :  { %v539_v19 = vpop.permute.xlu1 %538  ;;  %v8237_v34 = vpop.permute.xlu0 %372 }
 0x235   :  { %v1461_v15 = vsel %vm1428_vm2, %v1404_v58, %v539_v19  ;;  %v8345_v19 = vld [vmem:[%s11454_s1 + $0x160] sm:$0xff]  ;;  %v1405_v13 = vsel %vm1371_vm1, %v1348_v24, %v8237_v34  ;;  %v8420_v58 = vld [vmem:[%s11454_s1 + $0x170] sm:$0xff]  ;;  %v1923_v24 = vcombine.high %v8295_v6, %v8295_v6 }
 0x236   :  { %1222 = vrot.lane.b32.xlu1 %v8106_v63, %s6766_s12  ;;  %1056 = vrot.lane.b32.xlu0 %v8130_v29, %s6765_s24 }
 0x238   :  { %v1207_v33 = vpop.permute.xlu1 %1206  ;;  %v1041_v43 = vpop.permute.xlu0 %1040 }
 0x239   :  { %v1687_v31 = vsel %vm1656_vm6, %v1630_v8, %v1207_v33  ;;  %v1631_v50 = vsel %vm1599_vm5, %v1574_v32, %v1041_v43 }
 0x23a   :  { %v2380_v21 = vmul.f32 %v2193_v20, %v1687_v31  ;;  %722 = vrot.lane.b32.xlu1 %v8186_v47, %s6763_s10  ;;  %556 = vrot.lane.b32.xlu0 %v8211_v60, %s6762_s30 }
 0x23c   :  { %v707_v40 = vpop.permute.xlu1 %706  ;;  %v541_v38 = vpop.permute.xlu0 %540  ;;  %6036 = vmatprep.mubr.msk.f32.mxu1 %vm2414_vm7, %v2380_v21 }
 0x23d   :  { %v1518_v3 = vsel %vm1485_vm3, %v1461_v15, %v707_v40  ;;  %v1462_v9 = vsel %vm1428_vm2, %v1405_v13, %v541_v38 }
 0x23e   :  { %222 = vrot.lane.b32.xlu1 %v8261_v28, %s6761_s27  ;;  %1224 = vrot.lane.b32.xlu0 %v8130_v29, %s6766_s12 }
 0x240   :  { %v8275_v46 = vpop.permute.xlu1 %206  ;;  %v1209_v39 = vpop.permute.xlu0 %1208 }
 0x241   :  { %v1688_v41 = vsel %vm1656_vm6, %v1631_v50, %v1209_v39  ;;  %v1349_v32 = vsel %vm1314_vm0, %v7947_v42, %v8275_v46 }
 0x242   :  { %v2381_v48 = vmul.f32 %v2197_v16, %v1688_v41  ;;  %890 = vrot.lane.b32.xlu1 %v8186_v47, %s6764_s15  ;;  %724 = vrot.lane.b32.xlu0 %v8211_v60, %s6763_s10  ;;  %v1968_v16 = vcombine.high %v8312_v53, %v8312_v53  ;;  %v1970_v53 = vcombine.high %v8337_v5, %v8337_v5 }
 0x244   :  { %v875_v26 = vpop.permute.xlu1 %874  ;;  %v709_v51 = vpop.permute.xlu0 %708  ;;  %6037 = vmatmul.mubr.msk.f32.gmra.mxu1 %vm2414_vm7, %v2381_v48 }
 0x245   :  { %v1575_v61 = vsel %vm1542_vm4, %v1518_v3, %v875_v26  ;;  %v1519_v8 = vsel %vm1485_vm3, %v1462_v9, %v709_v51  ;;  %v2209_v51 = vrot.slane %v1968_v16, %v7060_v44 }
 0x246   :  { %390 = vrot.lane.b32.xlu1 %v8261_v28, %s6760_s26  ;;  %224 = vrot.lane.b32.xlu0 %v8285_v14, %s6761_s27 }
 0x248   :  { %v8297_v55 = vpop.permute.xlu1 %374  ;;  %v8299_v54 = vpop.permute.xlu0 %208 }
 0x249   :  { %v1406_v50 = vsel %vm1371_vm1, %v1349_v32, %v8297_v55  ;;  %v1350_v52 = vsel %vm1314_vm0, %v7971_v0, %v8299_v54  ;;  %v2213_v0 = vrot.slane %v1970_v53, %v7060_v44  ;;  %v8525_v53 = vld [vmem:[%s11454_s1 + $0x188] sm:$0xff] }
 0x24a   :  { %1058 = vrot.lane.b32.xlu1 %v8186_v47, %s6765_s24  ;;  %892 = vrot.lane.b32.xlu0 %v8211_v60, %s6764_s15 }
 0x24c   :  { %v1043_v56 = vpop.permute.xlu1 %1042  ;;  %v877_v17 = vpop.permute.xlu0 %876 }
 0x24d   :  { %v1632_v4 = vsel %vm1599_vm5, %v1575_v61, %v1043_v56  ;;  %v1576_v22 = vsel %vm1542_vm4, %v1519_v8, %v877_v17 }
 0x24e   :  { %558 = vrot.lane.b32.xlu1 %v8261_v28, %s6762_s30  ;;  %392 = vrot.lane.b32.xlu0 %v8285_v14, %s6760_s26 }
 0x250   :  { %v543_v49 = vpop.permute.xlu1 %542  ;;  %v8319_v18 = vpop.permute.xlu0 %376 }
 0x251   :  { %v1463_v48 = vsel %vm1428_vm2, %v1406_v50, %v543_v49  ;;  %v1407_v49 = vsel %vm1371_vm1, %v1350_v52, %v8319_v18 }
 0x252   :  { %1226 = vrot.lane.b32.xlu1 %v8186_v47, %s6766_s12  ;;  %1060 = vrot.lane.b32.xlu0 %v8211_v60, %s6765_s24 }
 0x254   :  { %v1211_v25 = vpop.permute.xlu1 %1210  ;;  %v1045_v11 = vpop.permute.xlu0 %1044 }
 0x255   :  { %v1689_v7 = vsel %vm1656_vm6, %v1632_v4, %v1211_v25  ;;  %v1633_v34 = vsel %vm1599_vm5, %v1576_v22, %v1045_v11 }
 0x256   :  { %v2382_v10 = vmul.f32 %v2201_v36, %v1689_v7  ;;  %726 = vrot.lane.b32.xlu1 %v8261_v28, %s6763_s10  ;;  %560 = vrot.lane.b32.xlu0 %v8285_v14, %s6762_s30  ;;  %v8444_v7 = vld [vmem:[%s11454_s1 + $0x178] sm:$0xff] }
 0x258   :  { %v711_v23 = vpop.permute.xlu1 %710  ;;  %v545_v20 = vpop.permute.xlu0 %544  ;;  %6039 = vmatprep.mubr.msk.f32.mxu1 %vm2414_vm7, %v2382_v10 }
 0x259   :  { %v1520_v26 = vsel %vm1485_vm3, %v1463_v48, %v711_v23  ;;  %v1464_v36 = vsel %vm1428_vm2, %v1407_v49, %v545_v20  ;;  %v1937_v20 = vrot.slane %v1923_v24, %v7034_v35 }
 0x25a   :  { %226 = vrot.lane.b32.xlu1 %v8345_v19, %s6761_s27  ;;  %1228 = vrot.lane.b32.xlu0 %v8211_v60, %s6766_s12 }
 0x25b   :  { %v8467_v6 = vrot.slane %v1937_v20, %v7034_v35 }
 0x25c   :  { %v8360_v33 = vpop.permute.xlu1 %210  ;;  %v1213_v43 = vpop.permute.xlu0 %1212 }
 0x25d   :  { %v1690_v31 = vsel %vm1656_vm6, %v1633_v34, %v1213_v43 }
 0x25e   :  { %v2383_v21 = vmul.f32 %v2205_v12, %v1690_v31  ;;  %894 = vrot.lane.b32.xlu1 %v8261_v28, %s6764_s15  ;;  %728 = vrot.lane.b32.xlu0 %v8285_v14, %s6763_s10  ;;  %v1351_v12 = vsel %vm1314_vm0, %v8031_v30, %v8360_v33  ;;  %v1939_v30 = vcombine.high %v1937_v20, %v1937_v20 }
 0x260   :  { %v879_v57 = vpop.permute.xlu1 %878  ;;  %v713_v2 = vpop.permute.xlu0 %712  ;;  %6040 = vmatmul.mubr.msk.f32.gmra.mxu1 %vm2414_vm7, %v2383_v21  ;;  %v8492_v32 = vrot.slane %v1939_v30, %v7034_v35 }
 0x261   :  { %v1577_v42 = vsel %vm1542_vm4, %v1520_v26, %v879_v57  ;;  %v1521_v59 = vsel %vm1485_vm3, %v1464_v36, %v713_v2  ;;  %v2217_v57 = vrot.slane %v8467_v6, %v7060_v44 }
 0x262   :  { %394 = vrot.lane.b32.xlu1 %v8345_v19, %s6760_s26  ;;  %228 = vrot.lane.b32.xlu0 %v8370_v27, %s6761_s27 }
 0x264   :  { %v8377_v40 = vpop.permute.xlu1 %378  ;;  %v8379_v38 = vpop.permute.xlu0 %212 }
 0x265   :  { %v1408_v22 = vsel %vm1371_vm1, %v1351_v12, %v8377_v40  ;;  %v1352_v50 = vsel %vm1314_vm0, %v8056_v37, %v8379_v38  ;;  %v2221_v37 = vrot.slane %v8492_v32, %v7060_v44  ;;  %v8575_v12 = vld [vmem:[%s11454_s1 + $0x190] sm:$0xff] }
 0x266   :  { %1062 = vrot.lane.b32.xlu1 %v8261_v28, %s6765_s24  ;;  %896 = vrot.lane.b32.xlu0 %v8285_v14, %s6764_s15 }
 0x268   :  { %v1047_v45 = vpop.permute.xlu1 %1046  ;;  %v881_v62 = vpop.permute.xlu0 %880 }
 0x269   :  { %v1634_v46 = vsel %vm1599_vm5, %v1577_v42, %v1047_v45  ;;  %v1578_v54 = vsel %vm1542_vm4, %v1521_v59, %v881_v62 }
 0x26a   :  { %562 = vrot.lane.b32.xlu1 %v8345_v19, %s6762_s30  ;;  %396 = vrot.lane.b32.xlu0 %v8370_v27, %s6760_s26 }
 0x26c   :  { %v547_v39 = vpop.permute.xlu1 %546  ;;  %v8396_v41 = vpop.permute.xlu0 %380 }
 0x26d   :  { %v1465_v31 = vsel %vm1428_vm2, %v1408_v22, %v547_v39  ;;  %v8500_v39 = vld [vmem:[%s11454_s1 + $0x180] sm:$0xff]  ;;  %v1409_v48 = vsel %vm1371_vm1, %v1352_v50, %v8396_v41 }
 0x26e   :  { %1230 = vrot.lane.b32.xlu1 %v8261_v28, %s6766_s12  ;;  %1064 = vrot.lane.b32.xlu0 %v8285_v14, %s6765_s24 }
 0x270   :  { %v1215_v55 = vpop.permute.xlu1 %1214  ;;  %v1049_v1 = vpop.permute.xlu0 %1048 }
 0x271   :  { %v1691_v56 = vsel %vm1656_vm6, %v1634_v46, %v1215_v55  ;;  %v1635_v18 = vsel %vm1599_vm5, %v1578_v54, %v1049_v1 }
 0x272   :  { %v2384_v17 = vmul.f32 %v2209_v51, %v1691_v56  ;;  %730 = vrot.lane.b32.xlu1 %v8345_v19, %s6763_s10  ;;  %564 = vrot.lane.b32.xlu0 %v8370_v27, %s6762_s30 }
 0x274   :  { %v715_v15 = vpop.permute.xlu1 %714  ;;  %v549_v3 = vpop.permute.xlu0 %548  ;;  %6042 = vmatprep.mubr.msk.f32.mxu1 %vm2414_vm7, %v2384_v17 }
 0x275   :  { %v1522_v21 = vsel %vm1485_vm3, %v1465_v31, %v715_v15  ;;  %v1466_v42 = vsel %vm1428_vm2, %v1409_v48, %v549_v3 }
 0x276   :  { %230 = vrot.lane.b32.xlu1 %v8420_v58, %s6761_s27  ;;  %1232 = vrot.lane.b32.xlu0 %v8285_v14, %s6766_s12 }
 0x278   :  { %v8434_v61 = vpop.permute.xlu1 %214  ;;  %v1217_v4 = vpop.permute.xlu0 %1216 }
 0x279   :  { %v1692_v25 = vsel %vm1656_vm6, %v1635_v18, %v1217_v4  ;;  %v1353_v54 = vsel %vm1314_vm0, %v8106_v63, %v8434_v61 }
 0x27a   :  { %v2385_v11 = vmul.f32 %v2213_v0, %v1692_v25  ;;  %898 = vrot.lane.b32.xlu1 %v8345_v19, %s6764_s15  ;;  %732 = vrot.lane.b32.xlu0 %v8370_v27, %s6763_s10  ;;  %v1969_v0 = vcombine.high %v8467_v6, %v8467_v6 }
 0x27c   :  { %v883_v10 = vpop.permute.xlu1 %882  ;;  %v717_v5 = vpop.permute.xlu0 %716  ;;  %6043 = vmatmul.mubr.msk.f32.gmra.mxu1 %vm2414_vm7, %v2385_v11 }
 0x27d   :  { %v1579_v33 = vsel %vm1542_vm4, %v1522_v21, %v883_v10  ;;  %v1523_v46 = vsel %vm1485_vm3, %v1466_v42, %v717_v5  ;;  %v2225_v5 = vrot.slane %v1969_v0, %v7060_v44 }
 0x27e   :  { %398 = vrot.lane.b32.xlu1 %v8420_v58, %s6760_s26  ;;  %232 = vrot.lane.b32.xlu0 %v8444_v7, %s6761_s27 }
 0x280   :  { %v8453_v13 = vpop.permute.xlu1 %382  ;;  %v8455_v23 = vpop.permute.xlu0 %216 }
 0x281   :  { %v1410_v18 = vsel %vm1371_vm1, %v1353_v54, %v8453_v13  ;;  %v1354_v6 = vsel %vm1314_vm0, %v8130_v29, %v8455_v23 }
 0x282   :  { %1066 = vrot.lane.b32.xlu1 %v8345_v19, %s6765_s24  ;;  %900 = vrot.lane.b32.xlu0 %v8370_v27, %s6764_s15 }
 0x284   :  { %v1051_v9 = vpop.permute.xlu1 %1050  ;;  %v885_v8 = vpop.permute.xlu0 %884 }
 0x285   :  { %v1636_v2 = vsel %vm1599_vm5, %v1579_v33, %v1051_v9  ;;  %v1580_v38 = vsel %vm1542_vm4, %v1523_v46, %v885_v8  ;;  %v1971_v8 = vcombine.high %v8492_v32, %v8492_v32  ;;  %v8609_v32 = vld [vmem:[%s11456_s0 + $0x28] sm:$0xff] }
 0x286   :  { %566 = vrot.lane.b32.xlu1 %v8420_v58, %s6762_s30  ;;  %400 = vrot.lane.b32.xlu0 %v8444_v7, %s6760_s26 }
 0x287   :  { %v2229_v29 = vrot.slane %v1971_v8, %v7060_v44  ;;  %v8684_v8 = vld [vmem:[%s11454_s1 + $0x1a8] sm:$0xff] }
 0x288   :  { %v551_v34 = vpop.permute.xlu1 %550  ;;  %v8474_v43 = vpop.permute.xlu0 %384 }
 0x289   :  { %v1467_v11 = vsel %vm1428_vm2, %v1410_v18, %v551_v34  ;;  %v1411_v22 = vsel %vm1371_vm1, %v1354_v6, %v8474_v43 }
 0x28a   :  { %1234 = vrot.lane.b32.xlu1 %v8345_v19, %s6766_s12  ;;  %1068 = vrot.lane.b32.xlu0 %v8370_v27, %s6765_s24 }
 0x28c   :  { %v1219_v40 = vpop.permute.xlu1 %1218  ;;  %v1053_v45 = vpop.permute.xlu0 %1052 }
 0x28d   :  { %v1693_v62 = vsel %vm1656_vm6, %v1636_v2, %v1219_v40  ;;  %v1637_v41 = vsel %vm1599_vm5, %v1580_v38, %v1053_v45  ;;  %v8599_v45 = vld [vmem:[%s11454_s1 + $0x198] sm:$0xff] }
 0x28e   :  { %v2386_v16 = vmul.f32 %v2217_v57, %v1693_v62  ;;  %734 = vrot.lane.b32.xlu1 %v8420_v58, %s6763_s10  ;;  %568 = vrot.lane.b32.xlu0 %v8444_v7, %s6762_s30 }
 0x290   :  { %v719_v26 = vpop.permute.xlu1 %718  ;;  %v553_v51 = vpop.permute.xlu0 %552  ;;  %6045 = vmatprep.mubr.msk.f32.mxu1 %vm2414_vm7, %v2386_v16 }
 0x291   :  { %v1524_v10 = vsel %vm1485_vm3, %v1467_v11, %v719_v26  ;;  %v1468_v21 = vsel %vm1428_vm2, %v1411_v22, %v553_v51  ;;  %v1979_v26 = vrot.slane %v8609_v32, %v7034_v35 }
 0x292   :  { %234 = vrot.lane.b32.xlu1 %v8500_v39, %s6761_s27  ;;  %1236 = vrot.lane.b32.xlu0 %v8370_v27, %s6766_s12 }
 0x293   :  { %v8626_v46 = vrot.slane %v1979_v26, %v7034_v35 }
 0x294   :  { %v8515_v55 = vpop.permute.xlu1 %218  ;;  %v1221_v1 = vpop.permute.xlu0 %1220 }
 0x295   :  { %v1694_v56 = vsel %vm1656_vm6, %v1637_v41, %v1221_v1 }
 0x296   :  { %v2387_v17 = vmul.f32 %v2221_v37, %v1694_v56  ;;  %902 = vrot.lane.b32.xlu1 %v8420_v58, %s6764_s15  ;;  %736 = vrot.lane.b32.xlu0 %v8444_v7, %s6763_s10  ;;  %v1355_v37 = vsel %vm1314_vm0, %v8186_v47, %v8515_v55  ;;  %v1987_v47 = vcombine.high %v1979_v26, %v1979_v26 }
 0x298   :  { %v887_v52 = vpop.permute.xlu1 %886  ;;  %v721_v49 = vpop.permute.xlu0 %720  ;;  %6046 = vmatmul.mubr.msk.f32.gmra.mxu1 %vm2414_vm7, %v2387_v17  ;;  %v8651_v54 = vrot.slane %v1987_v47, %v7034_v35 }
 0x299   :  { %v1581_v63 = vsel %vm1542_vm4, %v1524_v10, %v887_v52  ;;  %v1525_v57 = vsel %vm1485_vm3, %v1468_v21, %v721_v49  ;;  %v2233_v52 = vrot.slane %v8626_v46, %v7060_v44 }
 0x29a   :  { %402 = vrot.lane.b32.xlu1 %v8500_v39, %s6760_s26  ;;  %236 = vrot.lane.b32.xlu0 %v8525_v53, %s6761_s27 }
 0x29c   :  { %v8532_v15 = vpop.permute.xlu1 %386  ;;  %v8534_v3 = vpop.permute.xlu0 %220 }
 0x29d   :  { %v1412_v38 = vsel %vm1371_vm1, %v1355_v37, %v8532_v15  ;;  %v1356_v18 = vsel %vm1314_vm0, %v8211_v60, %v8534_v3  ;;  %v2237_v60 = vrot.slane %v8651_v54, %v7060_v44 }
 0x29e   :  { %1070 = vrot.lane.b32.xlu1 %v8420_v58, %s6765_s24  ;;  %904 = vrot.lane.b32.xlu0 %v8444_v7, %s6764_s15 }
 0x2a0   :  { %v1055_v36 = vpop.permute.xlu1 %1054  ;;  %v889_v59 = vpop.permute.xlu0 %888 }
 0x2a1   :  { %v1638_v61 = vsel %vm1599_vm5, %v1581_v63, %v1055_v36  ;;  %v1582_v23 = vsel %vm1542_vm4, %v1525_v57, %v889_v59 }
 0x2a2   :  { %570 = vrot.lane.b32.xlu1 %v8500_v39, %s6762_s30  ;;  %404 = vrot.lane.b32.xlu0 %v8525_v53, %s6760_s26 }
 0x2a4   :  { %v555_v4 = vpop.permute.xlu1 %554  ;;  %v8551_v25 = vpop.permute.xlu0 %388 }
 0x2a5   :  { %v1469_v56 = vsel %vm1428_vm2, %v1412_v38, %v555_v4  ;;  %v8659_v4 = vld [vmem:[%s11454_s1 + $0x1a0] sm:$0xff]  ;;  %v1413_v11 = vsel %vm1371_vm1, %v1356_v18, %v8551_v25  ;;  %v8734_v38 = vld [vmem:[%s11454_s1 + $0x1b0] sm:$0xff]  ;;  %v1972_v18 = vcombine.high %v8609_v32, %v8609_v32 }
 0x2a6   :  { %1238 = vrot.lane.b32.xlu1 %v8420_v58, %s6766_s12  ;;  %1072 = vrot.lane.b32.xlu0 %v8444_v7, %s6765_s24 }
 0x2a8   :  { %v1223_v24 = vpop.permute.xlu1 %1222  ;;  %v1057_v13 = vpop.permute.xlu0 %1056 }
 0x2a9   :  { %v1695_v20 = vsel %vm1656_vm6, %v1638_v61, %v1223_v24  ;;  %v1639_v43 = vsel %vm1599_vm5, %v1582_v23, %v1057_v13 }
 0x2aa   :  { %v2388_v9 = vmul.f32 %v2225_v5, %v1695_v20  ;;  %738 = vrot.lane.b32.xlu1 %v8500_v39, %s6763_s10  ;;  %572 = vrot.lane.b32.xlu0 %v8525_v53, %s6762_s30 }
 0x2ac   :  { %v723_v34 = vpop.permute.xlu1 %722  ;;  %v557_v31 = vpop.permute.xlu0 %556  ;;  %6048 = vmatprep.mubr.msk.f32.mxu1 %vm2414_vm7, %v2388_v9 }
 0x2ad   :  { %v1526_v17 = vsel %vm1485_vm3, %v1469_v56, %v723_v34  ;;  %v1470_v63 = vsel %vm1428_vm2, %v1413_v11, %v557_v31 }
 0x2ae   :  { %238 = vrot.lane.b32.xlu1 %v8575_v12, %s6761_s27  ;;  %1240 = vrot.lane.b32.xlu0 %v8444_v7, %s6766_s12 }
 0x2b0   :  { %v8589_v30 = vpop.permute.xlu1 %222  ;;  %v1225_v33 = vpop.permute.xlu0 %1224 }
 0x2b1   :  { %v1696_v2 = vsel %vm1656_vm6, %v1639_v43, %v1225_v33  ;;  %v1357_v23 = vsel %vm1314_vm0, %v8261_v28, %v8589_v30 }
 0x2b2   :  { %v2389_v40 = vmul.f32 %v2229_v29, %v1696_v2  ;;  %906 = vrot.lane.b32.xlu1 %v8500_v39, %s6764_s15  ;;  %740 = vrot.lane.b32.xlu0 %v8525_v53, %s6763_s10  ;;  %v2017_v29 = vcombine.high %v8626_v46, %v8626_v46  ;;  %v2019_v46 = vcombine.high %v8651_v54, %v8651_v54 }
 0x2b4   :  { %v891_v62 = vpop.permute.xlu1 %890  ;;  %v725_v16 = vpop.permute.xlu0 %724  ;;  %6049 = vmatmul.mubr.msk.f32.gmra.mxu1 %vm2414_vm7, %v2389_v40 }
 0x2b5   :  { %v1583_v55 = vsel %vm1542_vm4, %v1526_v17, %v891_v62  ;;  %v1527_v61 = vsel %vm1485_vm3, %v1470_v63, %v725_v16  ;;  %v2241_v16 = vrot.slane %v2017_v29, %v7060_v44 }
 0x2b6   :  { %406 = vrot.lane.b32.xlu1 %v8575_v12, %s6760_s26  ;;  %240 = vrot.lane.b32.xlu0 %v8599_v45, %s6761_s27 }
 0x2b8   :  { %v8611_v50 = vpop.permute.xlu1 %390  ;;  %v8613_v48 = vpop.permute.xlu0 %224 }
 0x2b9   :  { %v1414_v43 = vsel %vm1371_vm1, %v1357_v23, %v8611_v50  ;;  %v1358_v37 = vsel %vm1314_vm0, %v8285_v14, %v8613_v48  ;;  %v2245_v14 = vrot.slane %v2019_v46, %v7060_v44  ;;  %v3717_v23 = vld [vmem:[%s11457_s3 + $0x28] sm:$0xff] }
 0x2ba   :  { %1074 = vrot.lane.b32.xlu1 %v8500_v39, %s6765_s24  ;;  %908 = vrot.lane.b32.xlu0 %v8525_v53, %s6764_s15 }
 0x2bc   :  { %v1059_v51 = vpop.permute.xlu1 %1058  ;;  %v893_v42 = vpop.permute.xlu0 %892 }
 0x2bd   :  { %v1640_v49 = vsel %vm1599_vm5, %v1583_v55, %v1059_v51  ;;  %v1584_v3 = vsel %vm1542_vm4, %v1527_v61, %v893_v42 }
 0x2be   :  { %574 = vrot.lane.b32.xlu1 %v8575_v12, %s6762_s30  ;;  %408 = vrot.lane.b32.xlu0 %v8599_v45, %s6760_s26 }
 0x2c0   :  { %v559_v41 = vpop.permute.xlu1 %558  ;;  %v8633_v1 = vpop.permute.xlu0 %392 }
 0x2c1   :  { %v1471_v40 = vsel %vm1428_vm2, %v1414_v43, %v559_v41  ;;  %v1415_v41 = vsel %vm1371_vm1, %v1358_v37, %v8633_v1 }
 0x2c2   :  { %1242 = vrot.lane.b32.xlu1 %v8500_v39, %s6766_s12  ;;  %1076 = vrot.lane.b32.xlu0 %v8525_v53, %s6765_s24 }
 0x2c4   :  { %v1227_v15 = vpop.permute.xlu1 %1226  ;;  %v1061_v36 = vpop.permute.xlu0 %1060 }
 0x2c5   :  { %v1697_v59 = vsel %vm1656_vm6, %v1640_v49, %v1227_v15  ;;  %v1641_v25 = vsel %vm1599_vm5, %v1584_v3, %v1061_v36 }
 0x2c6   :  { %v2390_v0 = vmul.f32 %v2233_v52, %v1697_v59  ;;  %742 = vrot.lane.b32.xlu1 %v8575_v12, %s6763_s10  ;;  %576 = vrot.lane.b32.xlu0 %v8599_v45, %s6762_s30  ;;  %v8760_v59 = vld [vmem:[%s11454_s1 + $0x1b8] sm:$0xff] }
 0x2c8   :  { %v727_v10 = vpop.permute.xlu1 %726  ;;  %v561_v5 = vpop.permute.xlu0 %560  ;;  %6051 = vmatprep.mubr.msk.f32.mxu1 %vm2414_vm7, %v2390_v0 }
 0x2c9   :  { %v1528_v62 = vsel %vm1485_vm3, %v1471_v40, %v727_v10  ;;  %v1472_v52 = vsel %vm1428_vm2, %v1415_v41, %v561_v5  ;;  %v1986_v5 = vrot.slane %v1972_v18, %v7034_v35 }
 0x2ca   :  { %242 = vrot.lane.b32.xlu1 %v8659_v4, %s6761_s27  ;;  %1244 = vrot.lane.b32.xlu0 %v8525_v53, %s6766_s12 }
 0x2cb   :  { %v8783_v32 = vrot.slane %v1986_v5, %v7034_v35 }
 0x2cc   :  { %v8674_v24 = vpop.permute.xlu1 %226  ;;  %v1229_v13 = vpop.permute.xlu0 %1228 }
 0x2cd   :  { %v1698_v20 = vsel %vm1656_vm6, %v1641_v25, %v1229_v13  ;;  %v2018_v18 = vcombine.high %v8783_v32, %v8783_v32 }
 0x2ce   :  { %v2391_v9 = vmul.f32 %v2237_v60, %v1698_v20  ;;  %910 = vrot.lane.b32.xlu1 %v8575_v12, %s6764_s15  ;;  %744 = vrot.lane.b32.xlu0 %v8599_v45, %s6763_s10  ;;  %v1359_v60 = vsel %vm1314_vm0, %v8345_v19, %v8674_v24  ;;  %v2249_v19 = vrot.slane %v8783_v32, %v7060_v44 }
 0x2cf   :  { %v1988_v24 = vcombine.high %v1986_v5, %v1986_v5 }
 0x2d0   :  { %v895_v6 = vpop.permute.xlu1 %894  ;;  %v729_v22 = vpop.permute.xlu0 %728  ;;  %6052 = vmatmul.mubr.msk.f32.gmra.mxu1 %vm2414_vm7, %v2391_v9  ;;  %v3719_v9 = vld [vmem:[%s11457_s3 + $0x38] sm:$0xff] }
 0x2d1   :  { %v1585_v28 = vsel %vm1542_vm4, %v1528_v62, %v895_v6  ;;  %v1529_v47 = vsel %vm1485_vm3, %v1472_v52, %v729_v22  ;;  %6075 = vmatprep.subr.mxu1 %v3719_v9  ;;  %v3713_v52 = vld [vmem:[%s11457_s3 + $0x8] sm:$0xff] }
 0x2d2   :  { %410 = vrot.lane.b32.xlu1 %v8659_v4, %s6760_s26  ;;  %244 = vrot.lane.b32.xlu0 %v8684_v8, %s6761_s27 }
 0x2d3   :  { %6076 = vmatpush3.msra.mxu1 %v3719_v9 }
 0x2d4   :  { %v8691_v34 = vpop.permute.xlu1 %394  ;;  %v8693_v31 = vpop.permute.xlu0 %228 }
 0x2d5   :  { %v1416_v3 = vsel %vm1371_vm1, %v1359_v60, %v8691_v34  ;;  %v3718_v34 = vld [vmem:[%s11457_s3 + $0x30] sm:$0xff]  ;;  %v1360_v40 = vsel %vm1314_vm0, %v8370_v27, %v8693_v31 }
 0x2d6   :  { %1078 = vrot.lane.b32.xlu1 %v8575_v12, %s6765_s24  ;;  %912 = vrot.lane.b32.xlu0 %v8599_v45, %s6764_s15 }
 0x2d7   :  { %6077 = vmatprep.subr.mxu1 %v3718_v34 }
 0x2d8   :  { %v1063_v21 = vpop.permute.xlu1 %1062  ;;  %v897_v57 = vpop.permute.xlu0 %896  ;;  %6078 = vmatpush3.msra.mxu1 %v3718_v34 }
 0x2d9   :  { %v1642_v30 = vsel %vm1599_vm5, %v1585_v28, %v1063_v21  ;;  %v1586_v48 = vsel %vm1542_vm4, %v1529_v47, %v897_v57  ;;  %6079 = vmatprep.subr.mxu1 %v3717_v23  ;;  %v3712_v47 = vld [vmem:[%s11457_s3] sm:$0xff] }
 0x2da   :  { %578 = vrot.lane.b32.xlu1 %v8659_v4, %s6762_s30  ;;  %412 = vrot.lane.b32.xlu0 %v8684_v8, %s6760_s26 }
 0x2db   :  { %6080 = vmatpush3.msra.mxu1 %v3717_v23 }
 0x2dc   :  { %v563_v33 = vpop.permute.xlu1 %562  ;;  %v8710_v2 = vpop.permute.xlu0 %396 }
 0x2dd   :  { %v1473_v20 = vsel %vm1428_vm2, %v1416_v3, %v563_v33  ;;  %v8819_v33 = vrot.slane %v1988_v24, %v7034_v35  ;;  %v1417_v62 = vsel %vm1371_vm1, %v1360_v40, %v8710_v2  ;;  %v3715_v2 = vld [vmem:[%s11457_s3 + $0x18] sm:$0xff] }
 0x2de   :  { %1246 = vrot.lane.b32.xlu1 %v8575_v12, %s6766_s12  ;;  %1080 = vrot.lane.b32.xlu0 %v8599_v45, %s6765_s24 }
 0x2df   :  { %v2253_v31 = vrot.slane %v8819_v33, %v7060_v44 }
 0x2e0   :  { %v1231_v50 = vpop.permute.xlu1 %1230  ;;  %v1065_v26 = vpop.permute.xlu0 %1064 }
 0x2e1   :  { %v1699_v51 = vsel %vm1656_vm6, %v1642_v30, %v1231_v50  ;;  %v1643_v1 = vsel %vm1599_vm5, %v1586_v48, %v1065_v26  ;;  %v3716_v30 = vld [vmem:[%s11457_s3 + $0x20] sm:$0xff] }
 0x2e2   :  { %v2392_v42 = vmul.f32 %v2241_v16, %v1699_v51  ;;  %746 = vrot.lane.b32.xlu1 %v8659_v4, %s6763_s10  ;;  %580 = vrot.lane.b32.xlu0 %v8684_v8, %s6762_s30 }
 0x2e3   :  { %6081 = vmatprep.subr.mxu1 %v3716_v30 }
 0x2e4   :  { %v731_v56 = vpop.permute.xlu1 %730  ;;  %v8738_v17 = vpop.permute.xlu0 %564  ;;  %6054 = vmatprep.mubr.msk.f32.mxu1 %vm2414_vm7, %v2392_v42  ;;  %6082 = vmatpush3.msra.mxu1 %v3716_v30 }
 0x2e5   :  { %v1530_v6 = vsel %vm1485_vm3, %v1473_v20, %v731_v56  ;;  %v1474_v50 = vsel %vm1428_vm2, %v1417_v62, %v8738_v17  ;;  %6083 = vmatprep.subr.mxu1 %v3715_v2 }
 0x2e6   :  { %246 = vrot.lane.b32.xlu1 %v8734_v38, %s6761_s27  ;;  %1248 = vrot.lane.b32.xlu0 %v8599_v45, %s6766_s12 }
 0x2e7   :  { %6084 = vmatpush3.msra.mxu1 %v3715_v2 }
 0x2e8   :  { %v8750_v55 = vpop.permute.xlu1 %230  ;;  %v1233_v49 = vpop.permute.xlu0 %1232 }
 0x2e9   :  { %v1700_v15 = vsel %vm1656_vm6, %v1643_v1, %v1233_v49 }
 0x2ea   :  { %v2393_v36 = vmul.f32 %v2245_v14, %v1700_v15  ;;  %914 = vrot.lane.b32.xlu1 %v8659_v4, %s6764_s15  ;;  %748 = vrot.lane.b32.xlu0 %v8684_v8, %s6763_s10  ;;  %v8867_v14 = vpop.f32.mrf.mxu0 }
 0x2eb   :  { %vm2929_vm8 = vcmp.gt.f32.partialorder %v8867_v14, 20.0 }
 0x2ec   :  { %v899_v0 = vpop.permute.xlu1 %898  ;;  %v733_v54 = vpop.permute.xlu0 %732  ;;  %6055 = vmatmul.mubr.msk.f32.gmra.mxu1 %vm2414_vm7, %v2393_v36 }
 0x2ed   :  { %v1587_v22 = vsel %vm1542_vm4, %v1530_v6, %v899_v0  ;;  %v1531_v27 = vsel %vm1485_vm3, %v1474_v50, %v733_v54  ;;  %v8877_v49 = vpop.f32.mrf.mxu0  ;;  %v2985_v0 = vmin.f32 %v8867_v14, 20.0  ;;  %v2257_v6 = vrot.slane %v2018_v18, %v7060_v44 }
 0x2ee   :  { %414 = vrot.lane.b32.xlu1 %v8734_v38, %s6760_s26  ;;  %248 = vrot.lane.b32.xlu0 %v8760_v59, %s6761_s27  ;;  %v2984_v5 = vmin.f32 %v8877_v49, 20.0  ;;  %vm2928_vm9 = vcmp.gt.f32.partialorder %v8877_v49, 20.0 }
 0x2ef   :  { %v8880_v54 = vpop.f32.mrf.mxu0  ;;  %v3042_v3 = vmul.f32 1.442695, %v2985_v0 }
 0x2f0   :  { %v8769_v11 = vpop.permute.xlu1 %398  ;;  %v8771_v10 = vpop.permute.xlu0 %232  ;;  %v2987_v20 = vmin.f32 %v8880_v54, 20.0  ;;  %vm2931_vm12 = vcmp.gt.f32.partialorder %v8880_v54, 20.0 }
 0x2f1   :  { %v8897_v32 = vpop.f32.mrf.mxu0  ;;  %6306 = vpow2.f32 %v3042_v3 }
 0x2f2   :  { %1082 = vrot.lane.b32.xlu1 %v8659_v4, %s6765_s24  ;;  %916 = vrot.lane.b32.xlu0 %v8684_v8, %s6764_s15  ;;  %vm2930_vm15 = vcmp.gt.f32.partialorder %v8897_v32, 20.0 }
 0x2f3   :  { %v8904_v34 = vpop.f32.mrf.mxu0 }
 0x2f4   :  { %v1067_v63 = vpop.permute.xlu1 %1066  ;;  %v901_v61 = vpop.permute.xlu0 %900 }
 0x2f5   :  { %v1644_v21 = vsel %vm1599_vm5, %v1587_v22, %v1067_v63  ;;  %v1588_v26 = vsel %vm1542_vm4, %v1531_v27, %v901_v61  ;;  %v2986_v22 = vmin.f32 %v8897_v32, 20.0 }
 0x2f6   :  { %582 = vrot.lane.b32.xlu1 %v8734_v38, %s6762_s30  ;;  %416 = vrot.lane.b32.xlu0 %v8760_v59, %s6760_s26 }
 0x2f7   :  { %v3044_v62 = vmul.f32 1.442695, %v2986_v22 }
 0x2f8   :  { %v8790_v25 = vpop.permute.xlu1 %566  ;;  %v8792_v13 = vpop.permute.xlu0 %400 }
 0x2fa   :  { %1250 = vrot.lane.b32.xlu1 %v8659_v4, %s6766_s12  ;;  %1084 = vrot.lane.b32.xlu0 %v8684_v8, %s6765_s24 }
 0x2fc   :  { %v1235_v57 = vpop.permute.xlu1 %1234  ;;  %v1069_v29 = vpop.permute.xlu0 %1068 }
 0x2fd   :  { %v1701_v4 = vsel %vm1656_vm6, %v1644_v21, %v1235_v57  ;;  %v1645_v51 = vsel %vm1599_vm5, %v1588_v26, %v1069_v29  ;;  %v3046_v21 = vmul.f32 1.442695, %v2987_v20  ;;  %v2020_v29 = vcombine.high %v8819_v33, %v8819_v33 }
 0x2fe   :  { %v2394_v43 = vmul.f32 %v2249_v19, %v1701_v4  ;;  %750 = vrot.lane.b32.xlu1 %v8734_v38, %s6763_s10  ;;  %584 = vrot.lane.b32.xlu0 %v8760_v59, %s6762_s30  ;;  %v1362_v4 = vsel %vm1314_vm0, %v8444_v7, %v8771_v10  ;;  %v2989_v7 = vmin.f32 %v8904_v34, 20.0 }
 0x2ff   :  { %v1419_v23 = vsel %vm1371_vm1, %v1362_v4, %v8792_v13  ;;  %v2261_v50 = vrot.slane %v2020_v29, %v7060_v44 }
 0x300   :  { %v735_v16 = vpop.permute.xlu1 %734  ;;  %v8826_v28 = vpop.permute.xlu0 %568  ;;  %6057 = vmatprep.mubr.msk.f32.mxu1 %vm2414_vm7, %v2394_v43 }
 0x301   :  { %v1476_v30 = vsel %vm1428_vm2, %v1419_v23, %v8826_v28 }
 0x302   :  { %752 = vrot.lane.b32.xlu1 %v8760_v59, %s6763_s10  ;;  %1252 = vrot.lane.b32.xlu0 %v8684_v8, %s6766_s12  ;;  %v3714_v8 = vld [vmem:[%s11457_s3 + $0x10] sm:$0xff] }
 0x303   :  { %6085 = vmatprep.subr.mxu1 %v3714_v8 }
 0x304   :  { %v8846_v42 = vpop.permute.xlu1 %234  ;;  %v1237_v46 = vpop.permute.xlu0 %1236  ;;  %6086 = vmatpush3.msra.mxu1 %v3714_v8 }
 0x305   :  { %v1702_v37 = vsel %vm1656_vm6, %v1645_v51, %v1237_v46  ;;  %6087 = vmatprep.subr.mxu1 %v3713_v52  ;;  %v3050_v51 = vmul.f32 1.442695, %v2989_v7  ;;  %v1363_v22 = vsel %vm1314_vm0, %v8500_v39, %v8846_v42 }
 0x306   :  { %v2395_v41 = vmul.f32 %v2253_v31, %v1702_v37  ;;  %920 = vrot.lane.b32.xlu1 %v8760_v59, %s6764_s15  ;;  %918 = vrot.lane.b32.xlu0 %v8734_v38, %s6764_s15 }
 0x307   :  { %6088 = vmatpush3.msra.mxu1 %v3713_v52  ;;  %v8942_v52 = vld [vmem:[%s11456_s0 + $0x30] sm:$0xff] }
 0x308   :  { %v903_v56 = vpop.permute.xlu1 %902  ;;  %v737_v17 = vpop.permute.xlu0 %736  ;;  %6058 = vmatmul.mubr.msk.f32.gmra.mxu1 %vm2414_vm7, %v2395_v41  ;;  %6089 = vmatprep.subr.mxu1 %v3712_v47 }
 0x309   :  { %6090 = vmatpush3.msra.mxu1 %v3712_v47  ;;  %v1533_v33 = vsel %vm1485_vm3, %v1476_v30, %v737_v17 }
 0x30a   :  { %1088 = vrot.lane.b32.xlu1 %v8760_v59, %s6765_s24  ;;  %1086 = vrot.lane.b32.xlu0 %v8734_v38, %s6765_s24 }
 0x30c   :  { %v8869_v48 = vpop.permute.xlu1 %402  ;;  %v8871_v1 = vpop.permute.xlu0 %236 }
 0x30e   :  { %1256 = vrot.lane.b32.xlu1 %v8760_v59, %s6766_s12  ;;  %1254 = vrot.lane.b32.xlu0 %v8734_v38, %s6766_s12  ;;  %v1361_v59 = vsel %vm1314_vm0, %v8420_v58, %v8750_v55  ;;  %v3040_v58 = vmul.f32 1.442695, %v2984_v5  ;;  %v2028_v5 = vrot.slane %v8942_v52, %v7034_v35 }
 0x30f   :  { %v1418_v38 = vsel %vm1371_vm1, %v1361_v59, %v8769_v11 }
 0x310   :  { %v1071_v15 = vpop.permute.xlu1 %1070  ;;  %v905_v36 = vpop.permute.xlu0 %904  ;;  %v1475_v60 = vsel %vm1428_vm2, %v1418_v38, %v8790_v25  ;;  %6308 = vpow2.f32 %v3040_v58  ;;  %v2036_v42 = vcombine.high %v2028_v5, %v2028_v5 }
 0x311   :  { %v1532_v9 = vsel %vm1485_vm3, %v1475_v60, %v735_v16  ;;  %v8917_v16 = vpop.f32.mrf.mxu0  ;;  %6310 = vpow2.f32 %v3046_v21  ;;  %v1590_v10 = vsel %vm1542_vm4, %v1533_v33, %v905_v36 }
 0x312   :  { %v1589_v55 = vsel %vm1542_vm4, %v1532_v9, %v903_v56  ;;  %v2988_v13 = vmin.f32 %v8917_v16, 20.0  ;;  %6312 = vpow2.f32 %v3044_v62  ;;  %v8935_v56 = vpop.eup %6306 }
 0x313   :  { %v1646_v11 = vsel %vm1599_vm5, %v1589_v55, %v1071_v15  ;;  %v8930_v46 = vpop.f32.mrf.mxu0  ;;  %6314 = vpow2.f32 %v3050_v51  ;;  %v3161_v18 = vadd.f32 1.0, %v8935_v56  ;;  %v8965_v55 = vrot.slane %v2028_v5, %v7034_v35 }
 0x314   :  { %v8890_v63 = vpop.permute.xlu1 %570  ;;  %v8892_v61 = vpop.permute.xlu0 %404  ;;  %v3048_v37 = vmul.f32 1.442695, %v2988_v13  ;;  %v2991_v38 = vmin.f32 %v8930_v46, 20.0  ;;  %v3164_v5 = vmul.f32 -0.5, %v8935_v56 }
 0x315   :  { %v8937_v17 = vpop.f32.mrf.mxu0  ;;  %v2265_v39 = vrot.slane %v8965_v55, %v7060_v44 }
 0x316   :  { %6316 = vpow2.f32 %v3048_v37  ;;  %v2990_v3 = vmin.f32 %v8937_v17, 20.0 }
 0x317   :  { %v8950_v0 = vpop.f32.mrf.mxu0  ;;  %6318 = vlog2.f32 %v3161_v18 }
 0x318   :  { %v1239_v19 = vpop.permute.xlu1 %1238  ;;  %v1073_v24 = vpop.permute.xlu0 %1072 }
 0x319   :  { %v1703_v25 = vsel %vm1656_vm6, %v1646_v11, %v1239_v19  ;;  %v1647_v27 = vsel %vm1599_vm5, %v1590_v10, %v1073_v24  ;;  %v3054_v19 = vmul.f32 1.442695, %v2991_v38  ;;  %v2993_v24 = vmin.f32 %v8950_v0, 20.0 }
 0x31a   :  { %v2396_v57 = vmul.f32 %v2257_v6, %v1703_v25  ;;  %v8960_v6 = vpop.f32.mrf.mxu0  ;;  %v3052_v25 = vmul.f32 1.442695, %v2990_v3 }
 0x31b   :  { %v2992_v21 = vmin.f32 %v8960_v6, 20.0  ;;  %v3058_v33 = vmul.f32 1.442695, %v2993_v24 }
 0x31c   :  { %v739_v43 = vpop.permute.xlu1 %738  ;;  %v8914_v40 = vpop.permute.xlu0 %572  ;;  %6060 = vmatprep.mubr.msk.f32.mxu1 %vm2414_vm7, %v2396_v57  ;;  %v1420_v57 = vsel %vm1371_vm1, %v1363_v22, %v8869_v48 }
 0x31d   :  { %v8944_v47 = vpop.eup %6308  ;;  %v1477_v23 = vsel %vm1428_vm2, %v1420_v57, %v8890_v63  ;;  %v3056_v10 = vmul.f32 1.442695, %v2992_v21  ;;  %v3165_v57 = vadd.f32 1.0, %v3164_v5 }
 0x31e   :  { %v8955_v59 = vpop.eup %6310  ;;  %v3152_v60 = vadd.f32 1.0, %v8944_v47  ;;  %v1534_v30 = vsel %vm1485_vm3, %v1477_v23, %v739_v43 }
 0x31f   :  { %v8962_v58 = vpop.eup %6312  ;;  %v3179_v11 = vadd.f32 1.0, %v8955_v59 }
 0x320   :  { %v8927_v31 = vpop.permute.xlu1 %238  ;;  %v1241_v2 = vpop.permute.xlu0 %1240  ;;  %6320 = vlog2.f32 %v3152_v60  ;;  %v3170_v62 = vadd.f32 1.0, %v8962_v58 }
 0x321   :  { %v1704_v26 = vsel %vm1656_vm6, %v1647_v27, %v1241_v2  ;;  %6322 = vlog2.f32 %v3179_v11  ;;  %v8988_v7 = vpop.eup %6314 }
 0x322   :  { %v2397_v28 = vmul.f32 %v2261_v50, %v1704_v26  ;;  %6324 = vpow2.f32 %v3054_v19  ;;  %v8985_v50 = vpop.f32.mrf.mxu0  ;;  %v3197_v18 = vadd.f32 1.0, %v8988_v7 }
 0x323   :  { %6326 = vpow2.f32 %v3052_v25  ;;  %v8991_v43 = vpop.eup %6316  ;;  %v2995_v51 = vmin.f32 %v8985_v50, 20.0 }
 0x324   :  { %v907_v8 = vpop.permute.xlu1 %906  ;;  %v8932_v41 = vpop.permute.xlu0 %740  ;;  %6061 = vmatmul.mubr.msk.f32.gmra.mxu1 %vm2414_vm7, %v2397_v28  ;;  %6328 = vlog2.f32 %v3170_v62  ;;  %v8995_v28 = vrot.slane %v2036_v42, %v7034_v35  ;;  %v3182_v42 = vmul.f32 -0.5, %v8955_v59 }
 0x325   :  { %v1591_v48 = vsel %vm1542_vm4, %v1534_v30, %v907_v8  ;;  %6330 = vpow2.f32 %v3058_v33  ;;  %v8998_v37 = vpop.f32.mrf.mxu0  ;;  %v1364_v8 = vsel %vm1314_vm0, %v8525_v53, %v8871_v1  ;;  %v3155_v53 = vmul.f32 -0.5, %v8944_v47  ;;  %v6319_v24 = vpop.eup %6318 }
 0x326   :  { %6332 = vpow2.f32 %v3056_v10  ;;  %v1421_v38 = vsel %vm1371_vm1, %v1364_v8, %v8892_v61  ;;  %v2994_v1 = vmin.f32 %v8998_v37, 20.0  ;;  %v2269_v61 = vrot.slane %v8995_v28, %v7060_v44 }
 0x327   :  { %v1478_v11 = vsel %vm1428_vm2, %v1421_v38, %v8914_v40  ;;  %v3062_v22 = vmul.f32 1.442695, %v2995_v51  ;;  %6334 = vlog2.f32 %v3197_v18  ;;  %v3167_v30 = vand.u32 2147483647, %v8935_v56  ;;  %v9028_v10 = vpop.f32.mrf.mxu0 }
 0x328   :  { %v8946_v15 = vpop.permute.xlu1 %406  ;;  %v8948_v36 = vpop.permute.xlu0 %240  ;;  %v1535_v19 = vsel %vm1485_vm3, %v1478_v11, %v8932_v41  ;;  %v3163_v33 = vmul.f32 0.6931472, %v6319_v24  ;;  %v3166_v51 = vmul.f32 %v8935_v56, %v3165_v57  ;;  %v3185_v24 = vand.u32 2147483647, %v8955_v59 }
 0x329   :  { %vm9044_vm10 = vcmp.lt.f32.partialorder %v3167_v30, 0.0004427343  ;;  %v3176_v30 = vand.u32 2147483647, %v8962_v58  ;;  %v3191_v38 = vmul.f32 -0.5, %v8991_v43 }
 0x32a   :  { %vm9090_vm13 = vcmp.lt.f32.partialorder %v3185_v24, 0.0004427343 }
 0x32b   :  { %vm9103_vm14 = vcmp.lt.f32.partialorder %v3176_v30, 0.0004427343 }
 0x32c   :  { %v1075_v20 = vpop.permute.xlu1 %1074  ;;  %v909_v9 = vpop.permute.xlu0 %908 }
 0x32d   :  { %v1648_v63 = vsel %vm1599_vm5, %v1591_v48, %v1075_v20  ;;  %v3188_v20 = vadd.f32 1.0, %v8991_v43  ;;  %v1592_v25 = vsel %vm1542_vm4, %v1535_v19, %v909_v9  ;;  %v6321_v21 = vpop.eup %6320  ;;  %v3060_v48 = vmul.f32 1.442695, %v2994_v1  ;;  %v9052_v19 = vpop.f32.mrf.mxu0 }
 0x32e   :  { %v3169_v1 = vsel %vm9044_vm10, %v3166_v51, %v3163_v33 }
 0x32f   :  { %6336 = vlog2.f32 %v3188_v20  ;;  %v2997_v20 = vmin.f32 %v9028_v10, 20.0 }
 0x330   :  { %v8975_v29 = vpop.permute.xlu1 %574  ;;  %v8977_v4 = vpop.permute.xlu0 %408  ;;  %6338 = vpow2.f32 %v3062_v22 }
 0x331   :  { %6340 = vpow2.f32 %v3060_v48  ;;  %v3066_v33 = vmul.f32 1.442695, %v2997_v20  ;;  %v2996_v48 = vmin.f32 %v9052_v19, 20.0 }
 0x333   :  { %v3064_v24 = vmul.f32 1.442695, %v2996_v48  ;;  %v3194_v48 = vand.u32 2147483647, %v8991_v43 }
 0x334   :  { %v1243_v13 = vpop.permute.xlu1 %1242  ;;  %v1077_v27 = vpop.permute.xlu0 %1076 }
 0x335   :  { %v1705_v2 = vsel %vm1656_vm6, %v1648_v63, %v1243_v13  ;;  %v1649_v23 = vsel %vm1599_vm5, %v1592_v25, %v1077_v27  ;;  %v3158_v63 = vand.u32 2147483647, %v8944_v47  ;;  %v6323_v13 = vpop.eup %6322  ;;  %v3154_v27 = vmul.f32 0.6931472, %v6321_v21 }
 0x336   :  { %v2398_v26 = vmul.f32 %v2265_v39, %v1705_v2  ;;  %v3156_v39 = vadd.f32 1.0, %v3155_v53  ;;  %v3173_v2 = vmul.f32 -0.5, %v8962_v58  ;;  %v3183_v53 = vadd.f32 1.0, %v3182_v42 }
 0x337   :  { %vm9054_vm11 = vcmp.lt.f32.partialorder %v3158_v63, 0.0004427343  ;;  %v3181_v21 = vmul.f32 0.6931472, %v6323_v13  ;;  %v9081_v13 = vsel %vm2929_vm8, %v8867_v14, %v3169_v1  ;;  %vm2933_vm8 = vcmp.gt.f32.partialorder %v8904_v34, 20.0 }
 0x338   :  { %v9007_v60 = vpop.permute.xlu1 %742  ;;  %v9009_v3 = vpop.permute.xlu0 %576  ;;  %6063 = vmatprep.mubr.msk.f32.mxu1 %vm2414_vm7, %v2398_v26  ;;  %v3157_v11 = vmul.f32 %v8944_v47, %v3156_v39  ;;  %v3174_v25 = vadd.f32 1.0, %v3173_v2  ;;  %v3184_v63 = vmul.f32 %v8955_v59, %v3183_v53 }
 0x339   :  { %v9032_v26 = vpop.eup %6324 }
 0x33a   :  { %v9042_v5 = vpop.eup %6326  ;;  %v3160_v22 = vsel %vm9054_vm11, %v3157_v11, %v3154_v27  ;;  %v3215_v47 = vadd.f32 1.0, %v9032_v26  ;;  %v9083_v27 = vpop.f32.mrf.mxu0  ;;  %v9096_v59 = vmul.f32 %v8962_v58, %v3174_v25  ;;  %v3187_v14 = vsel %vm9090_vm13, %v3184_v63, %v3181_v21 }
 0x33b   :  { %v6329_v56 = vpop.eup %6328  ;;  %v3206_v39 = vadd.f32 1.0, %v9042_v5  ;;  %v9088_v2 = vsel %vm2928_vm9, %v8877_v49, %v3160_v22  ;;  %v2999_v22 = vmin.f32 %v9083_v27, 20.0  ;;  %v9122_v30 = vsel %vm2931_vm12, %v8880_v54, %v3187_v14 }
 0x33c   :  { %v9023_v40 = vpop.permute.xlu1 %242  ;;  %v1245_v62 = vpop.permute.xlu0 %1244  ;;  %6342 = vlog2.f32 %v3215_v47  ;;  %v2066_v47 = vcombine.high %v8965_v55, %v8965_v55  ;;  %vm2932_vm9 = vcmp.gt.f32.partialorder %v8917_v16, 20.0  ;;  %vm9156_vm11 = vcmp.lt.f32.partialorder %v3194_v48, 0.0004427343 }
 0x33d   :  { %v1706_v41 = vsel %vm1656_vm6, %v1649_v23, %v1245_v62  ;;  %v9062_v57 = vpop.eup %6330  ;;  %6344 = vlog2.f32 %v3206_v39  ;;  %v9115_v21 = vpop.f32.mrf.mxu0  ;;  %v3203_v39 = vand.u32 2147483647, %v8988_v7  ;;  %v3070_v14 = vmul.f32 1.442695, %v2999_v22 }
 0x33e   :  { %v2399_v9 = vmul.f32 %v2269_v61, %v1706_v41  ;;  %v3200_v41 = vmul.f32 -0.5, %v8988_v7  ;;  %v9072_v42 = vpop.eup %6332  ;;  %v3233_v20 = vadd.f32 1.0, %v9062_v57  ;;  %6346 = vpow2.f32 %v3066_v33 }
 0x33f   :  { %v6335_v11 = vpop.eup %6334  ;;  %v3224_v61 = vadd.f32 1.0, %v9072_v42  ;;  %v1365_v33 = vsel %vm1314_vm0, %v8575_v12, %v8927_v31  ;;  %v2998_v12 = vmin.f32 %v9115_v21, 20.0  ;;  %vm9146_vm10 = vcmp.lt.f32.partialorder %v3203_v39, 0.0004427343 }
 0x340   :  { %v9037_v8 = vpop.permute.xlu1 %910  ;;  %v9039_v18 = vpop.permute.xlu0 %744  ;;  %6064 = vmatmul.mubr.msk.f32.gmra.mxu1 %vm2414_vm7, %v2399_v9  ;;  %v9075_v9 = vmul.f32 0.6931472, %v6329_v56  ;;  %v3201_v1 = vadd.f32 1.0, %v3200_v41  ;;  %v3192_v41 = vadd.f32 1.0, %v3191_v38  ;;  %6348 = vlog2.f32 %v3233_v20 }
 0x341   :  { %v6337_v58 = vpop.eup %6336  ;;  %v1422_v55 = vsel %vm1371_vm1, %v1365_v33, %v8946_v15  ;;  %6350 = vlog2.f32 %v3224_v61  ;;  %v2273_v15 = vrot.slane %v2066_v47, %v7060_v44  ;;  %v3068_v39 = vmul.f32 1.442695, %v2998_v12 }
 0x342   :  { %v3178_v25 = vsel %vm9103_vm14, %v9096_v59, %v9075_v9  ;;  %v3199_v9 = vmul.f32 0.6931472, %v6335_v11  ;;  %v9130_v63 = vpop.eup %6338  ;;  %v3190_v38 = vmul.f32 0.6931472, %v6337_v58  ;;  %v3202_v59 = vmul.f32 %v8988_v7, %v3201_v1  ;;  %v9152_v1 = vpop.f32.mrf.mxu0 }
 0x343   :  { %6352 = vpow2.f32 %v3064_v24  ;;  %v1479_v31 = vsel %vm1428_vm2, %v1422_v55, %v8975_v29  ;;  %v3193_v11 = vmul.f32 %v8991_v43, %v3192_v41  ;;  %v9150_v7 = vpop.eup %6340  ;;  %v3251_v43 = vadd.f32 1.0, %v9130_v63 }
 0x344   :  { %v9065_v23 = vpop.permute.xlu1 %410  ;;  %v9067_v62 = vpop.permute.xlu0 %244  ;;  %v1536_v20 = vsel %vm1485_vm3, %v1479_v31, %v9007_v60  ;;  %v3205_v60 = vsel %vm9146_vm10, %v3202_v59, %v3199_v9  ;;  %v3218_v41 = vmul.f32 -0.5, %v9032_v26  ;;  %6354 = vpow2.f32 %v3070_v14 }
 0x345   :  { %v1593_v61 = vsel %vm1542_vm4, %v1536_v20, %v9037_v8  ;;  %v3196_v47 = vsel %vm9156_vm11, %v3193_v11, %v3190_v38  ;;  %v3221_v8 = vand.u32 2147483647, %v9032_v26  ;;  %v3209_v48 = vmul.f32 -0.5, %v9042_v5  ;;  %v9178_v59 = vpop.f32.mrf.mxu0 }
 0x346   :  { %v2068_v55 = vcombine.high %v8995_v28, %v8995_v28  ;;  %v3242_v38 = vadd.f32 1.0, %v9150_v7  ;;  %v1366_v14 = vsel %vm1314_vm0, %v8599_v45, %v8948_v36  ;;  %v9186_v12 = vsel %vm2933_vm8, %v8904_v34, %v3205_v60 }
 0x347   :  { %v3212_v28 = vand.u32 2147483647, %v9042_v5  ;;  %6356 = vlog2.f32 %v3251_v43  ;;  %v9199_v45 = vsel %vm2932_vm9, %v8917_v16, %v3196_v47  ;;  %v3219_v34 = vadd.f32 1.0, %v3218_v41 }
 0x348   :  { %v1079_v53 = vpop.permute.xlu1 %1078  ;;  %v9101_v56 = vpop.permute.xlu0 %912  ;;  %v3236_v36 = vmul.f32 -0.5, %v9062_v57  ;;  %6358 = vpow2.f32 %v3068_v39  ;;  %vm9204_vm12 = vcmp.lt.f32.partialorder %v3221_v8, 0.0004427343  ;;  %v3001_v29 = vmin.f32 %v9152_v1, 20.0 }
 0x349   :  { %v1650_v58 = vsel %vm1599_vm5, %v1593_v61, %v1079_v53  ;;  %v9175_v53 = vsel %vm2930_vm15, %v8897_v32, %v3178_v25  ;;  %v6343_v31 = vpop.eup %6342  ;;  %v1423_v32 = vsel %vm1371_vm1, %v1366_v14, %v8977_v4  ;;  %v3210_v4 = vadd.f32 1.0, %v3209_v48 }
 0x34a   :  { %v1480_v11 = vsel %vm1428_vm2, %v1423_v32, %v9009_v3  ;;  %v2277_v60 = vrot.slane %v2068_v55, %v7060_v44  ;;  %6360 = vlog2.f32 %v3242_v38  ;;  %v3000_v43 = vmin.f32 %v9178_v59, 20.0 }
 0x34b   :  { %v1537_v16 = vsel %vm1485_vm3, %v1480_v11, %v9039_v18  ;;  %vm9217_vm13 = vcmp.lt.f32.partialorder %v3212_v28, 0.0004427343  ;;  %v3237_v48 = vadd.f32 1.0, %v3236_v36  ;;  %vm2935_vm14 = vcmp.gt.f32.partialorder %v8930_v46, 20.0 }
 0x34c   :  { %v9134_v54 = vpop.permute.xlu1 %578  ;;  %v9136_v51 = vpop.permute.xlu0 %412  ;;  %v1594_v3 = vsel %vm1542_vm4, %v1537_v16, %v9101_v56  ;;  %v3211_v38 = vmul.f32 %v9042_v5, %v3210_v4  ;;  %v3220_v14 = vmul.f32 %v9032_v26, %v3219_v34  ;;  %vm2934_vm15 = vcmp.gt.f32.partialorder %v8937_v17, 20.0 }
 0x34d   :  { %v9228_v56 = vpop.f32.mrf.mxu0  ;;  %vm2937_vm8 = vcmp.gt.f32.partialorder %v8950_v0, 20.0  ;;  %v3239_v36 = vand.u32 2147483647, %v9062_v57  ;;  %vm2936_vm9 = vcmp.gt.f32.partialorder %v8960_v6, 20.0  ;;  %v3230_v5 = vand.u32 2147483647, %v9072_v42 }
 0x34e   :  { %v2021_v49 = vcombine.high %v8942_v52, %v8942_v52 }
 0x34f   :  { %vm9265_vm10 = vcmp.lt.f32.partialorder %v3230_v5, 0.0004427343  ;;  %vm9269_vm11 = vcmp.lt.f32.partialorder %v3239_v36, 0.0004427343 }
 0x350   :  { %v1247_v24 = vpop.permute.xlu1 %1246  ;;  %v1081_v22 = vpop.permute.xlu0 %1080  ;;  %v9288_v5 = vrot.slane %v2021_v49, %v7034_v35 }
 0x351   :  { %v1707_v33 = vsel %vm1656_vm6, %v1650_v58, %v1247_v24  ;;  %v3227_v24 = vmul.f32 -0.5, %v9072_v42  ;;  %v1651_v41 = vsel %vm1599_vm5, %v1594_v3, %v1081_v22  ;;  %v3003_v58 = vmin.f32 %v9228_v56, 20.0 }
 0x352   :  { %v2400_v9 = vmul.f32 %v2273_v15, %v1707_v33  ;;  %v6345_v15 = vpop.eup %6344  ;;  %v3217_v33 = vmul.f32 0.6931472, %v6343_v31  ;;  %v3074_v31 = vmul.f32 1.442695, %v3001_v29 }
 0x353   :  { %v9208_v61 = vpop.eup %6346  ;;  %v9225_v39 = vmul.f32 0.6931472, %v6345_v15  ;;  %v3072_v15 = vmul.f32 1.442695, %v3000_v43  ;;  %v3228_v11 = vadd.f32 1.0, %v3227_v24  ;;  %v9252_v43 = vpop.f32.mrf.mxu0  ;;  %v3254_v24 = vmul.f32 -0.5, %v9130_v63 }
 0x354   :  { %v9191_v25 = vpop.permute.xlu1 %746  ;;  %v9193_v20 = vpop.permute.xlu0 %580  ;;  %6066 = vmatprep.mubr.msk.f32.mxu1 %vm2414_vm7, %v2400_v9  ;;  %v3269_v22 = vadd.f32 1.0, %v9208_v61  ;;  %v3223_v29 = vsel %vm9204_vm12, %v3220_v14, %v3217_v33  ;;  %vm2939_vm12 = vcmp.gt.f32.partialorder %v8985_v50, 20.0  ;;  %v3272_v33 = vmul.f32 -0.5, %v9208_v61 }
 0x355   :  { %v6349_v47 = vpop.eup %6348  ;;  %v3214_v34 = vsel %vm9217_vm13, %v3211_v38, %v9225_v39  ;;  %v3229_v39 = vmul.f32 %v9072_v42, %v3228_v11  ;;  %v3248_v42 = vand.u32 2147483647, %v9150_v7  ;;  %v3078_v11 = vmul.f32 1.442695, %v3003_v58 }
 0x356   :  { %v6351_v9 = vpop.eup %6350  ;;  %v3235_v16 = vmul.f32 0.6931472, %v6349_v47  ;;  %6362 = vlog2.f32 %v3269_v22  ;;  %v3245_v47 = vmul.f32 -0.5, %v9150_v7  ;;  %v3257_v22 = vand.u32 2147483647, %v9130_v63 }
 0x357   :  { %v9234_v28 = vpop.eup %6352  ;;  %v3226_v3 = vmul.f32 0.6931472, %v6351_v9  ;;  %6364 = vpow2.f32 %v3074_v31  ;;  %vm9315_vm13 = vcmp.lt.f32.partialorder %v3248_v42, 0.0004427343  ;;  %v6754_v42 = vld [vmem:[%s11454_s1 + $0x1a0] sm:$0xff] }
 0x358   :  { %v9223_v8 = vpop.permute.xlu1 %246  ;;  %v1249_v18 = vpop.permute.xlu0 %1248  ;;  %6366 = vpow2.f32 %v3072_v15 }
 0x359   :  { %v1708_v55 = vsel %vm1656_vm6, %v1651_v41, %v1249_v18  ;;  %v3260_v41 = vadd.f32 1.0, %v9234_v28  ;;  %v9256_v18 = vpop.eup %6354  ;;  %v3232_v31 = vsel %vm9265_vm10, %v3229_v39, %v3226_v3  ;;  %vm2941_vm10 = vcmp.gt.f32.partialorder %v9028_v10, 20.0 }
 0x35a   :  { %v2401_v32 = vmul.f32 %v2277_v60, %v1708_v55  ;;  %v3238_v60 = vmul.f32 %v9062_v57, %v3237_v48  ;;  %v9262_v57 = vpop.f32.mrf.mxu0  ;;  %v6357_v9 = vpop.eup %6356  ;;  %v3002_v55 = vmin.f32 %v9252_v43, 20.0  ;;  %v3287_v36 = vadd.f32 1.0, %v9256_v18 }
 0x35b   :  { %11490 = vst [vmem:[#allocation2_spill] sm:$0xff] %v9262_v57  ;;  %6368 = vlog2.f32 %v3260_v41  ;;  %v9285_v15 = vpop.eup %6358  ;;  %v3253_v58 = vmul.f32 0.6931472, %v6357_v9 }
 0x35c   :  { %v9241_v4 = vpop.permute.xlu1 %914  ;;  %v9243_v26 = vpop.permute.xlu0 %748  ;;  %6067 = vmatmul.mubr.msk.f32.gmra.mxu1 %vm2414_vm7, %v2401_v32  ;;  %v3241_v14 = vsel %vm9269_vm11, %v3238_v60, %v3235_v16  ;;  %v3255_v32 = vadd.f32 1.0, %v3254_v24  ;;  %v9293_v16 = vsel %vm2935_vm14, %v8930_v46, %v3223_v29  ;;  %v3246_v60 = vadd.f32 1.0, %v3245_v47 }
 0x35d   :  { %11495 = vst [vmem:[#allocation3_spill] sm:$0xff] %v9293_v16  ;;  %v6361_v48 = vpop.eup %6360  ;;  %v9296_v3 = vpop.f32.mrf.mxu0  ;;  %v9301_v24 = vsel %vm2934_vm15, %v8937_v17, %v3214_v34  ;;  %v9306_v41 = vsel %vm2937_vm8, %v8950_v0, %v3241_v14  ;;  %v3076_v49 = vmul.f32 1.442695, %v3002_v55  ;;  %v9313_v47 = vsel %vm2936_vm9, %v8960_v6, %v3232_v31 }
 0x35e   :  { %11496 = vst [vmem:[#allocation4_spill] sm:$0xff] %v9296_v3  ;;  %11497 = vst [vmem:[#allocation5_spill] sm:$0xff] %v9306_v41  ;;  %vm9319_vm14 = vcmp.lt.f32.partialorder %v3257_v22, 0.0004427343  ;;  %v3256_v34 = vmul.f32 %v9130_v63, %v3255_v32  ;;  %v3278_v9 = vadd.f32 1.0, %v9285_v15  ;;  %6370 = vlog2.f32 %v3287_v36 }
 0x35f   :  { %11498 = vst [vmem:[#allocation6_spill] sm:$0xff] %v9313_v47  ;;  %v9323_v0 = vpop.f32.mrf.mxu0  ;;  %6372 = vpow2.f32 %v3078_v11  ;;  %v9330_v6 = vrot.slane %v9288_v5, %v7034_v35  ;;  %v9332_v55 = vmul.f32 0.6931472, %v6361_v48  ;;  %v9335_v14 = vmul.f32 %v9150_v7, %v3246_v60 }
 0x360   :  { %v9274_v38 = vpop.permute.xlu1 %414  ;;  %v9276_v52 = vpop.permute.xlu0 %248  ;;  %v1367_v63 = vsel %vm1314_vm0, %v6754_v42, %v9023_v40  ;;  %v3259_v22 = vsel %vm9319_vm14, %v3256_v34, %v3253_v58  ;;  %v3263_v31 = vmul.f32 -0.5, %v9234_v28  ;;  %v3275_v32 = vand.u32 2147483647, %v9208_v61 }
 0x361   :  { %6374 = vpow2.f32 %v3076_v49  ;;  %v3005_v36 = vmin.f32 %v9262_v57, 20.0  ;;  %v1424_v7 = vsel %vm1371_vm1, %v1367_v63, %v9065_v23  ;;  %v3266_v48 = vand.u32 2147483647, %v9234_v28  ;;  %v9355_v17 = vpop.f32.mrf.mxu0 }
 0x362   :  { %v3004_v40 = vmin.f32 %v9296_v3, 20.0  ;;  %11503 = vst [vmem:[#allocation7_spill] sm:$0xff] %v9355_v17  ;;  %v1481_v58 = vsel %vm1428_vm2, %v1424_v7, %v9134_v54  ;;  %v3273_v34 = vadd.f32 1.0, %v3272_v33  ;;  %6376 = vlog2.f32 %v3278_v9 }
 0x363   :  { %v6363_v49 = vpop.eup %6362  ;;  %v1538_v42 = vsel %vm1485_vm3, %v1481_v58, %v9191_v25  ;;  %v2281_v23 = vrot.slane %v9330_v6, %v7060_v44  ;;  %v2037_v63 = vcombine.high %v9288_v5, %v9288_v5  ;;  %v9371_v54 = vpop.f32.mrf.mxu0  ;;  %v9378_v25 = vsel %vm2939_vm12, %v8985_v50, %v3259_v22 }
 0x364   :  { %v1083_v46 = vpop.permute.xlu1 %1082  ;;  %v9308_v29 = vpop.permute.xlu0 %916  ;;  %v1595_v33 = vsel %vm1542_vm4, %v1538_v42, %v9241_v4  ;;  %11504 = vst [vmem:[#allocation8_spill] sm:$0xff] %v9378_v25  ;;  %v3264_v9 = vadd.f32 1.0, %v3263_v31  ;;  %vm9380_vm15 = vcmp.lt.f32.partialorder %v3275_v32, 0.0004427343  ;;  %v3082_v58 = vmul.f32 1.442695, %v3005_v36 }
 0x365   :  { %v9369_v47 = vpop.eup %6364  ;;  %v3007_v41 = vmin.f32 %v9323_v0, 20.0  ;;  %v1652_v16 = vsel %vm1599_vm5, %v1595_v33, %v1083_v46  ;;  %vm9388_vm8 = vcmp.lt.f32.partialorder %v3266_v48, 0.0004427343  ;;  %vm2938_vm9 = vcmp.gt.f32.partialorder %v8998_v37, 20.0  ;;  %v9402_v25 = vpop.f32.mrf.mxu0 }
 0x366   :  { %v9384_v7 = vpop.eup %6366  ;;  %v3080_v50 = vmul.f32 1.442695, %v3004_v40  ;;  %v3006_v22 = vmin.f32 %v9355_v17, 20.0  ;;  %v3274_v32 = vmul.f32 %v9208_v61, %v3273_v34  ;;  %v9398_v46 = vrot.slane %v2037_v63, %v7034_v35 }
 0x367   :  { %v3271_v48 = vmul.f32 0.6931472, %v6363_v49  ;;  %v3305_v33 = vadd.f32 1.0, %v9369_v47  ;;  %vm2940_vm11 = vcmp.gt.f32.partialorder %v9052_v19, 20.0  ;;  %v3290_v40 = vmul.f32 -0.5, %v9256_v18 }
 0x368   :  { %v9349_v11 = vpop.permute.xlu1 %582  ;;  %v9351_v60 = vpop.permute.xlu0 %416  ;;  %v3296_v35 = vadd.f32 1.0, %v9384_v7  ;;  %6378 = vpow2.f32 %v3082_v58  ;;  %v3086_v34 = vmul.f32 1.442695, %v3007_v41  ;;  %v2285_v41 = vrot.slane %v9398_v46, %v7060_v44 }
 0x369   :  { %v6369_v36 = vpop.eup %6368  ;;  %6380 = vpow2.f32 %v3080_v50  ;;  %v9422_v58 = vpop.f32.mrf.mxu0  ;;  %v3009_v50 = vmin.f32 %v9371_v54, 20.0  ;;  %v3293_v17 = vand.u32 2147483647, %v9256_v18 }
 0x36a   :  { %6382 = vlog2.f32 %v3305_v33 }
 0x36b   :  { %6384 = vlog2.f32 %v3296_v35  ;;  %vm9478_vm12 = vcmp.lt.f32.partialorder %v3293_v17, 0.0004427343  ;;  %v2067_v17 = vcombine.high %v9330_v6, %v9330_v6  ;;  %v6757_v6 = vld [vmem:[%s11454_s1 + $0x1b8] sm:$0xff] }
 0x36c   :  { %v1251_v3 = vpop.permute.xlu1 %1250  ;;  %v1085_v57 = vpop.permute.xlu0 %1084  ;;  %6386 = vpow2.f32 %v3086_v34 }
 0x36d   :  { %v1709_v31 = vsel %vm1656_vm6, %v1652_v16, %v1251_v3  ;;  %v6755_v16 = vld [vmem:[%s11454_s1 + $0x1a8] sm:$0xff]  ;;  %v3265_v3 = vmul.f32 %v9234_v28, %v3264_v9  ;;  %v3262_v9 = vmul.f32 0.6931472, %v6369_v36 }
 0x36e   :  { %v2402_v42 = vmul.f32 %v2281_v23, %v1709_v31  ;;  %v1368_v61 = vsel %vm1314_vm0, %v6755_v16, %v9067_v62  ;;  %v3281_v31 = vmul.f32 -0.5, %v9285_v15  ;;  %v3084_v62 = vmul.f32 1.442695, %v3006_v22  ;;  %v6371_v16 = vpop.eup %6370 }
 0x36f   :  { %v1425_v49 = vsel %vm1371_vm1, %v1368_v61, %v9136_v51  ;;  %v9430_v61 = vpop.eup %6372  ;;  %v3291_v22 = vadd.f32 1.0, %v3290_v40  ;;  %v9442_v33 = vmul.f32 0.6931472, %v6371_v16  ;;  %v9444_v40 = vpop.f32.mrf.mxu0 }
 0x370   :  { %v9414_v23 = vpop.permute.xlu1 %750  ;;  %v9416_v63 = vpop.permute.xlu0 %584  ;;  %6069 = vmatprep.mubr.msk.f32.mxu1 %vm2414_vm7, %v2402_v42  ;;  %v1482_v28 = vsel %vm1428_vm2, %v1425_v49, %v9193_v20  ;;  %v3277_v42 = vsel %vm9380_vm15, %v3274_v32, %v3271_v48  ;;  %6388 = vpow2.f32 %v3084_v62  ;;  %v3268_v48 = vsel %vm9388_vm8, %v3265_v3, %v3262_v9 }
 0x371   :  { %v1539_v51 = vsel %vm1485_vm3, %v1482_v28, %v9243_v26  ;;  %v3282_v28 = vadd.f32 1.0, %v3281_v31  ;;  %v9437_v5 = vpop.eup %6374  ;;  %v3284_v31 = vand.u32 2147483647, %v9285_v15  ;;  %v3323_v4 = vadd.f32 1.0, %v9430_v61  ;;  %v9459_v9 = vpop.f32.mrf.mxu1 }
 0x372   :  { %v1596_v20 = vsel %vm1542_vm4, %v1539_v51, %v9308_v29  ;;  %v6377_v29 = vpop.eup %6376  ;;  %v3090_v3 = vmul.f32 1.442695, %v3009_v50  ;;  %v3008_v62 = vmin.f32 %v9402_v25, 20.0  ;;  %v9464_v39 = vsel %vm2941_vm10, %v9028_v10, %v3277_v42 }
 0x373   :  { %v1653_v36 = vsel %vm1599_vm5, %v1596_v20, %v1085_v57  ;;  %v11509_v57 = vsel %vm9315_vm13, %v9335_v14, %v9332_v55  ;;  %v9467_v55 = vmul.f32 %v9256_v18, %v3291_v22  ;;  %v9473_v16 = vsel %vm2940_vm11, %v9052_v19, %v3268_v48 }
 0x374   :  { %v753_v26 = vpop.permute.xlu1 %752  ;;  %v1253_v49 = vpop.permute.xlu0 %1252  ;;  %v9454_v34 = vsel %vm2938_vm9, %v8998_v37, %v11509_v57  ;;  %v9476_v51 = vmul.f32 %v9285_v15, %v3282_v28  ;;  %v3314_v10 = vadd.f32 1.0, %v9437_v5  ;;  %v3011_v18 = vmin.f32 %v9422_v58, 20.0  ;;  %v6756_v28 = vld [vmem:[%s11454_s1 + $0x1b0] sm:$0xff] }
 0x375   :  { %v1710_v32 = vsel %vm1656_vm6, %v1653_v36, %v1253_v49  ;;  %v3010_v42 = vmin.f32 %v9444_v40, 20.0  ;;  %v9485_v50 = vmul.f32 0.6931472, %v6377_v29  ;;  %v2069_v15 = vcombine.high %v9398_v46, %v9398_v46  ;;  %v9500_v49 = vpop.f32.mrf.mxu1 }
 0x376   :  { %v2403_v35 = vmul.f32 %v2285_v41, %v1710_v32  ;;  %vm9495_vm13 = vcmp.lt.f32.partialorder %v3284_v31, 0.0004427343  ;;  %v3308_v22 = vmul.f32 -0.5, %v9369_v47  ;;  %6390 = vlog2.f32 %v3323_v4  ;;  %v9517_v4 = vpop.eup %6378 }
 0x377   :  { %6392 = vpow2.f32 %v3090_v3  ;;  %v3088_v36 = vmul.f32 1.442695, %v3008_v62  ;;  %v1369_v46 = vsel %vm1314_vm0, %v6756_v28, %v9223_v8  ;;  %v1370_v32 = vsel %vm1314_vm0, %v6757_v6, %v9276_v52  ;;  %v9519_v62 = vpop.f32.mrf.mxu1  ;;  %v9525_v28 = vpop.eup %6380 }
 0x378   :  { %v921_v14 = vpop.permute.xlu1 %920  ;;  %v919_v37 = vpop.permute.xlu0 %918  ;;  %6070 = vmatmul.mubr.msk.f32.gmra.mxu1 %vm2414_vm7, %v2403_v35  ;;  %v1426_v48 = vsel %vm1371_vm1, %v1369_v46, %v9274_v38  ;;  %v1427_v29 = vsel %vm1371_vm1, %v1370_v32, %v9351_v60  ;;  %v3299_v31 = vmul.f32 -0.5, %v9384_v7  ;;  %6394 = vlog2.f32 %v3314_v10 }
 0x379   :  { %v3094_v8 = vmul.f32 1.442695, %v3011_v18  ;;  %v3092_v3 = vmul.f32 1.442695, %v3010_v42  ;;  %v1483_v52 = vsel %vm1428_vm2, %v1426_v48, %v9349_v11  ;;  %v1484_v38 = vsel %vm1428_vm2, %v1427_v29, %v9416_v63  ;;  %v6383_v46 = vpop.eup %6382 }
 0x37a   :  { %vm2943_vm0 = vcmp.gt.f32.partialorder %v9083_v27, 20.0  ;;  %vm2942_vm1 = vcmp.gt.f32.partialorder %v9115_v21, 20.0  ;;  %v1540_v60 = vsel %vm1485_vm3, %v1483_v52, %v9414_v23  ;;  %v1541_v10 = vsel %vm1485_vm3, %v1484_v38, %v753_v26  ;;  %v6385_v32 = vpop.eup %6384 }
 0x37b   :  { %v2293_v18 = vrot.slane %v2069_v15, %v7060_v44  ;;  %v2289_v42 = vrot.slane %v2067_v17, %v7060_v44  ;;  %6396 = vpow2.f32 %v3088_v36  ;;  %v1598_v11 = vsel %vm1542_vm4, %v1541_v10, %v921_v14  ;;  %v9540_v52 = vpop.eup %6386  ;;  %v9542_v44 = vpop.f32.mrf.mxu1 }
 0x37c   :  { %v1089_v35 = vpop.permute.xlu1 %1088  ;;  %v1087_v57 = vpop.permute.xlu0 %1086  ;;  %v1597_v63 = vsel %vm1542_vm4, %v1540_v60, %v919_v37  ;;  %v3309_v6 = vadd.f32 1.0, %v3308_v22  ;;  %v3311_v26 = vand.u32 2147483647, %v9369_v47  ;;  %v3341_v15 = vadd.f32 1.0, %v9517_v4 }
 0x37d   :  { %v1655_v48 = vsel %vm1599_vm5, %v1598_v11, %v1089_v35  ;;  %v1654_v29 = vsel %vm1599_vm5, %v1597_v63, %v1087_v57  ;;  %6398 = vpow2.f32 %v3094_v8  ;;  %v3332_v17 = vadd.f32 1.0, %v9525_v28  ;;  %v9547_v22 = vpop.eup %6388  ;;  %v9550_v38 = vpop.f32.mrf.mxu1 }
 0x37e   :  { %vm2945_vm2 = vcmp.gt.f32.partialorder %v9152_v1, 20.0  ;;  %6400 = vpow2.f32 %v3092_v3  ;;  %v3300_v57 = vadd.f32 1.0, %v3299_v31  ;;  %v3286_v8 = vsel %vm9495_vm13, %v9476_v51, %v9485_v50 }
 0x37f   :  { %v3307_v60 = vmul.f32 0.6931472, %v6383_v46  ;;  %v3310_v10 = vmul.f32 %v9369_v47, %v3309_v6  ;;  %v3013_v11 = vmin.f32 %v9459_v9, 20.0  ;;  %v3298_v3 = vmul.f32 0.6931472, %v6385_v32  ;;  %v9574_v63 = vpop.f32.mrf.mxu1 }
 0x380   :  { %v1257_v19 = vpop.permute.xlu1 %1256  ;;  %v1255_v23 = vpop.permute.xlu0 %1254  ;;  %6402 = vlog2.f32 %v3341_v15  ;;  %v3359_v31 = vadd.f32 1.0, %v9540_v52  ;;  %v3326_v20 = vmul.f32 -0.5, %v9430_v61  ;;  %v3350_v51 = vadd.f32 1.0, %v9547_v22 }
 0x381   :  { %v1712_v14 = vsel %vm1656_vm6, %v1655_v48, %v1257_v19  ;;  %v1711_v37 = vsel %vm1656_vm6, %v1654_v29, %v1255_v23  ;;  %v3302_v19 = vand.u32 2147483647, %v9384_v7  ;;  %6404 = vlog2.f32 %v3332_v17 }
 0x382   :  { %v2405_v36 = vmul.f32 %v2293_v18, %v1712_v14  ;;  %v2404_v35 = vmul.f32 %v2289_v42, %v1711_v37  ;;  %v3012_v18 = vmin.f32 %v9500_v49, 20.0  ;;  %vm2944_vm3 = vcmp.gt.f32.partialorder %v9178_v59, 20.0 }
 0x383   :  { %v3301_v47 = vmul.f32 %v9384_v7, %v3300_v57  ;;  %vm9569_vm4 = vcmp.lt.f32.partialorder %v3311_v26, 0.0004427343  ;;  %v3317_v42 = vmul.f32 -0.5, %v9437_v5  ;;  %v6391_v46 = vpop.eup %6390  ;;  %v9579_v6 = vsel %vm2942_vm1, %v9115_v21, %v3286_v8  ;;  %v9603_v26 = vpop.f32.mrf.mxu1 }
 0x384   :  { %6072 = vmatprep.mubr.msk.f32.mxu1 %vm2414_vm7, %v2404_v35  ;;  %vm9591_vm5 = vcmp.lt.f32.partialorder %v3302_v19, 0.0004427343  ;;  %v3313_v48 = vsel %vm9569_vm4, %v3310_v10, %v3307_v60  ;;  %v9597_v29 = vpop.eup %6392  ;;  %v3098_v21 = vmul.f32 1.442695, %v3013_v11  ;;  %v3015_v41 = vmin.f32 %v9519_v62, 20.0 }
 0x385   :  { %6073 = vmatmul.mubr.msk.f32.gmra.mxu1 %vm2414_vm7, %v2405_v36  ;;  %6406 = vlog2.f32 %v3359_v31  ;;  %v3096_v23 = vmul.f32 1.442695, %v3012_v18  ;;  %v3327_v15 = vadd.f32 1.0, %v3326_v20  ;;  %vm2947_vm6 = vcmp.gt.f32.partialorder %v9228_v56, 20.0 }
 0x386   :  { %6091 = vmatprep.mubr.msk.f32.mxu1 %vm2414_vm7, %v9088_v2  ;;  %v11516_v2 = vsel %vm9478_vm12, %v9467_v55, %v9442_v33  ;;  %v3304_v33 = vsel %vm9591_vm5, %v3301_v47, %v3298_v3  ;;  %v6395_v55 = vpop.eup %6394  ;;  %6408 = vlog2.f32 %v3350_v51  ;;  %v3318_v14 = vadd.f32 1.0, %v3317_v42 }
 0x387   :  { %v9589_v7 = vsel %vm2943_vm0, %v9083_v27, %v11516_v2  ;;  %v3014_v27 = vmin.f32 %v9542_v44, 20.0  ;;  %v3320_v37 = vand.u32 2147483647, %v9437_v5  ;;  %v3329_v17 = vand.u32 2147483647, %v9430_v61 }
 0x388   :  { %v9615_v36 = vsel %vm2944_vm3, %v9178_v59, %v3304_v33  ;;  %v3325_v35 = vmul.f32 0.6931472, %v6391_v46  ;;  %v3377_v57 = vadd.f32 1.0, %v9597_v29  ;;  %v9623_v8 = vpop.eup %6396  ;;  %6410 = vpow2.f32 %v3098_v21  ;;  %v9627_v59 = vpop.f32.mrf.mxu1 }
 0x389   :  { %6092 = vmatmul.mubr.msk.f32.vlgmr.msra.gmra.mxu1 %vm2414_vm7, %v9081_v13  ;;  %v9620_v13 = vsel %vm2945_vm2, %v9152_v1, %v3313_v48  ;;  %v3335_v19 = vmul.f32 -0.5, %v9525_v28  ;;  %v3344_v60 = vmul.f32 -0.5, %v9517_v4  ;;  %6412 = vpow2.f32 %v3096_v23 }
 0x38a   :  { %6094 = vmatprep.mubr.msk.f32.mxu1 %vm2414_vm7, %v9175_v53  ;;  %v3102_v53 = vmul.f32 1.442695, %v3015_v41  ;;  %v3100_v10 = vmul.f32 1.442695, %v3014_v27  ;;  %v9631_v1 = vmul.f32 0.6931472, %v6395_v55  ;;  %v3328_v11 = vmul.f32 %v9430_v61, %v3327_v15  ;;  %v9634_v3 = vpop.eup %6398  ;;  %v9652_v47 = vpop.f32.mrf.mxu1 }
 0x38b   :  { %v3319_v31 = vmul.f32 %v9437_v5, %v3318_v14  ;;  %vm9639_vm14 = vcmp.lt.f32.partialorder %v3320_v37, 0.0004427343  ;;  %vm9643_vm15 = vcmp.lt.f32.partialorder %v3329_v17, 0.0004427343  ;;  %v9648_v51 = vpop.eup %6400  ;;  %vm2946_vm8 = vcmp.gt.f32.partialorder %v9252_v43, 20.0  ;;  %v11526_v17 = vld [vmem:[#allocation4_spill] sm:$0xff] }
 0x38c   :  { %v3016_v61 = vmin.f32 %v9574_v63, 20.0  ;;  %v3368_v5 = vadd.f32 1.0, %v9623_v8  ;;  %6414 = vlog2.f32 %v3377_v57  ;;  %v3336_v50 = vadd.f32 1.0, %v3335_v19  ;;  %v9679_v14 = vpop.f32.mrf.mxu1 }
 0x38d   :  { %6095 = vmatmul.mubr.msk.f32.gmra.mxu1 %vm2414_vm7, %v9122_v30  ;;  %v3347_v30 = vand.u32 2147483647, %v9517_v4  ;;  %6416 = vpow2.f32 %v3102_v53  ;;  %v3338_v42 = vand.u32 2147483647, %v9525_v28  ;;  %v3345_v46 = vadd.f32 1.0, %v3344_v60  ;;  %v6403_v2 = vpop.eup %6402 }
 0x38e   :  { %6097 = vmatprep.mubr.msk.f32.mxu1 %vm2414_vm7, %v9199_v45  ;;  %v3331_v45 = vsel %vm9643_vm15, %v3328_v11, %v3325_v35  ;;  %6418 = vpow2.f32 %v3100_v10  ;;  %v3322_v32 = vsel %vm9639_vm14, %v3319_v31, %v9631_v1  ;;  %v3362_v48 = vmul.f32 -0.5, %v9540_v52  ;;  %v6405_v41 = vpop.eup %6404  ;;  %v9691_v60 = vpop.f32.mrf.mxu1  ;;  %v11529_v10 = vld [vmem:[#allocation3_spill] sm:$0xff] }
 0x38f   :  { %v3395_v21 = vadd.f32 1.0, %v9634_v3  ;;  %v3017_v33 = vmin.f32 %v9550_v38, 20.0  ;;  %v9671_v55 = vsel %vm2947_vm6, %v9228_v56, %v3331_v45  ;;  %vm9673_vm9 = vcmp.lt.f32.partialorder %v3347_v30, 0.0004427343  ;;  %v11530_v30 = vld [vmem:[#allocation6_spill] sm:$0xff] }
 0x390   :  { %v3386_v23 = vadd.f32 1.0, %v9648_v51  ;;  %v3104_v27 = vmul.f32 1.442695, %v3016_v61  ;;  %v3019_v15 = vmin.f32 %v9603_v26, 20.0  ;;  %v3353_v37 = vmul.f32 -0.5, %v9547_v22 }
 0x391   :  { %6098 = vmatmul.mubr.msk.f32.gmra.mxu1 %vm2414_vm7, %v9186_v12  ;;  %6420 = vlog2.f32 %v3368_v5  ;;  %vm2948_vm11 = vcmp.gt.f32.partialorder %v11526_v17, 20.0  ;;  %v3018_v56 = vmin.f32 %v9627_v59, 20.0  ;;  %v3337_v35 = vmul.f32 %v9525_v28, %v3336_v50  ;;  %v11531_v5 = vld [vmem:[#allocation7_spill] sm:$0xff] }
 0x392   :  { %6100 = vmatprep.mubr.msk.f32.mxu1 %vm2414_vm7, %v9301_v24  ;;  %v11525_v24 = vld [vmem:[#allocation2_spill] sm:$0xff]  ;;  %vm9686_vm12 = vcmp.lt.f32.partialorder %v3338_v42, 0.0004427343  ;;  %v3346_v53 = vmul.f32 %v9517_v4, %v3345_v46  ;;  %v6407_v19 = vpop.eup %6406  ;;  %v3334_v1 = vmul.f32 0.6931472, %v6405_v41  ;;  %v3363_v31 = vadd.f32 1.0, %v3362_v48 }
 0x393   :  { %vm2949_vm10 = vcmp.gt.f32.partialorder %v11525_v24, 20.0  ;;  %v3343_v11 = vmul.f32 0.6931472, %v6403_v2  ;;  %6422 = vlog2.f32 %v3395_v21  ;;  %v6409_v18 = vpop.eup %6408  ;;  %vm2951_vm13 = vcmp.gt.f32.partialorder %v9323_v0, 20.0  ;;  %v9709_v21 = vpop.f32.mrf.mxu1  ;;  %v11532_v41 = vld [vmem:[#allocation5_spill] sm:$0xff] }
 0x394   :  { %v3106_v28 = vmul.f32 1.442695, %v3017_v33  ;;  %v3020_v20 = vmin.f32 %v9679_v14, 20.0  ;;  %6424 = vlog2.f32 %v3386_v23  ;;  %v3110_v4 = vmul.f32 1.442695, %v3019_v15 }
 0x395   :  { %6101 = vmatmul.mubr.msk.f32.gmra.mxu1 %vm2414_vm7, %v11529_v10  ;;  %6426 = vpow2.f32 %v3104_v27  ;;  %v3354_v61 = vadd.f32 1.0, %v3353_v37  ;;  %v3365_v45 = vand.u32 2147483647, %v9540_v52  ;;  %vm2950_vm0 = vcmp.gt.f32.partialorder %v11531_v5, 20.0  ;;  %v9707_v48 = vpop.eup %6410  ;;  %v9724_v57 = vpop.f32.mrf.mxu1 }
 0x396   :  { %6103 = vmatprep.mubr.msk.f32.mxu1 %vm2414_vm7, %v11530_v30  ;;  %v3108_v50 = vmul.f32 1.442695, %v3018_v56  ;;  %v9704_v42 = vsel %vm2946_vm8, %v9252_v43, %v3322_v32  ;;  %v3356_v46 = vand.u32 2147483647, %v9547_v22  ;;  %v3361_v2 = vmul.f32 0.6931472, %v6407_v19  ;;  %v9718_v32 = vpop.eup %6412 }
 0x397   :  { %v3340_v33 = vsel %vm9686_vm12, %v3337_v35, %v3334_v1  ;;  %v3349_v23 = vsel %vm9673_vm9, %v3346_v53, %v3343_v11  ;;  %v3352_v27 = vmul.f32 0.6931472, %v6409_v18  ;;  %v3364_v43 = vmul.f32 %v9540_v52, %v3363_v31 }
 0x398   :  { %6428 = vpow2.f32 %v3106_v28  ;;  %v3021_v15 = vmin.f32 %v9652_v47, 20.0  ;;  %v3112_v37 = vmul.f32 1.442695, %v3020_v20  ;;  %v3380_v56 = vmul.f32 -0.5, %v9597_v29 }
 0x399   :  { %6104 = vmatmul.mubr.msk.f32.gmra.mxu1 %vm2414_vm7, %v11532_v41  ;;  %6430 = vpow2.f32 %v3110_v4  ;;  %v3355_v12 = vmul.f32 %v9547_v22, %v3354_v61  ;;  %vm9727_vm1 = vcmp.lt.f32.partialorder %v3365_v45, 0.0004427343  ;;  %v3371_v52 = vmul.f32 -0.5, %v9623_v8  ;;  %v6415_v53 = vpop.eup %6414  ;;  %v11537_v22 = vld [vmem:[#allocation8_spill] sm:$0xff]  ;;  %v9761_v61 = vpop.f32.mrf.mxu1 }
 0x39a   :  { %6106 = vmatprep.mubr.msk.f32.mxu1 %vm2414_vm7, %v9454_v34  ;;  %6432 = vpow2.f32 %v3108_v50  ;;  %vm9732_vm2 = vcmp.lt.f32.partialorder %v3356_v46, 0.0004427343  ;;  %v3367_v34 = vsel %vm9727_vm1, %v3364_v43, %v3361_v2  ;;  %v3413_v10 = vadd.f32 1.0, %v9707_v48  ;;  %v9739_v1 = vpop.eup %6416 }
 0x39b   :  { %v9746_v11 = vsel %vm2948_vm11, %v11526_v17, %v3340_v33  ;;  %v9751_v31 = vsel %vm2949_vm10, %v11525_v24, %v3349_v23  ;;  %v3358_v18 = vsel %vm9732_vm2, %v3355_v12, %v3352_v27  ;;  %v3404_v28 = vadd.f32 1.0, %v9718_v32  ;;  %v9756_v20 = vpop.eup %6418 }
 0x39c   :  { %v3114_v30 = vmul.f32 1.442695, %v3021_v15  ;;  %6434 = vpow2.f32 %v3112_v37  ;;  %v3022_v4 = vmin.f32 %v9709_v21, 20.0  ;;  %v3381_v17 = vadd.f32 1.0, %v3380_v56 }
 0x39d   :  { %6107 = vmatmul.mubr.msk.f32.gmra.mxu1 %vm2414_vm7, %v11537_v22  ;;  %v9766_v24 = vsel %vm2951_vm13, %v9323_v0, %v3367_v34  ;;  %v3372_v45 = vadd.f32 1.0, %v3371_v52  ;;  %v3379_v50 = vmul.f32 0.6931472, %v6415_v53  ;;  %v3383_v46 = vand.u32 2147483647, %v9597_v29 }
 0x39e   :  { %6109 = vmatprep.mubr.msk.f32.mxu1 %vm2414_vm7, %v9473_v16  ;;  %v6421_v2 = vpop.eup %6420  ;;  %vm2953_vm3 = vcmp.gt.f32.partialorder %v9371_v54, 20.0  ;;  %v3023_v41 = vmin.f32 %v9691_v60, 20.0  ;;  %v3398_v33 = vmul.f32 -0.5, %v9634_v3  ;;  %6436 = vlog2.f32 %v3413_v10 }
 0x39f   :  { %v3431_v16 = vadd.f32 1.0, %v9739_v1  ;;  %v9778_v0 = vsel %vm2950_vm0, %v11531_v5, %v3358_v18  ;;  %v3389_v23 = vmul.f32 -0.5, %v9648_v51  ;;  %6438 = vlog2.f32 %v3404_v28 }
 0x3a0   :  { %v3422_v27 = vadd.f32 1.0, %v9756_v20  ;;  %v6423_v43 = vpop.eup %6422  ;;  %vm2952_vm4 = vcmp.gt.f32.partialorder %v9402_v25, 20.0  ;;  %6440 = vpow2.f32 %v3114_v30  ;;  %v3116_v15 = vmul.f32 1.442695, %v3022_v4 }
 0x3a1   :  { %6110 = vmatmul.mubr.msk.f32.gmra.mxu1 %vm2414_vm7, %v9464_v39  ;;  %v3024_v37 = vmin.f32 %v9761_v61, 20.0  ;;  %v3382_v39 = vmul.f32 %v9597_v29, %v3381_v17  ;;  %v6425_v56 = vpop.eup %6424  ;;  %v3370_v5 = vmul.f32 0.6931472, %v6421_v2  ;;  %v3373_v12 = vmul.f32 %v9623_v8, %v3372_v45 }
 0x3a2   :  { %6112 = vmatprep.mubr.msk.f32.mxu1 %vm2414_vm7, %v9579_v6  ;;  %v3374_v35 = vand.u32 2147483647, %v9623_v8  ;;  %vm9789_vm5 = vcmp.lt.f32.partialorder %v3383_v46, 0.0004427343  ;;  %v9793_v53 = vpop.eup %6426  ;;  %v3118_v19 = vmul.f32 1.442695, %v3023_v41  ;;  %6442 = vlog2.f32 %v3431_v16 }
 0x3a3   :  { %v3385_v34 = vsel %vm9789_vm5, %v3382_v39, %v3379_v50  ;;  %v3399_v10 = vadd.f32 1.0, %v3398_v33  ;;  %v3025_v6 = vmin.f32 %v9724_v57, 20.0  ;;  %v3390_v29 = vadd.f32 1.0, %v3389_v23 }
 0x3a4   :  { %v3401_v8 = vand.u32 2147483647, %v9634_v3  ;;  %6444 = vlog2.f32 %v3422_v27  ;;  %v3120_v22 = vmul.f32 1.442695, %v3024_v37  ;;  %v3392_v18 = vand.u32 2147483647, %v9648_v51 }
 0x3a5   :  { %6113 = vmatmul.mubr.msk.f32.gmra.mxu1 %vm2414_vm7, %v9589_v7  ;;  %6446 = vpow2.f32 %v3116_v15  ;;  %v3397_v28 = vmul.f32 0.6931472, %v6423_v43  ;;  %v9804_v30 = vpop.eup %6428  ;;  %vm2955_vm6 = vcmp.gt.f32.partialorder %v9422_v58, 20.0  ;;  %vm9807_vm14 = vcmp.lt.f32.partialorder %v3374_v35, 0.0004427343 }
 0x3a6   :  { %6115 = vmatprep.mubr.msk.f32.mxu1 %vm2414_vm7, %v9615_v36  ;;  %v3388_v7 = vmul.f32 0.6931472, %v6425_v56  ;;  %v3440_v17 = vadd.f32 1.0, %v9793_v53  ;;  %v9812_v45 = vpop.eup %6430  ;;  %vm2954_vm15 = vcmp.gt.f32.partialorder %v9444_v40, 20.0  ;;  %6448 = vpow2.f32 %v3118_v19 }
 0x3a7   :  { %v3376_v36 = vsel %vm9807_vm14, %v3373_v12, %v3370_v5  ;;  %v3400_v50 = vmul.f32 %v9634_v3, %v3399_v10  ;;  %v9818_v46 = vpop.eup %6432  ;;  %v3122_v2 = vmul.f32 1.442695, %v3025_v6  ;;  %v9825_v41 = vsel %vm2953_vm3, %v9371_v54, %v3385_v34 }
 0x3a8   :  { %v3391_v33 = vmul.f32 %v9648_v51, %v3390_v29  ;;  %vm9828_vm8 = vcmp.lt.f32.partialorder %v3401_v8, 0.0004427343  ;;  %6450 = vpow2.f32 %v3120_v22  ;;  %vm9834_vm9 = vcmp.lt.f32.partialorder %v3392_v18, 0.0004427343 }
 0x3a9   :  { %6116 = vmatmul.mubr.msk.f32.gmra.mxu1 %vm2414_vm7, %v9620_v13  ;;  %v3403_v13 = vsel %vm9828_vm8, %v3400_v50, %v3397_v28  ;;  %v3449_v54 = vadd.f32 1.0, %v9804_v30  ;;  %v9841_v23 = vpop.eup %6434  ;;  %v3680_v51 = vsel %vm2952_vm4, %v9402_v25, %v3376_v36  ;;  %6452 = vlog2.f32 %v3440_v17 }
 0x3aa   :  { %6118 = vmatprep.mubr.msk.f32.mxu1 %vm2414_vm7, %v9704_v42  ;;  %v3394_v27 = vsel %vm9834_vm9, %v3391_v33, %v3388_v7  ;;  %v3467_v42 = vadd.f32 1.0, %v9812_v45  ;;  %v3407_v15 = vmul.f32 -0.5, %v9718_v32  ;;  %v3410_v37 = vand.u32 2147483647, %v9718_v32 }
 0x3ab   :  { %v3416_v39 = vmul.f32 -0.5, %v9707_v48  ;;  %v3458_v56 = vadd.f32 1.0, %v9818_v46  ;;  %v6437_v5 = vpop.eup %6436  ;;  %6454 = vpow2.f32 %v3122_v2  ;;  %v9861_v12 = vsel %vm2955_vm6, %v9422_v58, %v3403_v13 }
 0x3ac   :  { %v9849_v43 = vpop.f32.mrf.mxu1  ;;  %v3419_v35 = vand.u32 2147483647, %v9707_v48  ;;  %v6439_v52 = vpop.eup %6438  ;;  %v9871_v34 = vsel %vm2954_vm15, %v9444_v40, %v3394_v27  ;;  %6456 = vlog2.f32 %v3449_v54  ;;  %v3476_v10 = vadd.f32 1.0, %v9841_v23 }
 0x3ad   :  { %v3027_v25 = vmin.f32 %v9849_v43, 20.0  ;;  %6119 = vmatmul.mubr.msk.f32.gmra.mxu1 %vm2414_vm7, %v9671_v55  ;;  %v3434_v55 = vmul.f32 -0.5, %v9739_v1  ;;  %v9875_v58 = vpop.eup %6440  ;;  %v3425_v8 = vmul.f32 -0.5, %v9756_v20  ;;  %6458 = vlog2.f32 %v3467_v42 }
 0x3ae   :  { %v9864_v19 = vpop.f32.mrf.mxu1  ;;  %6121 = vmatprep.mubr.msk.f32.mxu1 %vm2414_vm7, %v9746_v11  ;;  %vm2957_vm10 = vcmp.gt.f32.partialorder %v9459_v9, 20.0  ;;  %v3408_v11 = vadd.f32 1.0, %v3407_v15  ;;  %vm9880_vm11 = vcmp.lt.f32.partialorder %v3410_v37, 0.0004427343  ;;  %v3417_v40 = vadd.f32 1.0, %v3416_v39 }
 0x3af   :  { %v3126_v6 = vmul.f32 1.442695, %v3027_v25  ;;  %v3026_v29 = vmin.f32 %v9864_v19, 20.0  ;;  %6460 = vlog2.f32 %v3458_v56  ;;  %v6443_v18 = vpop.eup %6442  ;;  %vm2956_vm12 = vcmp.gt.f32.partialorder %v9500_v49, 20.0 }
 0x3b0   :  { %v3415_v4 = vmul.f32 0.6931472, %v6437_v5  ;;  %vm9887_vm13 = vcmp.lt.f32.partialorder %v3419_v35, 0.0004427343  ;;  %v3406_v36 = vmul.f32 0.6931472, %v6439_v52  ;;  %v3409_v13 = vmul.f32 %v9718_v32, %v3408_v11 }
 0x3b1   :  { %6462 = vpow2.f32 %v3126_v6  ;;  %v3124_v28 = vmul.f32 1.442695, %v3026_v29  ;;  %6122 = vmatmul.mubr.msk.f32.gmra.mxu1 %vm2414_vm7, %v9751_v31  ;;  %v6445_v17 = vpop.eup %6444  ;;  %v3435_v50 = vadd.f32 1.0, %v3434_v55  ;;  %v3485_v2 = vadd.f32 1.0, %v9875_v58 }
 0x3b2   :  { %6124 = vmatprep.mubr.msk.f32.mxu1 %vm2414_vm7, %v9778_v0  ;;  %6464 = vlog2.f32 %v3476_v10  ;;  %v9894_v33 = vpop.eup %6446  ;;  %v3426_v16 = vadd.f32 1.0, %v3425_v8  ;;  %v3428_v31 = vand.u32 2147483647, %v9756_v20  ;;  %v3437_v3 = vand.u32 2147483647, %v9739_v1 }
 0x3b3   :  { %6466 = vpow2.f32 %v3124_v28  ;;  %vm2959_vm0 = vcmp.gt.f32.partialorder %v9519_v62, 20.0  ;;  %v3418_v54 = vmul.f32 %v9707_v48, %v3417_v40  ;;  %v3433_v0 = vmul.f32 0.6931472, %v6443_v18  ;;  %v9901_v27 = vpop.eup %6448 }
 0x3b4   :  { %vm2958_vm1 = vcmp.gt.f32.partialorder %v9542_v44, 20.0  ;;  %v3424_v42 = vmul.f32 0.6931472, %v6445_v17  ;;  %v3443_v15 = vmul.f32 -0.5, %v9793_v53  ;;  %v3452_v37 = vmul.f32 -0.5, %v9804_v30 }
 0x3b5   :  { %6125 = vmatmul.mubr.msk.f32.gmra.mxu1 %vm2414_vm7, %v9766_v24  ;;  %v3421_v32 = vsel %vm9887_vm13, %v3418_v54, %v3415_v4  ;;  %v3436_v48 = vmul.f32 %v9739_v1, %v3435_v50  ;;  %6468 = vlog2.f32 %v3485_v2  ;;  %v3494_v39 = vadd.f32 1.0, %v9894_v33  ;;  %v9913_v56 = vpop.eup %6450 }
 0x3b6   :  { %6127 = vmatprep.mubr.msk.f32.mxu1 %vm2414_vm7, %v3680_v51  ;;  %v3412_v24 = vsel %vm9880_vm11, %v3409_v13, %v3406_v36  ;;  %v3427_v5 = vmul.f32 %v9756_v20, %v3426_v16  ;;  %vm9918_vm2 = vcmp.lt.f32.partialorder %v3428_v31, 0.0004427343  ;;  %vm9922_vm3 = vcmp.lt.f32.partialorder %v3437_v3, 0.0004427343  ;;  %v6453_v35 = vpop.eup %6452 }
 0x3b7   :  { %v3439_v1 = vsel %vm9922_vm3, %v3436_v48, %v3433_v0  ;;  %v3446_v52 = vand.u32 2147483647, %v9793_v53  ;;  %v3455_v55 = vand.u32 2147483647, %v9804_v30  ;;  %v3503_v10 = vadd.f32 1.0, %v9901_v27 }
 0x3b8   :  { %v3685_v20 = vsel %vm2957_vm10, %v9459_v9, %v3421_v32  ;;  %v3430_v6 = vsel %vm9918_vm2, %v3427_v5, %v3424_v42  ;;  %v3444_v29 = vadd.f32 1.0, %v3443_v15  ;;  %v3453_v8 = vadd.f32 1.0, %v3452_v37  ;;  %v9938_v11 = vpop.eup %6454 }
 0x3b9   :  { %6128 = vmatmul.mubr.msk.f32.gmra.mxu1 %vm2414_vm7, %v9825_v41  ;;  %v3684_v22 = vsel %vm2956_vm12, %v9500_v49, %v3412_v24  ;;  %v3470_v41 = vmul.f32 -0.5, %v9812_v45  ;;  %6470 = vlog2.f32 %v3494_v39  ;;  %v3512_v40 = vadd.f32 1.0, %v9913_v56  ;;  %v6457_v9 = vpop.eup %6456 }
 0x3ba   :  { %6130 = vmatprep.mubr.msk.f32.mxu1 %vm2414_vm7, %v9871_v34  ;;  %vm2960_vm4 = vcmp.gt.f32.partialorder %v9574_v63, 20.0  ;;  %v3687_v18 = vsel %vm2959_vm0, %v9519_v62, %v3439_v1  ;;  %v3442_v28 = vmul.f32 0.6931472, %v6453_v35  ;;  %v3461_v4 = vmul.f32 -0.5, %v9818_v46  ;;  %v6459_v34 = vpop.eup %6458 }
 0x3bb   :  { %v3686_v49 = vsel %vm2958_vm1, %v9542_v44, %v3430_v6  ;;  %vm9955_vm5 = vcmp.lt.f32.partialorder %v3446_v52, 0.0004427343  ;;  %vm9959_vm6 = vcmp.lt.f32.partialorder %v3455_v55, 0.0004427343  ;;  %6472 = vlog2.f32 %v3503_v10 }
 0x3bc   :  { %v6461_v36 = vpop.eup %6460  ;;  %vm2961_vm14 = vcmp.gt.f32.partialorder %v9550_v38, 20.0  ;;  %v3445_v62 = vmul.f32 %v9793_v53, %v3444_v29  ;;  %v3454_v50 = vmul.f32 %v9804_v30, %v3453_v8  ;;  %v3479_v44 = vmul.f32 -0.5, %v9841_v23 }
 0x3bd   :  { %6131 = vmatmul.mubr.msk.f32.gmra.mxu1 %vm2414_vm7, %v9861_v12  ;;  %v3521_v2 = vadd.f32 1.0, %v9938_v11  ;;  %vm2963_vm15 = vcmp.gt.f32.partialorder %v9603_v26, 20.0  ;;  %v3451_v31 = vmul.f32 0.6931472, %v6457_v9  ;;  %v3471_v3 = vadd.f32 1.0, %v3470_v41 }
 0x3be   :  { %v9970_v16 = vpop.eup %6462  ;;  %6133 = vmatprep.mubr.msk.f32.mxu1 %vm2414_vm7, %v3684_v22  ;;  %6474 = vlog2.f32 %v3512_v40  ;;  %v3448_v12 = vsel %vm9955_vm5, %v3445_v62, %v3442_v28  ;;  %v3462_v53 = vadd.f32 1.0, %v3461_v4  ;;  %v3464_v30 = vand.u32 2147483647, %v9818_v46 }
 0x3bf   :  { %v6465_v13 = vpop.eup %6464  ;;  %v3473_v54 = vand.u32 2147483647, %v9812_v45  ;;  %vm2962_vm8 = vcmp.gt.f32.partialorder %v9627_v59, 20.0  ;;  %v3460_v42 = vmul.f32 0.6931472, %v6461_v36  ;;  %v3488_v37 = vmul.f32 -0.5, %v9875_v58 }
 0x3c0   :  { %v9978_v0 = vpop.eup %6466  ;;  %v3469_v15 = vmul.f32 0.6931472, %v6459_v34  ;;  %v3480_v32 = vadd.f32 1.0, %v3479_v44  ;;  %6476 = vlog2.f32 %v3521_v2  ;;  %v3539_v39 = vadd.f32 1.0, %v9970_v16 }
 0x3c1   :  { %6134 = vmatmul.mubr.msk.f32.gmra.mxu1 %vm2414_vm7, %v3685_v20  ;;  %v3530_v48 = vadd.f32 1.0, %v9978_v0  ;;  %v3688_v24 = vsel %vm2960_vm4, %v9574_v63, %v3448_v12  ;;  %v3457_v5 = vsel %vm9959_vm6, %v3454_v50, %v3451_v31  ;;  %v3472_v25 = vmul.f32 %v9812_v45, %v3471_v3 }
 0x3c2   :  { %6136 = vmatprep.mubr.msk.f32.mxu1 %vm2414_vm7, %v3686_v49  ;;  %v3482_v51 = vand.u32 2147483647, %v9841_v23  ;;  %v6469_v35 = vpop.eup %6468  ;;  %v3463_v1 = vmul.f32 %v9818_v46, %v3462_v53  ;;  %vm9994_vm9 = vcmp.lt.f32.partialorder %v3473_v54, 0.0004427343  ;;  %v3478_v55 = vmul.f32 0.6931472, %v6465_v13 }
 0x3c3   :  { %6478 = vlog2.f32 %v3530_v48  ;;  %vm9998_vm10 = vcmp.lt.f32.partialorder %v3464_v30, 0.0004427343  ;;  %v3475_v63 = vsel %vm9994_vm9, %v3472_v25, %v3469_v15  ;;  %v3489_v20 = vadd.f32 1.0, %v3488_v37 }
 0x3c4   :  { %v3497_v45 = vmul.f32 -0.5, %v9894_v33  ;;  %v3466_v46 = vsel %vm9998_vm10, %v3463_v1, %v3460_v42  ;;  %v3481_v6 = vmul.f32 %v9841_v23, %v3480_v32  ;;  %v3491_v29 = vand.u32 2147483647, %v9875_v58 }
 0x3c5   :  { %6137 = vmatmul.mubr.msk.f32.gmra.mxu1 %vm2414_vm7, %v3687_v18  ;;  %6480 = vlog2.f32 %v3539_v39  ;;  %v3689_v8 = vsel %vm2961_vm14, %v9550_v38, %v3457_v5  ;;  %vm10014_vm11 = vcmp.lt.f32.partialorder %v3482_v51, 0.0004427343  ;;  %v3487_v41 = vmul.f32 0.6931472, %v6469_v35 }
 0x3c6   :  { %6139 = vmatprep.mubr.msk.f32.mxu1 %vm2414_vm7, %v3688_v24  ;;  %v3506_v40 = vmul.f32 -0.5, %v9901_v27  ;;  %v6471_v9 = vpop.eup %6470  ;;  %vm2965_vm12 = vcmp.gt.f32.partialorder %v9652_v47, 20.0  ;;  %vm2964_vm13 = vcmp.gt.f32.partialorder %v9679_v14, 20.0  ;;  %v3691_v23 = vsel %vm2963_vm15, %v9603_v26, %v3475_v63 }
 0x3c7   :  { %v3484_v18 = vsel %vm10014_vm11, %v3481_v6, %v3478_v55  ;;  %v3690_v28 = vsel %vm2962_vm8, %v9627_v59, %v3466_v46  ;;  %v3490_v4 = vmul.f32 %v9875_v58, %v3489_v20  ;;  %v3498_v34 = vadd.f32 1.0, %v3497_v45 }
 0x3c8   :  { %v10026_v38 = vpop.f32.mrf.mxu1  ;;  %v3515_v49 = vmul.f32 -0.5, %v9913_v56  ;;  %v6473_v7 = vpop.eup %6472  ;;  %vm2966_vm0 = vcmp.gt.f32.partialorder %v9709_v21, 20.0  ;;  %vm10036_vm1 = vcmp.lt.f32.partialorder %v3491_v29, 0.0004427343  ;;  %v3500_v36 = vand.u32 2147483647, %v9894_v33 }
 0x3c9   :  { %v3029_v17 = vmin.f32 %v10026_v38, 20.0  ;;  %6140 = vmatmul.mubr.msk.f32.gmra.mxu1 %vm2414_vm7, %v3689_v8  ;;  %v3692_v59 = vsel %vm2964_vm13, %v9679_v14, %v3484_v18  ;;  %v3493_v58 = vsel %vm10036_vm1, %v3490_v4, %v3487_v41  ;;  %v3496_v50 = vmul.f32 0.6931472, %v6471_v9 }
 0x3ca   :  { %v10041_v62 = vpop.f32.mrf.mxu1  ;;  %6142 = vmatprep.mubr.msk.f32.mxu1 %vm2414_vm7, %v3690_v28  ;;  %v3507_v44 = vadd.f32 1.0, %v3506_v40  ;;  %v3509_v13 = vand.u32 2147483647, %v9901_v27  ;;  %v3524_v12 = vmul.f32 -0.5, %v9938_v11  ;;  %v3499_v53 = vmul.f32 %v9894_v33, %v3498_v34 }
 0x3cb   :  { %v6475_v2 = vpop.eup %6474  ;;  %v3130_v31 = vmul.f32 1.442695, %v3029_v17  ;;  %v3028_v3 = vmin.f32 %v10041_v62, 20.0  ;;  %v3505_v30 = vmul.f32 0.6931472, %v6473_v7  ;;  %v3516_v54 = vadd.f32 1.0, %v3515_v49 }
 0x3cc   :  { %v3533_v42 = vmul.f32 -0.5, %v9978_v0  ;;  %vm10055_vm2 = vcmp.lt.f32.partialorder %v3500_v36, 0.0004427343  ;;  %v3518_v37 = vand.u32 2147483647, %v9913_v56  ;;  %v3693_v33 = vsel %vm2965_vm12, %v9652_v47, %v3493_v58 }
 0x3cd   :  { %6482 = vpow2.f32 %v3130_v31  ;;  %v3128_v14 = vmul.f32 1.442695, %v3028_v3  ;;  %6143 = vmatmul.mubr.msk.f32.gmra.mxu1 %vm2414_vm7, %v3691_v23  ;;  %v6477_v32 = vpop.eup %6476  ;;  %v3502_v48 = vsel %vm10055_vm2, %v3499_v53, %v3496_v50  ;;  %v3508_v39 = vmul.f32 %v9901_v27, %v3507_v44  ;;  %v5031_v44 = vld [vmem:[%s11458_s5 + $0x38] sm:$0xff] }
 0x3ce   :  { %6145 = vmatprep.mubr.msk.f32.mxu1 %vm2414_vm7, %v3692_v59  ;;  %v3514_v24 = vmul.f32 0.6931472, %v6475_v2  ;;  %vm10067_vm3 = vcmp.lt.f32.partialorder %v3509_v13, 0.0004427343  ;;  %v3525_v25 = vadd.f32 1.0, %v3524_v12  ;;  %v3542_v51 = vmul.f32 -0.5, %v9970_v16  ;;  %6175 = vmatprep.subr.mxu0 %v5031_v44 }
 0x3cf   :  { %6484 = vpow2.f32 %v3128_v14  ;;  %v3511_v1 = vsel %vm10067_vm3, %v3508_v39, %v3505_v30  ;;  %v3517_v47 = vmul.f32 %v9913_v56, %v3516_v54  ;;  %v3527_v52 = vand.u32 2147483647, %v9938_v11  ;;  %6176 = vmatpush3.msra.mxu0 %v5031_v44  ;;  %v5030_v13 = vld [vmem:[%s11458_s5 + $0x30] sm:$0xff] }
 0x3d0   :  { %v6479_v35 = vpop.eup %6478  ;;  %v3534_v55 = vadd.f32 1.0, %v3533_v42  ;;  %v3694_v27 = vsel %vm2966_vm0, %v9709_v21, %v3502_v48  ;;  %vm10080_vm4 = vcmp.lt.f32.partialorder %v3518_v37, 0.0004427343  ;;  %v3523_v63 = vmul.f32 0.6931472, %v6477_v32  ;;  %6177 = vmatprep.subr.mxu0 %v5030_v13  ;;  %v5029_v42 = vld [vmem:[%s11458_s5 + $0x28] sm:$0xff] }
 0x3d1   :  { %6146 = vmatmul.mubr.msk.f32.gmra.mxu1 %vm2414_vm7, %v3693_v33  ;;  %v3536_v20 = vand.u32 2147483647, %v9978_v0  ;;  %v3520_v56 = vsel %vm10080_vm4, %v3517_v47, %v3514_v24  ;;  %v3532_v46 = vmul.f32 0.6931472, %v6479_v35  ;;  %vm2967_vm5 = vcmp.gt.f32.partialorder %v9691_v60, 20.0  ;;  %6178 = vmatpush3.msra.mxu0 %v5030_v13  ;;  %v5028_v37 = vld [vmem:[%s11458_s5 + $0x20] sm:$0xff] }
 0x3d2   :  { %v6481_v45 = vpop.eup %6480  ;;  %6148 = vmatprep.mubr.msk.f32.mxu1 %vm2414_vm7, %v3694_v27  ;;  %vm2968_vm6 = vcmp.gt.f32.partialorder %v9761_v61, 20.0  ;;  %v3526_v21 = vmul.f32 %v9938_v11, %v3525_v25  ;;  %v3543_v6 = vadd.f32 1.0, %v3542_v51  ;;  %v3695_v29 = vsel %vm2967_vm5, %v9691_v60, %v3511_v1  ;;  %6179 = vmatprep.subr.mxu0 %v5029_v42  ;;  %v5027_v48 = vld [vmem:[%s11458_s5 + $0x18] sm:$0xff]  ;;  %v5024_v51 = vld [vmem:[%s11458_s5] sm:$0xff] }
 0x3d3   :  { %vm3528_vm14 = vcmp.lt.f32.partialorder %v3527_v52, 0.0004427343  ;;  %v3535_v8 = vmul.f32 %v9978_v0, %v3534_v55  ;;  %v3545_v22 = vand.u32 2147483647, %v9970_v16  ;;  %v3696_v41 = vsel %vm2968_vm6, %v9761_v61, %v3520_v56  ;;  %6180 = vmatpush3.msra.mxu0 %v5029_v42 }
 0x3d4   :  { %v3529_v40 = vsel %vm3528_vm14, %v3526_v21, %v3523_v63  ;;  %vm3537_vm15 = vcmp.lt.f32.partialorder %v3536_v20, 0.0004427343  ;;  %v3541_v9 = vmul.f32 0.6931472, %v6481_v45  ;;  %vm2969_vm8 = vcmp.gt.f32.partialorder %v9724_v57, 20.0  ;;  %6181 = vmatprep.subr.mxu0 %v5028_v37 }
 0x3d5   :  { %6149 = vmatmul.mubr.msk.f32.gmra.mxu1 %vm2414_vm7, %v3695_v29  ;;  %v3538_v23 = vsel %vm3537_vm15, %v3535_v8, %v3532_v46  ;;  %v3544_v11 = vmul.f32 %v9970_v16, %v3543_v6  ;;  %vm2970_vm9 = vcmp.gt.f32.partialorder %v9864_v19, 20.0  ;;  %v3697_v60 = vsel %vm2969_vm8, %v9724_v57, %v3529_v40  ;;  %6182 = vmatpush3.msra.mxu0 %v5028_v37 }
 0x3d6   :  { %6151 = vmatprep.mubr.msk.f32.mxu1 %vm2414_vm7, %v3696_v41  ;;  %vm3546_vm10 = vcmp.lt.f32.partialorder %v3545_v22, 0.0004427343  ;;  %v3698_v0 = vsel %vm2970_vm9, %v9864_v19, %v3538_v23  ;;  %vm2971_vm11 = vcmp.gt.f32.partialorder %v9849_v43, 20.0  ;;  %vm2972_vm0 = vcmp.gt.f32.partialorder %v10041_v62, 20.0  ;;  %6183 = vmatprep.subr.mxu0 %v5027_v48 }
 0x3d7   :  { %v3547_v61 = vsel %vm3546_vm10, %v3544_v11, %v3541_v9  ;;  %vm2973_vm1 = vcmp.gt.f32.partialorder %v10026_v38, 20.0  ;;  %6184 = vmatpush3.msra.mxu0 %v5027_v48 }
 0x3d8   :  { %v3699_v34 = vsel %vm2971_vm11, %v9849_v43, %v3547_v61 }
 0x3d9   :  { %6152 = vmatmul.mubr.msk.f32.gmra.mxu1 %vm2414_vm7, %v3697_v60 }
 0x3da   :  { %v6483_v18 = vpop.eup %6482  ;;  %6154 = vmatprep.mubr.msk.f32.mxu1 %vm2414_vm7, %v3698_v0 }
 0x3db   :  { %v3557_v28 = vadd.f32 1.0, %v6483_v18  ;;  %v3560_v49 = vmul.f32 -0.5, %v6483_v18  ;;  %v3563_v50 = vand.u32 2147483647, %v6483_v18 }
 0x3dc   :  { %v6485_v4 = vpop.eup %6484 }
 0x3dd   :  { %6155 = vmatmul.mubr.msk.f32.gmra.mxu1 %vm2414_vm7, %v3699_v34  ;;  %v3548_v16 = vadd.f32 1.0, %v6485_v4  ;;  %6486 = vlog2.f32 %v3557_v28  ;;  %v3551_v7 = vmul.f32 -0.5, %v6485_v4  ;;  %v3561_v59 = vadd.f32 1.0, %v3560_v49 }
 0x3de   :  { %v3554_v31 = vand.u32 2147483647, %v6485_v4  ;;  %vm3564_vm12 = vcmp.lt.f32.partialorder %v3563_v50, 0.0004427343 }
 0x3df   :  { %6488 = vlog2.f32 %v3548_v16  ;;  %v3552_v43 = vadd.f32 1.0, %v3551_v7  ;;  %v3562_v53 = vmul.f32 %v6483_v18, %v3561_v59 }
 0x3e0   :  { %vm3555_vm13 = vcmp.lt.f32.partialorder %v3554_v31, 0.0004427343 }
 0x3e1   :  { %v3553_v54 = vmul.f32 %v6485_v4, %v3552_v43 }
 0x3e4   :  { %v10107_v57 = vpop.f32.mrf.mxu1 }
 0x3e5   :  { %v3031_v19 = vmin.f32 %v10107_v57, 20.0  ;;  %vm2975_vm5 = vcmp.gt.f32.partialorder %v10107_v57, 20.0 }
 0x3e6   :  { %v10110_v17 = vpop.f32.mrf.mxu1 }
 0x3e7   :  { %v3134_v26 = vmul.f32 1.442695, %v3031_v19  ;;  %v3030_v36 = vmin.f32 %v10110_v17, 20.0  ;;  %vm2974_vm4 = vcmp.gt.f32.partialorder %v10110_v17, 20.0 }
 0x3e9   :  { %6490 = vpow2.f32 %v3134_v26  ;;  %v3132_v58 = vmul.f32 1.442695, %v3030_v36 }
 0x3ea   :  { %v6487_v2 = vpop.eup %6486 }
 0x3eb   :  { %6492 = vpow2.f32 %v3132_v58  ;;  %v3559_v3 = vmul.f32 0.6931472, %v6487_v2 }
 0x3ec   :  { %v6489_v12 = vpop.eup %6488 }
 0x3ed   :  { %v3550_v30 = vmul.f32 0.6931472, %v6489_v12  ;;  %v3565_v14 = vsel %vm3564_vm12, %v3562_v53, %v3559_v3 }
 0x3ee   :  { %v3701_v33 = vsel %vm2973_vm1, %v10026_v38, %v3565_v14  ;;  %v5025_v38 = vld [vmem:[%s11458_s5 + $0x8] sm:$0xff] }
 0x3ef   :  { %v3556_v15 = vsel %vm3555_vm13, %v3553_v54, %v3550_v30 }
 0x3f0   :  { %v3700_v32 = vsel %vm2972_vm0, %v10041_v62, %v3556_v15  ;;  %v5026_v62 = vld [vmem:[%s11458_s5 + $0x10] sm:$0xff] }
 0x3f1   :  { %6157 = vmatprep.mubr.msk.f32.mxu1 %vm2414_vm7, %v3700_v32  ;;  %6185 = vmatprep.subr.mxu0 %v5026_v62 }
 0x3f2   :  { %6158 = vmatmul.mubr.msk.f32.gmra.mxu1 %vm2414_vm7, %v3701_v33  ;;  %6186 = vmatpush3.msra.mxu0 %v5026_v62 }
 0x3f3   :  { %6187 = vmatprep.subr.mxu0 %v5025_v38 }
 0x3f4   :  { %6188 = vmatpush3.msra.mxu0 %v5025_v38 }
 0x3f5   :  { %6189 = vmatprep.subr.mxu0 %v5024_v51 }
 0x3f6   :  { %v6491_v39 = vpop.eup %6490  ;;  %6190 = vmatpush3.msra.mxu0 %v5024_v51 }
 0x3f7   :  { %v3575_v24 = vadd.f32 1.0, %v6491_v39  ;;  %v3578_v1 = vmul.f32 -0.5, %v6491_v39  ;;  %v3581_v56 = vand.u32 2147483647, %v6491_v39 }
 0x3f8   :  { %v6493_v5 = vpop.eup %6492 }
 0x3f9   :  { %v3566_v25 = vadd.f32 1.0, %v6493_v5  ;;  %6494 = vlog2.f32 %v3575_v24  ;;  %v3569_v52 = vmul.f32 -0.5, %v6493_v5  ;;  %v3579_v63 = vadd.f32 1.0, %v3578_v1 }
 0x3fa   :  { %v3572_v21 = vand.u32 2147483647, %v6493_v5  ;;  %vm3582_vm2 = vcmp.lt.f32.partialorder %v3581_v56, 0.0004427343 }
 0x3fb   :  { %6496 = vlog2.f32 %v3566_v25  ;;  %v3570_v45 = vadd.f32 1.0, %v3569_v52  ;;  %v3580_v8 = vmul.f32 %v6491_v39, %v3579_v63 }
 0x3fc   :  { %vm3573_vm3 = vcmp.lt.f32.partialorder %v3572_v21, 0.0004427343  ;;  %v10176_v21 = vld [vmem:[%s11459_s4] ss:$0 sm:$0xff] }
 0x3fd   :  { %v3571_v41 = vmul.f32 %v6493_v5, %v3570_v45 }
 0x400   :  { %v10143_v35 = vpop.f32.mrf.mxu1 }
 0x401   :  { %v3033_v47 = vmin.f32 %v10143_v35, 20.0  ;;  %vm2977_vm8 = vcmp.gt.f32.partialorder %v10143_v35, 20.0 }
 0x402   :  { %v2889_v55 = vpop.f32.mrf.mxu1 }
 0x403   :  { %v3138_v27 = vmul.f32 1.442695, %v3033_v47  ;;  %v3032_v10 = vmin.f32 %v2889_v55, 20.0  ;;  %vm2976_vm15 = vcmp.gt.f32.partialorder %v2889_v55, 20.0 }
 0x405   :  { %6498 = vpow2.f32 %v3138_v27  ;;  %v3136_v20 = vmul.f32 1.442695, %v3032_v10 }
 0x406   :  { %v6495_v46 = vpop.eup %6494 }
 0x407   :  { %6500 = vpow2.f32 %v3136_v20  ;;  %v3577_v6 = vmul.f32 0.6931472, %v6495_v46 }
 0x408   :  { %v6497_v29 = vpop.eup %6496 }
 0x409   :  { %v3568_v22 = vmul.f32 0.6931472, %v6497_v29  ;;  %v3583_v40 = vsel %vm3582_vm2, %v3580_v8, %v3577_v6 }
 0x40a   :  { %v3703_v11 = vsel %vm2975_vm5, %v10107_v57, %v3583_v40 }
 0x40b   :  { %v3574_v9 = vsel %vm3573_vm3, %v3571_v41, %v3568_v22 }
 0x40c   :  { %v3702_v23 = vsel %vm2974_vm4, %v10110_v17, %v3574_v9 }
 0x40d   :  { %6160 = vmatprep.mubr.msk.f32.mxu1 %vm2414_vm7, %v3702_v23 }
 0x40e   :  { %6161 = vmatmul.mubr.msk.f32.gmra.mxu1 %vm2414_vm7, %v3703_v11 }
 0x412   :  { %v6499_v60 = vpop.eup %6498 }
 0x413   :  { %v3593_v0 = vadd.f32 1.0, %v6499_v60  ;;  %v3596_v4 = vmul.f32 -0.5, %v6499_v60  ;;  %v3599_v36 = vand.u32 2147483647, %v6499_v60 }
 0x414   :  { %v6501_v61 = vpop.eup %6500 }
 0x415   :  { %v3584_v18 = vadd.f32 1.0, %v6501_v61  ;;  %6502 = vlog2.f32 %v3593_v0  ;;  %v3587_v16 = vmul.f32 -0.5, %v6501_v61  ;;  %v3597_v17 = vadd.f32 1.0, %v3596_v4 }
 0x416   :  { %v3590_v58 = vand.u32 2147483647, %v6501_v61  ;;  %vm3600_vm6 = vcmp.lt.f32.partialorder %v3599_v36, 0.0004427343 }
 0x417   :  { %6504 = vlog2.f32 %v3584_v18  ;;  %v3588_v26 = vadd.f32 1.0, %v3587_v16  ;;  %v3598_v44 = vmul.f32 %v6499_v60, %v3597_v17 }
 0x418   :  { %vm3591_vm14 = vcmp.lt.f32.partialorder %v3590_v58, 0.0004427343 }
 0x419   :  { %v3589_v31 = vmul.f32 %v6501_v61, %v3588_v26 }
 0x41c   :  { %v10152_v28 = vpop.f32.mrf.mxu1 }
 0x41d   :  { %v3035_v34 = vmin.f32 %v10152_v28, 20.0  ;;  %vm2979_vm12 = vcmp.gt.f32.partialorder %v10152_v28, 20.0 }
 0x41e   :  { %v2899_v49 = vpop.f32.mrf.mxu1 }
 0x41f   :  { %v3142_v19 = vmul.f32 1.442695, %v3035_v34  ;;  %v3034_v7 = vmin.f32 %v2899_v49, 20.0  ;;  %vm2978_vm11 = vcmp.gt.f32.partialorder %v2899_v49, 20.0 }
 0x421   :  { %6506 = vpow2.f32 %v3142_v19  ;;  %v3140_v57 = vmul.f32 1.442695, %v3034_v7 }
 0x422   :  { %v6503_v59 = vpop.eup %6502 }
 0x423   :  { %6508 = vpow2.f32 %v3140_v57  ;;  %v3595_v43 = vmul.f32 0.6931472, %v6503_v59 }
 0x424   :  { %v6505_v50 = vpop.eup %6504 }
 0x425   :  { %v3586_v2 = vmul.f32 0.6931472, %v6505_v50  ;;  %v3601_v3 = vsel %vm3600_vm6, %v3598_v44, %v3595_v43 }
 0x426   :  { %v3705_v53 = vsel %vm2977_vm8, %v10143_v35, %v3601_v3 }
 0x427   :  { %v3592_v13 = vsel %vm3591_vm14, %v3589_v31, %v3586_v2 }
 0x428   :  { %v3704_v12 = vsel %vm2976_vm15, %v2889_v55, %v3592_v13 }
 0x429   :  { %6163 = vmatprep.mubr.msk.f32.mxu1 %vm2414_vm7, %v3704_v12 }
 0x42a   :  { %6164 = vmatmul.mubr.msk.f32.gmra.mxu1 %vm2414_vm7, %v3705_v53 }
 0x42e   :  { %v6507_v30 = vpop.eup %6506 }
 0x42f   :  { %v3611_v54 = vadd.f32 1.0, %v6507_v30  ;;  %v3614_v37 = vmul.f32 -0.5, %v6507_v30  ;;  %v3617_v38 = vand.u32 2147483647, %v6507_v30 }
 0x430   :  { %v6509_v42 = vpop.eup %6508 }
 0x431   :  { %v3602_v14 = vadd.f32 1.0, %v6509_v42  ;;  %6510 = vlog2.f32 %v3611_v54  ;;  %v3605_v33 = vmul.f32 -0.5, %v6509_v42  ;;  %v3615_v5 = vadd.f32 1.0, %v3614_v37 }
 0x432   :  { %v3608_v35 = vand.u32 2147483647, %v6509_v42  ;;  %vm3618_vm9 = vcmp.lt.f32.partialorder %v3617_v38, 0.0004427343 }
 0x433   :  { %6512 = vlog2.f32 %v3602_v14  ;;  %v3606_v62 = vadd.f32 1.0, %v3605_v33  ;;  %v3616_v52 = vmul.f32 %v6507_v30, %v3615_v5 }
 0x434   :  { %vm3609_vm10 = vcmp.lt.f32.partialorder %v3608_v35, 0.0004427343 }
 0x435   :  { %v3607_v27 = vmul.f32 %v6509_v42, %v3606_v62 }
 0x438   :  { %v10159_v15 = vpop.f32.mrf.mxu1 }
 0x439   :  { %v3037_v32 = vmin.f32 %v10159_v15, 20.0  ;;  %vm2981_vm13 = vcmp.gt.f32.partialorder %v10159_v15, 20.0 }
 0x43a   :  { %v10162_v48 = vpop.f32.mrf.mxu1 }
 0x43b   :  { %v3146_v39 = vmul.f32 1.442695, %v3037_v32  ;;  %v3036_v24 = vmin.f32 %v10162_v48, 20.0  ;;  %vm2980_vm2 = vcmp.gt.f32.partialorder %v10162_v48, 20.0 }
 0x43d   :  { %6514 = vpow2.f32 %v3146_v39  ;;  %v3144_v25 = vmul.f32 1.442695, %v3036_v24 }
 0x43e   :  { %v6511_v51 = vpop.eup %6510 }
 0x43f   :  { %6516 = vpow2.f32 %v3144_v25  ;;  %v3613_v1 = vmul.f32 0.6931472, %v6511_v51 }
 0x440   :  { %v6513_v47 = vpop.eup %6512 }
 0x441   :  { %v3604_v55 = vmul.f32 0.6931472, %v6513_v47  ;;  %v3619_v10 = vsel %vm3618_vm9, %v3616_v52, %v3613_v1 }
 0x442   :  { %v3707_v56 = vsel %vm2979_vm12, %v10152_v28, %v3619_v10 }
 0x443   :  { %v3610_v63 = vsel %vm3609_vm10, %v3607_v27, %v3604_v55 }
 0x444   :  { %v3706_v20 = vsel %vm2978_vm11, %v2899_v49, %v3610_v63 }
 0x445   :  { %v10166_v45 = vpop.f32.mrf.mxu1  ;;  %6166 = vmatprep.mubr.msk.f32.mxu1 %vm2414_vm7, %v3706_v20 }
 0x446   :  { %6167 = vmatmul.mubr.msk.f32.gmra.mxu1 %vm2414_vm7, %v3707_v56  ;;  %v3039_v60 = vmin.f32 %v10166_v45, 20.0  ;;  %vm2983_vm5 = vcmp.gt.f32.partialorder %v10166_v45, 20.0 }
 0x447   :  { %v10171_v46 = vpop.f32.mrf.mxu1 }
 0x448   :  { %v3038_v6 = vmin.f32 %v10171_v46, 20.0  ;;  %v3150_v34 = vmul.f32 1.442695, %v3039_v60  ;;  %vm2982_vm3 = vcmp.gt.f32.partialorder %v10171_v46, 20.0 }
 0x449   :  { %v6093_v29 = vpop.f32.mrf.mxu1 }
 0x44a   :  { %v6515_v8 = vpop.eup %6514  ;;  %v3148_v22 = vmul.f32 1.442695, %v3038_v6  ;;  %v10180_v41 = vadd.f32 %v6093_v29, %v10176_v21 }
 0x44b   :  { %v3961_v40 = vpop.f32.mrf.mxu1  ;;  %v3629_v9 = vadd.f32 1.0, %v6515_v8  ;;  %v3632_v59 = vmul.f32 -0.5, %v6515_v8  ;;  %v3635_v32 = vand.u32 2147483647, %v6515_v8 }
 0x44c   :  { %v6517_v23 = vpop.eup %6516  ;;  %6518 = vpow2.f32 %v3148_v22  ;;  %v4297_v11 = vmin.f32 %v10180_v41, 20.0  ;;  %v10185_v28 = vadd.f32 %v10176_v21, %v3961_v40  ;;  %vm4241_vm8 = vcmp.gt.f32.partialorder %v10180_v41, 20.0 }
 0x44d   :  { %v6096_v0 = vpop.f32.mrf.mxu1  ;;  %v3620_v61 = vadd.f32 1.0, %v6517_v23  ;;  %6520 = vlog2.f32 %v3629_v9  ;;  %v3623_v50 = vmul.f32 -0.5, %v6517_v23  ;;  %v3633_v54 = vadd.f32 1.0, %v3632_v59 }
 0x44e   :  { %v4354_v18 = vmul.f32 1.442695, %v4297_v11  ;;  %v4296_v49 = vmin.f32 %v10185_v28, 20.0  ;;  %v10192_v36 = vadd.f32 %v6096_v0, %v10176_v21  ;;  %v3626_v37 = vand.u32 2147483647, %v6517_v23 }
 0x44f   :  { %v3971_v4 = vpop.f32.mrf.mxu1  ;;  %6522 = vlog2.f32 %v3620_v61  ;;  %v3624_v14 = vadd.f32 1.0, %v3623_v50  ;;  %v3634_v35 = vmul.f32 %v6515_v8, %v3633_v54  ;;  %vm10217_vm1 = vcmp.lt.f32.partialorder %v3635_v32, 0.0004427343 }
 0x450   :  { %6524 = vpow2.f32 %v4354_v18  ;;  %v10189_v17 = vadd.f32 %v10176_v21, %v3971_v4  ;;  %v4352_v57 = vmul.f32 1.442695, %v4296_v49  ;;  %v4299_v53 = vmin.f32 %v10192_v36, 20.0 }
 0x451   :  { %v6099_v16 = vpop.f32.mrf.mxu1  ;;  %6526 = vpow2.f32 %v3150_v34  ;;  %v3625_v52 = vmul.f32 %v6517_v23, %v3624_v14  ;;  %vm10213_vm0 = vcmp.lt.f32.partialorder %v3626_v37, 0.0004427343  ;;  %vm4240_vm9 = vcmp.gt.f32.partialorder %v10185_v28, 20.0 }
 0x452   :  { %v4298_v44 = vmin.f32 %v10189_v17, 20.0  ;;  %6528 = vpow2.f32 %v4352_v57  ;;  %v10199_v3 = vadd.f32 %v6099_v16, %v10176_v21  ;;  %v4358_v38 = vmul.f32 1.442695, %v4299_v53 }
 0x453   :  { %v3981_v19 = vpop.f32.mrf.mxu1  ;;  %vm4242_vm10 = vcmp.gt.f32.partialorder %v10189_v17, 20.0  ;;  %vm4243_vm12 = vcmp.gt.f32.partialorder %v10192_v36, 20.0 }
 0x454   :  { %v10203_v30 = vadd.f32 %v10176_v21, %v3981_v19  ;;  %v4356_v33 = vmul.f32 1.442695, %v4298_v44  ;;  %v4301_v5 = vmin.f32 %v10199_v3, 20.0 }
 0x455   :  { %v6102_v7 = vpop.f32.mrf.mxu1 }
 0x456   :  { %v4300_v51 = vmin.f32 %v10203_v30, 20.0  ;;  %v10211_v1 = vadd.f32 %v6102_v7, %v10176_v21  ;;  %v4362_v6 = vmul.f32 1.442695, %v4301_v5 }
 0x457   :  { %v3991_v26 = vpop.f32.mrf.mxu1 }
 0x458   :  { %v10225_v20 = vadd.f32 %v10176_v21, %v3991_v26  ;;  %v4360_v40 = vmul.f32 1.442695, %v4300_v51  ;;  %v4303_v11 = vmin.f32 %v10211_v1, 20.0 }
 0x459   :  { %v10194_v58 = vpop.eup %6518  ;;  %v6105_v43 = vpop.f32.mrf.mxu1 }
 0x45a   :  { %v3638_v2 = vadd.f32 1.0, %v10194_v58  ;;  %v6521_v31 = vpop.eup %6520  ;;  %v3641_v22 = vmul.f32 -0.5, %v10194_v58  ;;  %v10234_v9 = vadd.f32 %v6105_v43, %v10176_v21  ;;  %v4302_v4 = vmin.f32 %v10225_v20, 20.0 }
 0x45b   :  { %v4001_v13 = vpop.f32.mrf.mxu1  ;;  %v3631_v39 = vmul.f32 0.6931472, %v6521_v31  ;;  %v3644_v57 = vand.u32 2147483647, %v10194_v58  ;;  %v4366_v26 = vmul.f32 1.442695, %v4303_v11 }
 0x45c   :  { %v6523_v12 = vpop.eup %6522  ;;  %6530 = vlog2.f32 %v3638_v2  ;;  %v10239_v60 = vadd.f32 %v10176_v21, %v4001_v13  ;;  %v3642_v49 = vadd.f32 1.0, %v3641_v22  ;;  %v4364_v44 = vmul.f32 1.442695, %v4302_v4 }
 0x45d   :  { %v6108_v42 = vpop.f32.mrf.mxu1  ;;  %v10205_v24 = vpop.eup %6524  ;;  %v3622_v62 = vmul.f32 0.6931472, %v6523_v12  ;;  %6532 = vpow2.f32 %v4356_v33  ;;  %v3637_v56 = vsel %vm10217_vm1, %v3634_v35, %v3631_v39  ;;  %vm3645_vm4 = vcmp.lt.f32.partialorder %v3644_v57, 0.0004427343 }
 0x45e   :  { %v10221_v10 = vpop.eup %6526  ;;  %v4473_v63 = vadd.f32 1.0, %v10205_v24  ;;  %6534 = vpow2.f32 %v4358_v38  ;;  %v3709_v0 = vsel %vm2981_vm13, %v10159_v15, %v3637_v56  ;;  %v10248_v34 = vadd.f32 %v6108_v42, %v10176_v21 }
 0x45f   :  { %v4011_v25 = vpop.f32.mrf.mxu1  ;;  %v3628_v29 = vsel %vm10213_vm0, %v3625_v52, %v3622_v62  ;;  %v3647_v18 = vadd.f32 1.0, %v10221_v10  ;;  %v10254_v19 = vpop.eup %6528  ;;  %v4305_v15 = vmin.f32 %v10234_v9, 20.0  ;;  %v4304_v59 = vmin.f32 %v10239_v60, 20.0 }
 0x460   :  { %v3708_v23 = vsel %vm2980_vm2, %v10162_v48, %v3628_v29  ;;  %6536 = vlog2.f32 %v4473_v63  ;;  %v10251_v48 = vadd.f32 %v10176_v21, %v4011_v25  ;;  %v4307_v2 = vmin.f32 %v10248_v34, 20.0 }
 0x461   :  { %v6111_v47 = vpop.f32.mrf.mxu1  ;;  %6169 = vmatprep.mubr.msk.f32.mxu1 %vm2414_vm7, %v3708_v23  ;;  %6538 = vpow2.f32 %v4362_v6  ;;  %v3643_v42 = vmul.f32 %v10194_v58, %v3642_v49  ;;  %v4464_v14 = vadd.f32 1.0, %v10254_v19  ;;  %v4370_v37 = vmul.f32 1.442695, %v4305_v15 }
 0x462   :  { %6170 = vmatmul.mubr.msk.f32.gmra.mxu1 %vm2414_vm7, %v3709_v0  ;;  %6540 = vpow2.f32 %v4360_v40  ;;  %v10258_v7 = vadd.f32 %v6111_v47, %v10176_v21  ;;  %v4306_v31 = vmin.f32 %v10251_v48, 20.0  ;;  %v4476_v39 = vmul.f32 -0.5, %v10205_v24 }
 0x463   :  { %v4021_v8 = vpop.f32.mrf.mxu1  ;;  %6542 = vlog2.f32 %v3647_v18  ;;  %v4368_v5 = vmul.f32 1.442695, %v4304_v59  ;;  %v4374_v38 = vmul.f32 1.442695, %v4307_v2  ;;  %v3650_v58 = vmul.f32 -0.5, %v10221_v10 }
 0x464   :  { %v10266_v13 = vadd.f32 %v10176_v21, %v4021_v8  ;;  %v4309_v32 = vmin.f32 %v10258_v7, 20.0  ;;  %6544 = vlog2.f32 %v4464_v14  ;;  %v4372_v47 = vmul.f32 1.442695, %v4306_v31 }
 0x465   :  { %v6114_v61 = vpop.f32.mrf.mxu1  ;;  %6546 = vpow2.f32 %v4366_v26  ;;  %v4479_v63 = vand.u32 2147483647, %v10205_v24  ;;  %v4477_v8 = vadd.f32 1.0, %v4476_v39  ;;  %v3651_v4 = vadd.f32 1.0, %v3650_v58 }
 0x466   :  { %v10269_v12 = vadd.f32 %v6114_v61, %v10176_v21  ;;  %v4308_v51 = vmin.f32 %v10266_v13, 20.0  ;;  %6548 = vpow2.f32 %v4364_v44  ;;  %v4378_v56 = vmul.f32 1.442695, %v4309_v32 }
 0x467   :  { %v4031_v16 = vpop.f32.mrf.mxu1  ;;  %6550 = vpow2.f32 %v4370_v37  ;;  %vm10303_vm6 = vcmp.lt.f32.partialorder %v4479_v63, 0.0004427343  ;;  %v3652_v32 = vmul.f32 %v10221_v10, %v3651_v4  ;;  %vm4245_vm0 = vcmp.gt.f32.partialorder %v10199_v3, 20.0 }
 0x468   :  { %v10275_v33 = vadd.f32 %v10176_v21, %v4031_v16  ;;  %v4311_v52 = vmin.f32 %v10269_v12, 20.0  ;;  %6552 = vpow2.f32 %v4368_v5  ;;  %v4376_v23 = vmul.f32 1.442695, %v4308_v51 }
 0x469   :  { %v6117_v43 = vpop.f32.mrf.mxu1  ;;  %v6531_v50 = vpop.eup %6530  ;;  %6554 = vpow2.f32 %v4374_v38  ;;  %v3653_v16 = vand.u32 2147483647, %v10221_v10  ;;  %vm4244_vm1 = vcmp.gt.f32.partialorder %v10203_v30, 20.0 }
 0x46a   :  { %v3640_v54 = vmul.f32 0.6931472, %v6531_v50  ;;  %v10280_v35 = vpop.eup %6532  ;;  %v4310_v6 = vmin.f32 %v10275_v33, 20.0  ;;  %v10293_v22 = vadd.f32 %v6117_v43, %v10176_v21  ;;  %6556 = vpow2.f32 %v4372_v47 }
 0x46b   :  { %v4041_v53 = vpop.f32.mrf.mxu1  ;;  %v10289_v29 = vpop.eup %6534  ;;  %v4482_v0 = vadd.f32 1.0, %v10280_v35  ;;  %v4382_v18 = vmul.f32 1.442695, %v4311_v52  ;;  %6558 = vpow2.f32 %v4378_v56  ;;  %v4478_v50 = vmul.f32 %v10205_v24, %v4477_v8 }
 0x46c   :  { %v3646_v62 = vsel %vm3645_vm4, %v3643_v42, %v3640_v54  ;;  %v10297_v11 = vadd.f32 %v10176_v21, %v4041_v53  ;;  %v4380_v26 = vmul.f32 1.442695, %v4310_v6  ;;  %v4313_v44 = vmin.f32 %v10293_v22, 20.0 }
 0x46d   :  { %v6120_v25 = vpop.f32.mrf.mxu1  ;;  %v3710_v55 = vsel %vm2982_vm3, %v10171_v46, %v3646_v62  ;;  %v4467_v46 = vmul.f32 -0.5, %v10254_v19  ;;  %v6537_v61 = vpop.eup %6536  ;;  %6560 = vlog2.f32 %v4482_v0  ;;  %vm3654_vm14 = vcmp.lt.f32.partialorder %v3653_v16, 0.0004427343 }
 0x46e   :  { %6172 = vmatprep.mubr.msk.f32.mxu1 %vm2414_vm7, %v3710_v55  ;;  %v10301_v15 = vpop.eup %6538  ;;  %v10308_v59 = vadd.f32 %v6120_v25, %v10176_v21  ;;  %v4475_v54 = vmul.f32 0.6931472, %v6537_v61  ;;  %6562 = vpow2.f32 %v4376_v23  ;;  %v4312_v42 = vmin.f32 %v10297_v11, 20.0 }
 0x46f   :  { %v4051_v27 = vpop.f32.mrf.mxu1  ;;  %v10310_v43 = vpop.eup %6540  ;;  %v4468_v2 = vadd.f32 1.0, %v4467_v46  ;;  %6564 = vpow2.f32 %v4382_v18  ;;  %v4470_v25 = vand.u32 2147483647, %v10254_v19  ;;  %v4386_v62 = vmul.f32 1.442695, %v4313_v44 }
 0x470   :  { %v6543_v53 = vpop.eup %6542  ;;  %v10316_v14 = vadd.f32 %v10176_v21, %v4051_v27  ;;  %6566 = vpow2.f32 %v4380_v26  ;;  %v4315_v5 = vmin.f32 %v10308_v59, 20.0  ;;  %v4491_v47 = vadd.f32 1.0, %v10289_v29 }
 0x471   :  { %v6123_v40 = vpop.f32.mrf.mxu1  ;;  %v3649_v37 = vmul.f32 0.6931472, %v6543_v53  ;;  %v4469_v51 = vmul.f32 %v10254_v19, %v4468_v2  ;;  %v6545_v52 = vpop.eup %6544  ;;  %v4481_v10 = vsel %vm10303_vm6, %v4478_v50, %v4475_v54  ;;  %v4384_v55 = vmul.f32 1.442695, %v4312_v42 }
 0x472   :  { %v10320_v39 = vadd.f32 %v6123_v40, %v10176_v21  ;;  %v4314_v27 = vmin.f32 %v10316_v14, 20.0  ;;  %v10332_v56 = vpop.eup %6546  ;;  %v4466_v6 = vmul.f32 0.6931472, %v6545_v52  ;;  %v4485_v8 = vmul.f32 -0.5, %v10280_v35 }
 0x473   :  { %v4061_v49 = vpop.f32.mrf.mxu1  ;;  %v3655_v38 = vsel %vm3654_vm14, %v3652_v32, %v3649_v37  ;;  %6568 = vlog2.f32 %v4491_v47  ;;  %v10337_v46 = vpop.eup %6548  ;;  %v4390_v23 = vmul.f32 1.442695, %v4315_v5  ;;  %vm4471_vm15 = vcmp.lt.f32.partialorder %v4470_v25, 0.0004427343 }
 0x474   :  { %v3711_v63 = vsel %vm2983_vm5, %v10166_v45, %v3655_v38  ;;  %v4317_v19 = vmin.f32 %v10320_v39, 20.0  ;;  %v10340_v0 = vadd.f32 %v10176_v21, %v4061_v49  ;;  %v10345_v61 = vpop.eup %6550  ;;  %6570 = vpow2.f32 %v4386_v62 }
 0x475   :  { %v6126_v31 = vpop.f32.mrf.mxu1  ;;  %6173 = vmatmul.mubr.msk.f32.gmra.mxu1 %vm2414_vm7, %v3711_v63  ;;  %v4472_v18 = vsel %vm4471_vm15, %v4469_v51, %v4466_v6  ;;  %v10349_v16 = vpop.eup %6552  ;;  %v4969_v57 = vsel %vm4241_vm8, %v10180_v41, %v4481_v10  ;;  %v4388_v26 = vmul.f32 1.442695, %v4314_v27  ;;  %v4500_v50 = vadd.f32 1.0, %v10310_v43 }
 0x476   :  { %v10343_v45 = vadd.f32 %v6126_v31, %v10176_v21  ;;  %v4968_v49 = vsel %vm4240_vm9, %v10185_v28, %v4472_v18  ;;  %v10354_v44 = vpop.eup %6554  ;;  %6572 = vpow2.f32 %v4384_v55  ;;  %v4394_v2 = vmul.f32 1.442695, %v4317_v19 }
 0x477   :  { %v4071_v24 = vpop.f32.mrf.mxu1  ;;  %6191 = vmatprep.mubr.msk.f32.mxu0 %vm2414_vm7, %v4968_v49  ;;  %v4486_v31 = vadd.f32 1.0, %v4485_v8  ;;  %v4488_v53 = vand.u32 2147483647, %v10280_v35  ;;  %v10358_v42 = vpop.eup %6556  ;;  %6574 = vpow2.f32 %v4390_v23  ;;  %v4316_v41 = vmin.f32 %v10340_v0, 20.0 }
 0x478   :  { %v4319_v37 = vmin.f32 %v10343_v45, 20.0  ;;  %6192 = vmatmul.mubr.msk.f32.vlgmr.msra.gmra.mxu0 %vm2414_vm7, %v4969_v57  ;;  %v10364_v28 = vadd.f32 %v10176_v21, %v4071_v24  ;;  %v10366_v32 = vpop.eup %6558  ;;  %v4494_v25 = vmul.f32 -0.5, %v10289_v29  ;;  %6576 = vlog2.f32 %v4500_v50 }
 0x479   :  { %v6129_v58 = vpop.f32.mrf.mxu1  ;;  %v4509_v62 = vadd.f32 1.0, %v10301_v15  ;;  %6578 = vpow2.f32 %v4388_v26  ;;  %vm4489_vm11 = vcmp.lt.f32.partialorder %v4488_v53, 0.0004427343  ;;  %v4392_v55 = vmul.f32 1.442695, %v4316_v41 }
 0x47a   :  { %v10369_v5 = vadd.f32 %v6129_v58, %v10176_v21  ;;  %v6561_v38 = vpop.eup %6560  ;;  %6580 = vpow2.f32 %v4394_v2  ;;  %v4487_v58 = vmul.f32 %v10280_v35, %v4486_v31  ;;  %v4398_v27 = vmul.f32 1.442695, %v4319_v37 }
 0x47b   :  { %v4081_v40 = vpop.f32.mrf.mxu1  ;;  %v10377_v24 = vpop.eup %6562  ;;  %v4484_v52 = vmul.f32 0.6931472, %v6561_v38  ;;  %v4318_v63 = vmin.f32 %v10364_v28, 20.0  ;;  %6582 = vlog2.f32 %v4509_v62  ;;  %v4518_v23 = vadd.f32 1.0, %v10337_v46 }
 0x47c   :  { %v10375_v51 = vadd.f32 %v10176_v21, %v4081_v40  ;;  %v10380_v10 = vpop.eup %6564  ;;  %v4321_v8 = vmin.f32 %v10369_v5, 20.0  ;;  %v4495_v40 = vadd.f32 1.0, %v4494_v25  ;;  %v4497_v18 = vand.u32 2147483647, %v10289_v29 }
 0x47d   :  { %v6132_v4 = vpop.f32.mrf.mxu1  ;;  %v10383_v19 = vpop.eup %6566  ;;  %v4490_v6 = vsel %vm4489_vm11, %v4487_v58, %v4484_v52  ;;  %v4503_v26 = vmul.f32 -0.5, %v10310_v43  ;;  %6584 = vlog2.f32 %v4518_v23  ;;  %v4396_v31 = vmul.f32 1.442695, %v4318_v63 }
 0x47e   :  { %v4970_v35 = vsel %vm4242_vm10, %v10189_v17, %v4490_v6  ;;  %v4320_v57 = vmin.f32 %v10375_v51, 20.0  ;;  %v10397_v50 = vadd.f32 %v6132_v4, %v10176_v21  ;;  %6586 = vpow2.f32 %v4392_v55 }
 0x47f   :  { %v4091_v54 = vpop.f32.mrf.mxu1  ;;  %6194 = vmatprep.mubr.msk.f32.mxu0 %vm2414_vm7, %v4970_v35  ;;  %v4527_v17 = vadd.f32 1.0, %v10332_v56  ;;  %v4402_v53 = vmul.f32 1.442695, %v4321_v8  ;;  %v4496_v37 = vmul.f32 %v10289_v29, %v4495_v40  ;;  %v4512_v25 = vmul.f32 -0.5, %v10301_v15 }
 0x480   :  { %v6569_v2 = vpop.eup %6568  ;;  %6588 = vpow2.f32 %v4398_v27  ;;  %vm4498_vm13 = vcmp.lt.f32.partialorder %v4497_v18, 0.0004427343  ;;  %v4400_v4 = vmul.f32 1.442695, %v4320_v57  ;;  %v4504_v38 = vadd.f32 1.0, %v4503_v26 }
 0x481   :  { %v6135_v47 = vpop.f32.mrf.mxu1  ;;  %v4493_v41 = vmul.f32 0.6931472, %v6569_v2  ;;  %v10403_v62 = vpop.eup %6570  ;;  %v4323_v55 = vmin.f32 %v10397_v50, 20.0  ;;  %v10409_v63 = vadd.f32 %v10176_v21, %v4091_v54  ;;  %6590 = vlog2.f32 %v4527_v17 }
 0x482   :  { %6592 = vpow2.f32 %v4396_v31  ;;  %v4506_v27 = vand.u32 2147483647, %v10310_v43  ;;  %v4536_v8 = vadd.f32 1.0, %v10349_v16  ;;  %v4513_v54 = vadd.f32 1.0, %v4512_v25 }
 0x483   :  { %v10393_v49 = vpop.f32.mrf.mxu1  ;;  %v4499_v58 = vsel %vm4498_vm13, %v4496_v37, %v4493_v41  ;;  %v10411_v6 = vpop.eup %6572  ;;  %6594 = vpow2.f32 %v4402_v53  ;;  %v4521_v23 = vmul.f32 -0.5, %v10337_v46  ;;  %v10424_v35 = vadd.f32 %v6135_v47, %v10176_v21 }
 0x484   :  { %v4971_v29 = vsel %vm4243_vm12, %v10192_v36, %v4499_v58  ;;  %v10419_v40 = vpop.eup %6574  ;;  %6596 = vpow2.f32 %v4400_v4  ;;  %v4505_v57 = vmul.f32 %v10310_v43, %v4504_v38  ;;  %v4515_v36 = vand.u32 2147483647, %v10301_v15 }
 0x485   :  { %v10405_v52 = vpop.f32.mrf.mxu1  ;;  %6195 = vmatmul.mubr.msk.f32.gmra.mxu0 %vm2414_vm7, %v4971_v29  ;;  %11578 = vst [vmem:[#allocation2_spill] sm:$0xff] %v10424_v35  ;;  %v6577_v18 = vpop.eup %6576  ;;  %v4545_v26 = vadd.f32 1.0, %v10345_v61  ;;  %v4406_v53 = vmul.f32 1.442695, %v4323_v55  ;;  %v4322_v41 = vmin.f32 %v10409_v63, 20.0  ;;  %6598 = vlog2.f32 %v4536_v8 }
 0x486   :  { %v10429_v31 = vpop.eup %6578  ;;  %v4502_v17 = vmul.f32 0.6931472, %v6577_v18  ;;  %vm4507_vm2 = vcmp.lt.f32.partialorder %v4506_v27, 0.0004427343  ;;  %v4530_v47 = vmul.f32 -0.5, %v10332_v56  ;;  %v4514_v4 = vmul.f32 %v10301_v15, %v4513_v54 }
 0x487   :  { %v4111_v2 = vpop.f32.mrf.mxu1  ;;  %v10432_v37 = vpop.eup %6580  ;;  %6600 = vlog2.f32 %v4545_v26  ;;  %v4522_v38 = vadd.f32 1.0, %v4521_v23  ;;  %v4325_v58 = vmin.f32 %v10424_v35, 20.0  ;;  %vm10439_vm3 = vcmp.lt.f32.partialorder %v4515_v36, 0.0004427343 }
 0x488   :  { %v6583_v43 = vpop.eup %6582  ;;  %v4508_v25 = vsel %vm4507_vm2, %v4505_v57, %v4502_v17  ;;  %v4524_v18 = vand.u32 2147483647, %v10337_v46  ;;  %vm4247_vm4 = vcmp.gt.f32.partialorder %v10211_v1, 20.0  ;;  %6602 = vpow2.f32 %v4406_v53 }
 0x489   :  { %v4972_v55 = vsel %vm4244_vm1, %v10203_v30, %v4508_v25  ;;  %v4511_v29 = vmul.f32 0.6931472, %v6583_v43  ;;  %v6141_v27 = vpop.f32.mrf.mxu1  ;;  %v4404_v57 = vmul.f32 1.442695, %v4322_v41  ;;  %v10448_v15 = vadd.f32 %v10176_v21, %v10393_v49 }
 0x48a   :  { %6197 = vmatprep.mubr.msk.f32.mxu0 %vm2414_vm7, %v4972_v55  ;;  %v4554_v30 = vadd.f32 1.0, %v10358_v42  ;;  %v6585_v54 = vpop.eup %6584  ;;  %v4531_v36 = vadd.f32 1.0, %v4530_v47  ;;  %v4533_v26 = vand.u32 2147483647, %v10332_v56  ;;  %v4539_v17 = vmul.f32 -0.5, %v10349_v16 }
 0x48b   :  { %11581 = vst [vmem:[#allocation4_spill] sm:$0xff] %v10448_v15  ;;  %v4517_v23 = vsel %vm10439_vm3, %v4514_v4, %v4511_v29  ;;  %v10455_v43 = vpop.eup %6586  ;;  %v4520_v41 = vmul.f32 0.6931472, %v6585_v54  ;;  %v4523_v49 = vmul.f32 %v10337_v46, %v4522_v38  ;;  %v4410_v25 = vmul.f32 1.442695, %v4325_v58  ;;  %v4121_v4 = vpop.f32.mrf.mxu1 }
 0x48c   :  { %v4973_v53 = vsel %vm4245_vm0, %v10199_v3, %v4517_v23  ;;  %vm4246_vm5 = vcmp.gt.f32.partialorder %v10225_v20, 20.0  ;;  %vm4525_vm6 = vcmp.lt.f32.partialorder %v4524_v18, 0.0004427343  ;;  %v4548_v47 = vmul.f32 -0.5, %v10345_v61 }
 0x48d   :  { %6198 = vmatmul.mubr.msk.f32.gmra.mxu0 %vm2414_vm7, %v4973_v53  ;;  %6604 = vlog2.f32 %v4554_v30  ;;  %v10464_v55 = vpop.eup %6588  ;;  %vm4248_vm14 = vcmp.gt.f32.partialorder %v10239_v60, 20.0  ;;  %v4526_v29 = vsel %vm4525_vm6, %v4523_v49, %v4520_v41  ;;  %v4324_v3 = vmin.f32 %v10448_v15, 20.0 }
 0x48e   :  { %v10470_v46 = vadd.f32 %v10405_v52, %v10176_v21  ;;  %v4563_v38 = vadd.f32 1.0, %v10354_v44  ;;  %v6591_v58 = vpop.eup %6590  ;;  %vm4249_vm15 = vcmp.gt.f32.partialorder %v10234_v9, 20.0  ;;  %6606 = vpow2.f32 %v4404_v57 }
 0x48f   :  { %v4974_v8 = vsel %vm4246_vm5, %v10225_v20, %v4526_v29  ;;  %vm10475_vm8 = vcmp.lt.f32.partialorder %v4533_v26, 0.0004427343  ;;  %v4540_v30 = vadd.f32 1.0, %v4539_v17  ;;  %v10479_v54 = vpop.eup %6592  ;;  %6608 = vpow2.f32 %v4410_v25  ;;  %v6144_v17 = vpop.f32.mrf.mxu1 }
 0x490   :  { %11582 = vst [vmem:[#allocation3_spill] sm:$0xff] %v10470_v46  ;;  %6200 = vmatprep.mubr.msk.f32.mxu0 %vm2414_vm7, %v4974_v8  ;;  %v4529_v52 = vmul.f32 0.6931472, %v6591_v58  ;;  %v4532_v23 = vmul.f32 %v10332_v56, %v4531_v36  ;;  %v10484_v53 = vadd.f32 %v10176_v21, %v4111_v2  ;;  %v10486_v41 = vpop.eup %6594  ;;  %v4542_v20 = vand.u32 2147483647, %v10349_v16 }
 0x491   :  { %v4549_v57 = vadd.f32 1.0, %v4548_v47  ;;  %6610 = vlog2.f32 %v4563_v38  ;;  %v4572_v26 = vadd.f32 1.0, %v10377_v24  ;;  %v10490_v49 = vpop.eup %6596  ;;  %v4408_v29 = vmul.f32 1.442695, %v4324_v3 }
 0x492   :  { %v4535_v25 = vsel %vm10475_vm8, %v4532_v23, %v4529_v52  ;;  %v4327_v56 = vmin.f32 %v10470_v46, 20.0  ;;  %v4551_v2 = vand.u32 2147483647, %v10345_v61  ;;  %v6599_v36 = vpop.eup %6598  ;;  %v4541_v47 = vmul.f32 %v10349_v16, %v4540_v30  ;;  %v4131_v30 = vpop.f32.mrf.mxu1 }
 0x493   :  { %v4975_v58 = vsel %vm4247_vm4, %v10211_v1, %v4535_v25  ;;  %v4557_v38 = vmul.f32 -0.5, %v10358_v42  ;;  %v10502_v8 = vadd.f32 %v6141_v27, %v10176_v21  ;;  %v4538_v3 = vmul.f32 0.6931472, %v6599_v36 }
 0x494   :  { %v6601_v35 = vpop.eup %6600  ;;  %6201 = vmatmul.mubr.msk.f32.gmra.mxu0 %vm2414_vm7, %v4975_v58  ;;  %v4326_v18 = vmin.f32 %v10484_v53, 20.0  ;;  %v4566_v52 = vmul.f32 -0.5, %v10354_v44  ;;  %6612 = vlog2.f32 %v4572_v26  ;;  %vm4543_vm9 = vcmp.lt.f32.partialorder %v4542_v20, 0.0004427343 }
 0x495   :  { %v4547_v23 = vmul.f32 0.6931472, %v6601_v35  ;;  %v4550_v1 = vmul.f32 %v10345_v61, %v4549_v57  ;;  %v4581_v16 = vadd.f32 1.0, %v10366_v32  ;;  %v4544_v25 = vsel %vm4543_vm9, %v4541_v47, %v4538_v3  ;;  %v10510_v15 = vpop.eup %6602  ;;  %v6147_v47 = vpop.f32.mrf.mxu1 }
 0x496   :  { %v4414_v46 = vmul.f32 1.442695, %v4327_v56  ;;  %vm4552_vm10 = vcmp.lt.f32.partialorder %v4551_v2, 0.0004427343  ;;  %v4560_v27 = vand.u32 2147483647, %v10358_v42  ;;  %v4976_v36 = vsel %vm4248_vm14, %v10239_v60, %v4544_v25 }
 0x497   :  { %v4553_v58 = vsel %vm4552_vm10, %v4550_v1, %v4547_v23  ;;  %v4558_v26 = vadd.f32 1.0, %v4557_v38  ;;  %v4329_v35 = vmin.f32 %v10502_v8, 20.0  ;;  %6203 = vmatprep.mubr.msk.f32.mxu0 %vm2414_vm7, %v4976_v36  ;;  %v4412_v20 = vmul.f32 1.442695, %v4326_v18 }
 0x498   :  { %v4977_v61 = vsel %vm4249_vm15, %v10234_v9, %v4553_v58  ;;  %v4567_v57 = vadd.f32 1.0, %v4566_v52  ;;  %6614 = vlog2.f32 %v4581_v16  ;;  %v10522_v56 = vadd.f32 %v10176_v21, %v4121_v4 }
 0x499   :  { %6616 = vpow2.f32 %v4408_v29  ;;  %6204 = vmatmul.mubr.msk.f32.gmra.mxu0 %vm2414_vm7, %v4977_v61  ;;  %v4575_v60 = vmul.f32 -0.5, %v10377_v24  ;;  %v4590_v2 = vadd.f32 1.0, %v10383_v19  ;;  %vm4251_vm11 = vcmp.gt.f32.partialorder %v10248_v34, 20.0 }
 0x49a   :  { %v6605_v38 = vpop.eup %6604  ;;  %vm4250_vm12 = vcmp.gt.f32.partialorder %v10251_v48, 20.0  ;;  %6618 = vpow2.f32 %v4414_v46  ;;  %vm10528_vm13 = vcmp.lt.f32.partialorder %v4560_v27, 0.0004427343  ;;  %v4559_v3 = vmul.f32 %v10358_v42, %v4558_v26  ;;  %v4141_v27 = vpop.f32.mrf.mxu1 }
 0x49b   :  { %v4556_v29 = vmul.f32 0.6931472, %v6605_v38  ;;  %v4418_v4 = vmul.f32 1.442695, %v4329_v35  ;;  %v10534_v18 = vadd.f32 %v6144_v17, %v10176_v21  ;;  %v10536_v52 = vpop.eup %6606  ;;  %vm4252_vm0 = vcmp.gt.f32.partialorder %v10266_v13, 20.0 }
 0x49c   :  { %6620 = vpow2.f32 %v4412_v20  ;;  %v4568_v23 = vmul.f32 %v10354_v44, %v4567_v57  ;;  %v4569_v46 = vand.u32 2147483647, %v10354_v44  ;;  %v4584_v1 = vmul.f32 -0.5, %v10366_v32  ;;  %v10542_v16 = vpop.eup %6608 }
 0x49d   :  { %v4562_v42 = vsel %vm10528_vm13, %v4559_v3, %v4556_v29  ;;  %v4328_v25 = vmin.f32 %v10522_v56, 20.0  ;;  %v4576_v17 = vadd.f32 1.0, %v4575_v60  ;;  %6622 = vlog2.f32 %v4590_v2  ;;  %v6150_v3 = vpop.f32.mrf.mxu1 }
 0x49e   :  { %v6611_v36 = vpop.eup %6610  ;;  %v4978_v58 = vsel %vm4250_vm12, %v10251_v48, %v4562_v42  ;;  %v4578_v26 = vand.u32 2147483647, %v10377_v24  ;;  %v10552_v44 = vadd.f32 %v10176_v21, %v4131_v30  ;;  %v4599_v35 = vadd.f32 1.0, %v10380_v10 }
 0x49f   :  { %6206 = vmatprep.mubr.msk.f32.mxu0 %vm2414_vm7, %v4978_v58  ;;  %6624 = vpow2.f32 %v4418_v4  ;;  %v4565_v61 = vmul.f32 0.6931472, %v6611_v36  ;;  %v4331_v20 = vmin.f32 %v10534_v18, 20.0  ;;  %v10558_v57 = vadd.f32 %v6147_v47, %v10176_v21 }
 0x4a0   :  { %vm4253_vm1 = vcmp.gt.f32.partialorder %v10258_v7, 20.0  ;;  %vm4570_vm2 = vcmp.lt.f32.partialorder %v4569_v46, 0.0004427343  ;;  %v4585_v48 = vadd.f32 1.0, %v4584_v1  ;;  %6626 = vlog2.f32 %v4599_v35 }
 0x4a1   :  { %v4608_v60 = vadd.f32 1.0, %v10411_v6  ;;  %v6613_v30 = vpop.eup %6612  ;;  %v4571_v2 = vsel %vm4570_vm2, %v4568_v23, %v4565_v61  ;;  %v4416_v38 = vmul.f32 1.442695, %v4328_v25  ;;  %v4577_v9 = vmul.f32 %v10377_v24, %v4576_v17 }
 0x4a2   :  { %v4593_v29 = vmul.f32 -0.5, %v10383_v19  ;;  %v4979_v47 = vsel %vm4251_vm11, %v10248_v34, %v4571_v2  ;;  %v4574_v4 = vmul.f32 0.6931472, %v6613_v30  ;;  %vm4579_vm3 = vcmp.lt.f32.partialorder %v4578_v26, 0.0004427343 }
 0x4a3   :  { %v4330_v46 = vmin.f32 %v10552_v44, 20.0  ;;  %6207 = vmatmul.mubr.msk.f32.gmra.mxu0 %vm2414_vm7, %v4979_v47  ;;  %v4422_v1 = vmul.f32 1.442695, %v4331_v20  ;;  %v4587_v42 = vand.u32 2147483647, %v10366_v32  ;;  %v4333_v23 = vmin.f32 %v10558_v57, 20.0  ;;  %v4151_v20 = vpop.f32.mrf.mxu1 }
 0x4a4   :  { %6628 = vlog2.f32 %v4608_v60  ;;  %v4580_v24 = vsel %vm4579_vm3, %v4577_v9, %v4574_v4  ;;  %v4586_v25 = vmul.f32 %v10366_v32, %v4585_v48  ;;  %v10573_v17 = vadd.f32 %v10176_v21, %v4141_v27 }
 0x4a5   :  { %v4617_v34 = vadd.f32 1.0, %v10403_v62  ;;  %v6615_v36 = vpop.eup %6614  ;;  %vm4254_vm4 = vcmp.gt.f32.partialorder %v10275_v33, 20.0  ;;  %v4980_v58 = vsel %vm4252_vm0, %v10266_v13, %v4580_v24  ;;  %v4594_v26 = vadd.f32 1.0, %v4593_v29  ;;  %v6153_v24 = vpop.f32.mrf.mxu1 }
 0x4a6   :  { %v4596_v35 = vand.u32 2147483647, %v10383_v19  ;;  %v4602_v61 = vmul.f32 -0.5, %v10380_v10  ;;  %v10582_v60 = vpop.eup %6616  ;;  %6209 = vmatprep.mubr.msk.f32.mxu0 %vm2414_vm7, %v4980_v58  ;;  %v4583_v32 = vmul.f32 0.6931472, %v6615_v36  ;;  %v4611_v48 = vmul.f32 -0.5, %v10411_v6 }
 0x4a7   :  { %v4420_v27 = vmul.f32 1.442695, %v4330_v46  ;;  %6630 = vlog2.f32 %v4617_v34  ;;  %v10586_v30 = vpop.eup %6618  ;;  %vm4588_vm5 = vcmp.lt.f32.partialorder %v4587_v42, 0.0004427343  ;;  %v4426_v13 = vmul.f32 1.442695, %v4333_v23 }
 0x4a8   :  { %6632 = vpow2.f32 %v4416_v38  ;;  %v4605_v2 = vand.u32 2147483647, %v10380_v10  ;;  %vm4255_vm6 = vcmp.gt.f32.partialorder %v10269_v12, 20.0  ;;  %v4589_v9 = vsel %vm4588_vm5, %v4586_v25, %v4583_v32 }
 0x4a9   :  { %v4332_v29 = vmin.f32 %v10573_v17, 20.0  ;;  %v10592_v47 = vadd.f32 %v6150_v3, %v10176_v21  ;;  %v4626_v4 = vadd.f32 1.0, %v10429_v31  ;;  %v10595_v46 = vpop.eup %6620  ;;  %6634 = vpow2.f32 %v4422_v1 }
 0x4aa   :  { %v4981_v38 = vsel %vm4253_vm1, %v10258_v7, %v4589_v9  ;;  %vm10600_vm14 = vcmp.lt.f32.partialorder %v4596_v35, 0.0004427343  ;;  %v4603_v23 = vadd.f32 1.0, %v4602_v61  ;;  %v6623_v25 = vpop.eup %6622  ;;  %6636 = vpow2.f32 %v4420_v27 }
 0x4ab   :  { %6210 = vmatmul.mubr.msk.f32.gmra.mxu0 %vm2414_vm7, %v4981_v38  ;;  %v4595_v3 = vmul.f32 %v10383_v19, %v4594_v26  ;;  %v4612_v34 = vadd.f32 1.0, %v4611_v48  ;;  %v4620_v36 = vmul.f32 -0.5, %v10403_v62  ;;  %vm4256_vm15 = vcmp.gt.f32.partialorder %v10297_v11, 20.0 }
 0x4ac   :  { %v4592_v1 = vmul.f32 0.6931472, %v6623_v25  ;;  %v4614_v7 = vand.u32 2147483647, %v10411_v6  ;;  %6638 = vlog2.f32 %v4626_v4  ;;  %v4635_v58 = vadd.f32 1.0, %v10419_v40  ;;  %v10610_v35 = vpop.eup %6624  ;;  %v4161_v4 = vpop.f32.mrf.mxu1 }
 0x4ad   :  { %6640 = vpow2.f32 %v4426_v13  ;;  %vm10612_vm8 = vcmp.lt.f32.partialorder %v4605_v2, 0.0004427343  ;;  %v4424_v32 = vmul.f32 1.442695, %v4332_v29  ;;  %v4335_v19 = vmin.f32 %v10592_v47, 20.0  ;;  %v6627_v26 = vpop.eup %6626 }
 0x4ae   :  { %v4598_v27 = vsel %vm10600_vm14, %v4595_v3, %v4592_v1  ;;  %v4604_v48 = vmul.f32 %v10380_v10, %v4603_v23  ;;  %v10621_v9 = vadd.f32 %v10176_v21, %v4151_v20  ;;  %6642 = vlog2.f32 %v4635_v58  ;;  %v10637_v21 = vld [vmem:[%s11459_s4] ss:$0 sm:$0xff] }
 0x4af   :  { %vm4257_vm9 = vcmp.gt.f32.partialorder %v10293_v22, 20.0  ;;  %v4982_v13 = vsel %vm4254_vm4, %v10275_v33, %v4598_v27  ;;  %v4601_v2 = vmul.f32 0.6931472, %v6627_v26  ;;  %v4621_v29 = vadd.f32 1.0, %v4620_v36 }
 0x4b0   :  { %v4629_v38 = vmul.f32 -0.5, %v10429_v31  ;;  %6212 = vmatprep.mubr.msk.f32.mxu0 %vm2414_vm7, %v4982_v13  ;;  %v4613_v42 = vmul.f32 %v10411_v6, %v4612_v34  ;;  %vm10630_vm10 = vcmp.lt.f32.partialorder %v4614_v7, 0.0004427343  ;;  %v10640_v20 = vadd.f32 %v10637_v21, %v6153_v24  ;;  %v6156_v7 = vpop.f32.mrf.mxu1 }
 0x4b1   :  { %v4644_v33 = vadd.f32 1.0, %v10455_v43  ;;  %v6629_v23 = vpop.eup %6628  ;;  %v4607_v25 = vsel %vm10612_vm8, %v4604_v48, %v4601_v2  ;;  %6644 = vpow2.f32 %v4424_v32  ;;  %v4430_v6 = vmul.f32 1.442695, %v4335_v19 }
 0x4b2   :  { %v4623_v3 = vand.u32 2147483647, %v10403_v62  ;;  %v4983_v34 = vsel %vm4255_vm6, %v10269_v12, %v4607_v25  ;;  %v4610_v36 = vmul.f32 0.6931472, %v6629_v23  ;;  %v4334_v1 = vmin.f32 %v10621_v9, 20.0  ;;  %v4171_v10 = vpop.f32.mrf.mxu1 }
 0x4b3   :  { %v4638_v24 = vmul.f32 -0.5, %v10419_v40  ;;  %6213 = vmatmul.mubr.msk.f32.gmra.mxu0 %vm2414_vm7, %v4983_v34  ;;  %v4622_v58 = vmul.f32 %v10403_v62, %v4621_v29  ;;  %v4630_v61 = vadd.f32 1.0, %v4629_v38  ;;  %v10654_v32 = vadd.f32 %v10637_v21, %v4161_v4 }
 0x4b4   :  { %6646 = vlog2.f32 %v4644_v33  ;;  %v6631_v19 = vpop.eup %6630  ;;  %vm4258_vm11 = vcmp.gt.f32.partialorder %v10316_v14, 20.0  ;;  %v4616_v12 = vsel %vm10630_vm10, %v4613_v42, %v4610_v36  ;;  %v4632_v26 = vand.u32 2147483647, %v10429_v31 }
 0x4b5   :  { %v4337_v27 = vmin.f32 %v10640_v20, 20.0  ;;  %v4653_v48 = vadd.f32 1.0, %v10432_v37  ;;  %v10662_v13 = vpop.eup %6632  ;;  %v4984_v62 = vsel %vm4256_vm15, %v10297_v11, %v4616_v12  ;;  %v4619_v4 = vmul.f32 0.6931472, %v6631_v19 }
 0x4b6   :  { %v4647_v2 = vmul.f32 -0.5, %v10455_v43  ;;  %v10669_v29 = vadd.f32 %v10637_v21, %v6156_v7  ;;  %vm4259_vm12 = vcmp.gt.f32.partialorder %v10308_v59, 20.0  ;;  %6215 = vmatprep.mubr.msk.f32.mxu0 %vm2414_vm7, %v4984_v62  ;;  %vm4624_vm13 = vcmp.lt.f32.partialorder %v4623_v3, 0.0004427343  ;;  %v10673_v33 = vpop.eup %6634 }
 0x4b7   :  { %v4428_v38 = vmul.f32 1.442695, %v4334_v1  ;;  %v4639_v42 = vadd.f32 1.0, %v4638_v24  ;;  %6648 = vlog2.f32 %v4653_v48  ;;  %v4625_v23 = vsel %vm4624_vm13, %v4622_v58, %v4619_v4  ;;  %v10677_v34 = vpop.eup %6636 }
 0x4b8   :  { %6650 = vpow2.f32 %v4430_v6  ;;  %v4631_v11 = vmul.f32 %v10429_v31, %v4630_v61  ;;  %v4336_v25 = vmin.f32 %v10654_v32, 20.0  ;;  %v4985_v36 = vsel %vm4257_vm9, %v10293_v22, %v4625_v23 }
 0x4b9   :  { %v4434_v7 = vmul.f32 1.442695, %v4337_v27  ;;  %v4641_v3 = vand.u32 2147483647, %v10419_v40  ;;  %v4662_v1 = vadd.f32 1.0, %v10479_v54  ;;  %v6639_v24 = vpop.eup %6638  ;;  %6216 = vmatmul.mubr.msk.f32.gmra.mxu0 %vm2414_vm7, %v4985_v36  ;;  %v4648_v31 = vadd.f32 1.0, %v4647_v2 }
 0x4ba   :  { %vm10685_vm0 = vcmp.lt.f32.partialorder %v4632_v26, 0.0004427343  ;;  %v4339_v58 = vmin.f32 %v10669_v29, 20.0  ;;  %v10691_v61 = vadd.f32 %v10637_v21, %v4171_v10  ;;  %v10693_v19 = vpop.eup %6640  ;;  %6652 = vpow2.f32 %v4428_v38 }
 0x4bb   :  { %v4628_v22 = vmul.f32 0.6931472, %v6639_v24  ;;  %v4640_v12 = vmul.f32 %v10419_v40, %v4639_v42  ;;  %v4656_v27 = vmul.f32 -0.5, %v10432_v37  ;;  %v6643_v48 = vpop.eup %6642  ;;  %vm4260_vm1 = vcmp.gt.f32.partialorder %v10340_v0, 20.0 }
 0x4bc   :  { %v4432_v26 = vmul.f32 1.442695, %v4336_v25  ;;  %v4650_v62 = vand.u32 2147483647, %v10455_v43  ;;  %6654 = vlog2.f32 %v4662_v1  ;;  %v4671_v4 = vadd.f32 1.0, %v10464_v55 }
 0x4bd   :  { %v4634_v2 = vsel %vm10685_vm0, %v4631_v11, %v4628_v22  ;;  %6656 = vpow2.f32 %v4434_v7  ;;  %v4637_v10 = vmul.f32 0.6931472, %v6643_v48  ;;  %vm4642_vm2 = vcmp.lt.f32.partialorder %v4641_v3, 0.0004427343 }
 0x4be   :  { %v4986_v40 = vsel %vm4258_vm11, %v10316_v14, %v4634_v2  ;;  %v4649_v38 = vmul.f32 %v10455_v43, %v4648_v31  ;;  %v4438_v42 = vmul.f32 1.442695, %v4339_v58  ;;  %v4338_v23 = vmin.f32 %v10691_v61, 20.0  ;;  %v10707_v25 = vpop.eup %6644 }
 0x4bf   :  { %vm4261_vm3 = vcmp.gt.f32.partialorder %v10320_v39, 20.0  ;;  %6218 = vmatprep.mubr.msk.f32.mxu0 %vm2414_vm7, %v4986_v40  ;;  %v4643_v36 = vsel %vm4642_vm2, %v4640_v12, %v4637_v10  ;;  %v4657_v11 = vadd.f32 1.0, %v4656_v27  ;;  %6658 = vlog2.f32 %v4671_v4 }
 0x4c0   :  { %v4680_v7 = vadd.f32 1.0, %v10490_v49  ;;  %v4987_v14 = vsel %vm4259_vm12, %v10308_v59, %v4643_v36  ;;  %6660 = vpow2.f32 %v4432_v26  ;;  %v4659_v43 = vand.u32 2147483647, %v10432_v37 }
 0x4c1   :  { %v4665_v3 = vmul.f32 -0.5, %v10479_v54  ;;  %v6647_v1 = vpop.eup %6646  ;;  %6219 = vmatmul.mubr.msk.f32.gmra.mxu0 %vm2414_vm7, %v4987_v14  ;;  %v4668_v24 = vand.u32 2147483647, %v10479_v54  ;;  %v4674_v6 = vmul.f32 -0.5, %v10464_v55  ;;  %v4689_v31 = vadd.f32 1.0, %v10486_v41 }
 0x4c2   :  { %6662 = vlog2.f32 %v4680_v7  ;;  %v4646_v58 = vmul.f32 0.6931472, %v6647_v1  ;;  %v4436_v22 = vmul.f32 1.442695, %v4338_v23  ;;  %v4698_v59 = vadd.f32 1.0, %v10536_v52 }
 0x4c3   :  { %6664 = vpow2.f32 %v4438_v42  ;;  %vm4651_vm4 = vcmp.lt.f32.partialorder %v4650_v62, 0.0004427343  ;;  %v4658_v12 = vmul.f32 %v10432_v37, %v4657_v11  ;;  %v4683_v27 = vmul.f32 -0.5, %v10490_v49 }
 0x4c4   :  { %6666 = vlog2.f32 %v4689_v31  ;;  %v6649_v48 = vpop.eup %6648  ;;  %vm4262_vm5 = vcmp.gt.f32.partialorder %v10364_v28, 20.0  ;;  %v4652_v26 = vsel %vm4651_vm4, %v4649_v38, %v4646_v58  ;;  %v4666_v4 = vadd.f32 1.0, %v4665_v3 }
 0x4c5   :  { %v4677_v2 = vand.u32 2147483647, %v10464_v55  ;;  %6668 = vlog2.f32 %v4698_v59  ;;  %v10726_v10 = vpop.eup %6650  ;;  %v4988_v40 = vsel %vm4260_vm1, %v10340_v0, %v4652_v26  ;;  %v4655_v62 = vmul.f32 0.6931472, %v6649_v48 }
 0x4c6   :  { %v4675_v42 = vadd.f32 1.0, %v4674_v6  ;;  %v4692_v37 = vmul.f32 -0.5, %v10486_v41  ;;  %6221 = vmatprep.mubr.msk.f32.mxu0 %vm2414_vm7, %v4988_v40  ;;  %vm4660_vm6 = vcmp.lt.f32.partialorder %v4659_v43, 0.0004427343  ;;  %6670 = vpow2.f32 %v4436_v22 }
 0x4c7   :  { %vm10733_vm14 = vcmp.lt.f32.partialorder %v4668_v24, 0.0004427343  ;;  %v4707_v23 = vadd.f32 1.0, %v10510_v15  ;;  %vm4263_vm15 = vcmp.gt.f32.partialorder %v10343_v45, 20.0  ;;  %v4661_v36 = vsel %vm4660_vm6, %v4658_v12, %v4655_v62  ;;  %v10741_v14 = vpop.eup %6652 }
 0x4c8   :  { %v4684_v11 = vadd.f32 1.0, %v4683_v27  ;;  %v4686_v0 = vand.u32 2147483647, %v10490_v49  ;;  %v4716_v7 = vadd.f32 1.0, %v10582_v60  ;;  %v4989_v43 = vsel %vm4261_vm3, %v10320_v39, %v4661_v36 }
 0x4c9   :  { %v4667_v3 = vmul.f32 %v10479_v54, %v4666_v4  ;;  %v4701_v1 = vmul.f32 -0.5, %v10536_v52  ;;  %6672 = vlog2.f32 %v4707_v23  ;;  %v6655_v24 = vpop.eup %6654  ;;  %vm4264_vm8 = vcmp.gt.f32.partialorder %v10375_v51, 20.0  ;;  %6222 = vmatmul.mubr.msk.f32.gmra.mxu0 %vm2414_vm7, %v4989_v43 }
 0x4ca   :  { %v4676_v6 = vmul.f32 %v10464_v55, %v4675_v42  ;;  %vm10751_vm9 = vcmp.lt.f32.partialorder %v4677_v2, 0.0004427343  ;;  %v4693_v58 = vadd.f32 1.0, %v4692_v37  ;;  %6674 = vlog2.f32 %v4716_v7  ;;  %v10755_v22 = vpop.eup %6656 }
 0x4cb   :  { %v4664_v39 = vmul.f32 0.6931472, %v6655_v24  ;;  %v4695_v54 = vand.u32 2147483647, %v10486_v41  ;;  %v4710_v59 = vmul.f32 -0.5, %v10510_v15  ;;  %v4725_v12 = vadd.f32 1.0, %v10542_v16 }
 0x4cc   :  { %vm4265_vm10 = vcmp.gt.f32.partialorder %v10369_v5, 20.0  ;;  %v4685_v27 = vmul.f32 %v10490_v49, %v4684_v11  ;;  %vm10762_vm11 = vcmp.lt.f32.partialorder %v4686_v0, 0.0004427343  ;;  %v4704_v48 = vand.u32 2147483647, %v10536_v52  ;;  %v6659_v4 = vpop.eup %6658 }
 0x4cd   :  { %v4734_v26 = vadd.f32 1.0, %v10595_v46  ;;  %vm4266_vm12 = vcmp.gt.f32.partialorder %v10409_v63, 20.0  ;;  %v4670_v2 = vsel %vm10733_vm14, %v4667_v3, %v4664_v39  ;;  %v4702_v40 = vadd.f32 1.0, %v4701_v1  ;;  %v10772_v42 = vpop.eup %6660 }
 0x4ce   :  { %v4713_v62 = vand.u32 2147483647, %v10510_v15  ;;  %6676 = vlog2.f32 %v4725_v12  ;;  %v4990_v49 = vsel %vm4262_vm5, %v10364_v28, %v4670_v2  ;;  %v4673_v37 = vmul.f32 0.6931472, %v6659_v4 }
 0x4cf   :  { %v4719_v23 = vmul.f32 -0.5, %v10582_v60  ;;  %6678 = vlog2.f32 %v4734_v26  ;;  %v6663_v36 = vpop.eup %6662  ;;  %6224 = vmatprep.mubr.msk.f32.mxu0 %vm2414_vm7, %v4990_v49  ;;  %v4694_v38 = vmul.f32 %v10486_v41, %v4693_v58  ;;  %vm10780_vm13 = vcmp.lt.f32.partialorder %v4695_v54, 0.0004427343  ;;  %v6159_v41 = vpop.f32.mrf.mxu1 }
 0x4d0   :  { %v4711_v0 = vadd.f32 1.0, %v4710_v59  ;;  %v4743_v7 = vadd.f32 1.0, %v10586_v30  ;;  %v10785_v43 = vpop.eup %6664  ;;  %v4679_v28 = vsel %vm10751_vm9, %v4676_v6, %v4673_v37  ;;  %v4682_v3 = vmul.f32 0.6931472, %v6663_v36  ;;  %v11607_v59 = vld [vmem:[#allocation4_spill] sm:$0xff]  ;;  %v11608_v36 = vld [vmem:[#allocation2_spill] sm:$0xff] }
 0x4d1   :  { %vm10789_vm0 = vcmp.lt.f32.partialorder %v4704_v48, 0.0004427343  ;;  %v4728_v24 = vmul.f32 -0.5, %v10542_v16  ;;  %v6667_v58 = vpop.eup %6666  ;;  %vm4267_vm1 = vcmp.gt.f32.partialorder %v10397_v50, 20.0  ;;  %v4991_v39 = vsel %vm4263_vm15, %v10343_v45, %v4679_v28  ;;  %v4181_v37 = vpop.f32.mrf.mxu1 }
 0x4d2   :  { %v4703_v54 = vmul.f32 %v10536_v52, %v4702_v40  ;;  %vm10799_vm2 = vcmp.lt.f32.partialorder %v4713_v62, 0.0004427343  ;;  %6680 = vlog2.f32 %v4743_v7  ;;  %v6669_v6 = vpop.eup %6668  ;;  %vm4268_vm3 = vcmp.gt.f32.partialorder %v11607_v59, 20.0  ;;  %6225 = vmatmul.mubr.msk.f32.gmra.mxu0 %vm2414_vm7, %v4991_v39 }
 0x4d3   :  { %v4688_v12 = vsel %vm10762_vm11, %v4685_v27, %v4682_v3  ;;  %v4691_v48 = vmul.f32 0.6931472, %v6667_v58  ;;  %v4720_v26 = vadd.f32 1.0, %v4719_v23  ;;  %v4722_v4 = vand.u32 2147483647, %v10582_v60  ;;  %v10813_v62 = vpop.eup %6670 }
 0x4d4   :  { %v4992_v45 = vsel %vm4264_vm8, %v10375_v51, %v4688_v12  ;;  %v4700_v52 = vmul.f32 0.6931472, %v6669_v6  ;;  %v4712_v2 = vmul.f32 %v10510_v15, %v4711_v0  ;;  %v4731_v40 = vand.u32 2147483647, %v10542_v16  ;;  %v11613_v12 = vld [vmem:[#allocation3_spill] sm:$0xff] }
 0x4d5   :  { %6227 = vmatprep.mubr.msk.f32.mxu0 %vm2414_vm7, %v4992_v45  ;;  %v4697_v27 = vsel %vm10780_vm13, %v4694_v38, %v4691_v48  ;;  %v4729_v55 = vadd.f32 1.0, %v4728_v24  ;;  %v4737_v49 = vmul.f32 -0.5, %v10595_v46  ;;  %v4752_v23 = vadd.f32 1.0, %v10662_v13 }
 0x4d6   :  { %vm4269_vm4 = vcmp.gt.f32.partialorder %v11608_v36, 20.0  ;;  %v4993_v51 = vsel %vm4265_vm10, %v10369_v5, %v4697_v27  ;;  %v4706_v15 = vsel %vm10789_vm0, %v4703_v54, %v4700_v52  ;;  %v4740_v0 = vand.u32 2147483647, %v10595_v46  ;;  %v6673_v38 = vpop.eup %6672 }
 0x4d7   :  { %v10828_v11 = vadd.f32 %v10637_v21, %v6159_v41  ;;  %vm4270_vm5 = vcmp.gt.f32.partialorder %v10484_v53, 20.0  ;;  %6228 = vmatmul.mubr.msk.f32.gmra.mxu0 %vm2414_vm7, %v4993_v51  ;;  %v4994_v7 = vsel %vm4266_vm12, %v10409_v63, %v4706_v15  ;;  %vm10835_vm6 = vcmp.lt.f32.partialorder %v4722_v4, 0.0004427343  ;;  %v6675_v3 = vpop.eup %6674 }
 0x4d8   :  { %v4746_v5 = vmul.f32 -0.5, %v10586_v30  ;;  %6682 = vlog2.f32 %v4752_v23  ;;  %6230 = vmatprep.mubr.msk.f32.mxu0 %vm2414_vm7, %v4994_v7  ;;  %v4709_v1 = vmul.f32 0.6931472, %v6673_v38  ;;  %vm10841_vm14 = vcmp.lt.f32.partialorder %v4731_v40, 0.0004427343 }
 0x4d9   :  { %v10846_v41 = vadd.f32 %v10637_v21, %v4181_v37  ;;  %v4761_v63 = vadd.f32 1.0, %v10610_v35  ;;  %v4718_v58 = vmul.f32 0.6931472, %v6675_v3  ;;  %v4721_v39 = vmul.f32 %v10582_v60, %v4720_v26  ;;  %v6162_v3 = vpop.f32.mrf.mxu1 }
 0x4da   :  { %v4738_v54 = vadd.f32 1.0, %v4737_v49  ;;  %v4749_v6 = vand.u32 2147483647, %v10586_v30  ;;  %vm4271_vm15 = vcmp.gt.f32.partialorder %v11613_v12, 20.0  ;;  %v4715_v48 = vsel %vm10799_vm2, %v4712_v2, %v4709_v1 }
 0x4db   :  { %v4730_v4 = vmul.f32 %v10542_v16, %v4729_v55  ;;  %vm10855_vm8 = vcmp.lt.f32.partialorder %v4740_v0, 0.0004427343  ;;  %v4341_v52 = vmin.f32 %v10828_v11, 20.0  ;;  %v6677_v40 = vpop.eup %6676  ;;  %v4995_v60 = vsel %vm4267_vm1, %v10397_v50, %v4715_v48  ;;  %v4191_v23 = vpop.f32.mrf.mxu1 }
 0x4dc   :  { %v4724_v26 = vsel %vm10835_vm6, %v4721_v39, %v4718_v58  ;;  %v4747_v27 = vadd.f32 1.0, %v4746_v5  ;;  %v4755_v31 = vmul.f32 -0.5, %v10662_v13  ;;  %v6679_v2 = vpop.eup %6678  ;;  %6231 = vmatmul.mubr.msk.f32.gmra.mxu0 %vm2414_vm7, %v4995_v60  ;;  %v4727_v55 = vmul.f32 0.6931472, %v6677_v40 }
 0x4dd   :  { %v4996_v16 = vsel %vm4268_vm3, %v11607_v59, %v4724_v26  ;;  %v4340_v49 = vmin.f32 %v10846_v41, 20.0  ;;  %6684 = vlog2.f32 %v4761_v63  ;;  %v4736_v50 = vmul.f32 0.6931472, %v6679_v2 }
 0x4de   :  { %6233 = vmatprep.mubr.msk.f32.mxu0 %vm2414_vm7, %v4996_v16  ;;  %v4739_v37 = vmul.f32 %v10595_v46, %v4738_v54  ;;  %vm10873_vm9 = vcmp.lt.f32.partialorder %v4749_v6, 0.0004427343  ;;  %v4770_v51 = vadd.f32 1.0, %v10677_v34  ;;  %v4733_v15 = vsel %vm10841_vm14, %v4730_v4, %v4727_v55 }
 0x4df   :  { %v4442_v0 = vmul.f32 1.442695, %v4341_v52  ;;  %v4764_v59 = vmul.f32 -0.5, %v10610_v35  ;;  %v4779_v38 = vadd.f32 1.0, %v10673_v33  ;;  %v6681_v7 = vpop.eup %6680  ;;  %vm4272_vm10 = vcmp.gt.f32.partialorder %v10522_v56, 20.0 }
 0x4e0   :  { %v4997_v46 = vsel %vm4269_vm4, %v11608_v36, %v4733_v15  ;;  %v4742_v28 = vsel %vm10855_vm8, %v4739_v37, %v4736_v50  ;;  %v4756_v5 = vadd.f32 1.0, %v4755_v31  ;;  %6686 = vlog2.f32 %v4770_v51 }
 0x4e1   :  { %6234 = vmatmul.mubr.msk.f32.gmra.mxu0 %vm2414_vm7, %v4997_v46  ;;  %v4998_v1 = vsel %vm4270_vm5, %v10484_v53, %v4742_v28  ;;  %v4745_v24 = vmul.f32 0.6931472, %v6681_v7  ;;  %v4748_v63 = vmul.f32 %v10586_v30, %v4747_v27  ;;  %v4440_v58 = vmul.f32 1.442695, %v4340_v49 }
 0x4e2   :  { %6236 = vmatprep.mubr.msk.f32.mxu0 %vm2414_vm7, %v4998_v1  ;;  %v4758_v36 = vand.u32 2147483647, %v10662_v13  ;;  %v4773_v39 = vmul.f32 -0.5, %v10677_v34  ;;  %6688 = vlog2.f32 %v4779_v38  ;;  %v4788_v54 = vadd.f32 1.0, %v10707_v25 }
 0x4e3   :  { %v4751_v6 = vsel %vm10873_vm9, %v4748_v63, %v4745_v24  ;;  %6690 = vpow2.f32 %v4442_v0  ;;  %v4765_v48 = vadd.f32 1.0, %v4764_v59  ;;  %v10900_v53 = vadd.f32 %v10637_v21, %v6162_v3 }
 0x4e4   :  { %v4999_v30 = vsel %vm4271_vm15, %v11613_v12, %v4751_v6  ;;  %v4757_v4 = vmul.f32 %v10662_v13, %v4756_v5  ;;  %v4782_v45 = vmul.f32 -0.5, %v10673_v33  ;;  %6692 = vlog2.f32 %v4788_v54 }
 0x4e5   :  { %v6683_v52 = vpop.eup %6682  ;;  %vm4273_vm11 = vcmp.gt.f32.partialorder %v10502_v8, 20.0  ;;  %6237 = vmatmul.mubr.msk.f32.gmra.mxu0 %vm2414_vm7, %v4999_v30  ;;  %6694 = vpow2.f32 %v4440_v58  ;;  %v4767_v40 = vand.u32 2147483647, %v10610_v35  ;;  %v4776_v60 = vand.u32 2147483647, %v10677_v34 }
 0x4e6   :  { %v4797_v26 = vadd.f32 1.0, %v10693_v19  ;;  %v4754_v27 = vmul.f32 0.6931472, %v6683_v52  ;;  %v4774_v31 = vadd.f32 1.0, %v4773_v39  ;;  %v4791_v12 = vmul.f32 -0.5, %v10707_v25 }
 0x4e7   :  { %v4806_v13 = vadd.f32 1.0, %v10741_v14  ;;  %vm4759_vm12 = vcmp.lt.f32.partialorder %v4758_v36, 0.0004427343  ;;  %v4766_v2 = vmul.f32 %v10610_v35, %v4765_v48  ;;  %v4785_v16 = vand.u32 2147483647, %v10673_v33 }
 0x4e8   :  { %6696 = vlog2.f32 %v4797_v26  ;;  %vm4274_vm13 = vcmp.gt.f32.partialorder %v10552_v44, 20.0  ;;  %v4760_v55 = vsel %vm4759_vm12, %v4757_v4, %v4754_v27  ;;  %v4783_v49 = vadd.f32 1.0, %v4782_v45 }
 0x4e9   :  { %v4794_v50 = vand.u32 2147483647, %v10707_v25  ;;  %6698 = vlog2.f32 %v4806_v13  ;;  %v5000_v37 = vsel %vm4272_vm10, %v10522_v56, %v4760_v55  ;;  %vm10921_vm0 = vcmp.lt.f32.partialorder %v4767_v40, 0.0004427343 }
 0x4ea   :  { %v4800_v35 = vmul.f32 -0.5, %v10693_v19  ;;  %v4815_v51 = vadd.f32 1.0, %v10726_v10  ;;  %v6685_v15 = vpop.eup %6684  ;;  %vm4275_vm1 = vcmp.gt.f32.partialorder %v10534_v18, 20.0  ;;  %6239 = vmatprep.mubr.msk.f32.mxu0 %vm2414_vm7, %v5000_v37  ;;  %v4775_v0 = vmul.f32 %v10677_v34, %v4774_v31 }
 0x4eb   :  { %vm10930_vm2 = vcmp.lt.f32.partialorder %v4776_v60, 0.0004427343  ;;  %v4792_v56 = vadd.f32 1.0, %v4791_v12  ;;  %v4824_v38 = vadd.f32 1.0, %v10772_v42  ;;  %v4763_v7 = vmul.f32 0.6931472, %v6685_v15 }
 0x4ec   :  { %vm10935_vm3 = vcmp.lt.f32.partialorder %v4785_v16, 0.0004427343  ;;  %v4809_v28 = vmul.f32 -0.5, %v10741_v14  ;;  %6700 = vlog2.f32 %v4815_v51  ;;  %vm4276_vm4 = vcmp.gt.f32.partialorder %v10573_v17, 20.0 }
 0x4ed   :  { %v4784_v5 = vmul.f32 %v10673_v33, %v4783_v49  ;;  %vm10942_vm5 = vcmp.lt.f32.partialorder %v4794_v50, 0.0004427343  ;;  %v4818_v3 = vmul.f32 -0.5, %v10726_v10  ;;  %6702 = vlog2.f32 %v4824_v38  ;;  %v6687_v1 = vpop.eup %6686 }
 0x4ee   :  { %v4769_v24 = vsel %vm10921_vm0, %v4766_v2, %v4763_v7  ;;  %v4801_v63 = vadd.f32 1.0, %v4800_v35  ;;  %v4803_v58 = vand.u32 2147483647, %v10693_v19  ;;  %v4833_v36 = vadd.f32 1.0, %v10755_v22 }
 0x4ef   :  { %v5001_v33 = vsel %vm4273_vm11, %v10502_v8, %v4769_v24  ;;  %v4772_v39 = vmul.f32 0.6931472, %v6687_v1  ;;  %v4793_v54 = vmul.f32 %v10707_v25, %v4792_v56  ;;  %v4812_v6 = vand.u32 2147483647, %v10741_v14  ;;  %v6689_v48 = vpop.eup %6688  ;;  %v6165_v1 = vpop.f32.mrf.mxu1 }
 0x4f0   :  { %vm4277_vm6 = vcmp.gt.f32.partialorder %v10558_v57, 20.0  ;;  %6240 = vmatmul.mubr.msk.f32.gmra.mxu0 %vm2414_vm7, %v5001_v33  ;;  %v4810_v30 = vadd.f32 1.0, %v4809_v28  ;;  %v4821_v4 = vand.u32 2147483647, %v10726_v10  ;;  %v4827_v45 = vmul.f32 -0.5, %v10772_v42  ;;  %v10960_v52 = vpop.eup %6690 }
 0x4f1   :  { %6704 = vlog2.f32 %v4833_v36  ;;  %vm4278_vm14 = vcmp.gt.f32.partialorder %v10621_v9, 20.0  ;;  %v4778_v8 = vsel %vm10930_vm2, %v4775_v0, %v4772_v39  ;;  %v4781_v25 = vmul.f32 0.6931472, %v6689_v48  ;;  %v6693_v26 = vpop.eup %6692 }
 0x4f2   :  { %v4819_v40 = vadd.f32 1.0, %v4818_v3  ;;  %v4842_v60 = vadd.f32 1.0, %v10813_v62  ;;  %v5002_v27 = vsel %vm4274_vm13, %v10552_v44, %v4778_v8  ;;  %v4802_v31 = vmul.f32 %v10693_v19, %v4801_v63  ;;  %v10975_v2 = vpop.eup %6694 }
 0x4f3   :  { %vm10970_vm15 = vcmp.lt.f32.partialorder %v4803_v58, 0.0004427343  ;;  %v4830_v13 = vand.u32 2147483647, %v10772_v42  ;;  %6242 = vmatprep.mubr.msk.f32.mxu0 %vm2414_vm7, %v5002_v27  ;;  %v4787_v16 = vsel %vm10935_vm3, %v4784_v5, %v4781_v25  ;;  %v4790_v55 = vmul.f32 0.6931472, %v6693_v26 }
 0x4f4   :  { %v4836_v49 = vmul.f32 -0.5, %v10755_v22  ;;  %6706 = vlog2.f32 %v4842_v60  ;;  %vm4279_vm8 = vcmp.gt.f32.partialorder %v10592_v47, 20.0  ;;  %v5003_v44 = vsel %vm4275_vm1, %v10534_v18, %v4787_v16 }
 0x4f5   :  { %v4811_v19 = vmul.f32 %v10741_v14, %v4810_v30  ;;  %vm10986_vm9 = vcmp.lt.f32.partialorder %v4812_v6, 0.0004427343  ;;  %v4851_v37 = vadd.f32 1.0, %v10785_v43  ;;  %v6697_v35 = vpop.eup %6696  ;;  %vm4280_vm10 = vcmp.gt.f32.partialorder %v10654_v32, 20.0  ;;  %6243 = vmatmul.mubr.msk.f32.gmra.mxu0 %vm2414_vm7, %v5003_v44 }
 0x4f6   :  { %v4796_v51 = vsel %vm10942_vm5, %v4793_v54, %v4790_v55  ;;  %v4820_v15 = vmul.f32 %v10726_v10, %v4819_v40  ;;  %vm10996_vm11 = vcmp.lt.f32.partialorder %v4821_v4, 0.0004427343  ;;  %v4828_v14 = vadd.f32 1.0, %v4827_v45  ;;  %v6699_v0 = vpop.eup %6698  ;;  %v4201_v40 = vpop.f32.mrf.mxu1 }
 0x4f7   :  { %v5004_v59 = vsel %vm4276_vm4, %v10573_v17, %v4796_v51  ;;  %v4799_v56 = vmul.f32 0.6931472, %v6697_v35  ;;  %vm11003_vm12 = vcmp.lt.f32.partialorder %v4830_v13, 0.0004427343  ;;  %6708 = vlog2.f32 %v4851_v37 }
 0x4f8   :  { %6245 = vmatprep.mubr.msk.f32.mxu0 %vm2414_vm7, %v5004_v59  ;;  %v4808_v7 = vmul.f32 0.6931472, %v6699_v0  ;;  %v4837_v10 = vadd.f32 1.0, %v4836_v49  ;;  %v4343_v46 = vmin.f32 %v10900_v53, 20.0  ;;  %v11010_v28 = vadd.f32 %v10637_v21, %v4191_v23 }
 0x4f9   :  { %v4805_v5 = vsel %vm10970_vm15, %v4802_v31, %v4799_v56  ;;  %v4839_v17 = vand.u32 2147483647, %v10755_v22  ;;  %v4845_v34 = vmul.f32 -0.5, %v10813_v62  ;;  %v4860_v3 = vadd.f32 1.0, %v10975_v2  ;;  %v6701_v24 = vpop.eup %6700 }
 0x4fa   :  { %v5005_v63 = vsel %vm4277_vm6, %v10558_v57, %v4805_v5  ;;  %v4814_v58 = vsel %vm10986_vm9, %v4811_v19, %v4808_v7  ;;  %v4854_v36 = vmul.f32 -0.5, %v10785_v43  ;;  %v4446_v33 = vmul.f32 1.442695, %v4343_v46  ;;  %v6703_v39 = vpop.eup %6702 }
 0x4fb   :  { %6246 = vmatmul.mubr.msk.f32.gmra.mxu0 %vm2414_vm7, %v5005_v63  ;;  %v5006_v54 = vsel %vm4278_vm14, %v10621_v9, %v4814_v58  ;;  %v4817_v6 = vmul.f32 0.6931472, %v6701_v24  ;;  %v4342_v48 = vmin.f32 %v11010_v28, 20.0  ;;  %6710 = vlog2.f32 %v4860_v3 }
 0x4fc   :  { %6248 = vmatprep.mubr.msk.f32.mxu0 %vm2414_vm7, %v5006_v54  ;;  %v4826_v57 = vmul.f32 0.6931472, %v6703_v39  ;;  %v4829_v30 = vmul.f32 %v10772_v42, %v4828_v14  ;;  %v4838_v4 = vmul.f32 %v10755_v22, %v4837_v10  ;;  %6712 = vpow2.f32 %v4446_v33 }
 0x4fd   :  { %v4823_v45 = vsel %vm10996_vm11, %v4820_v15, %v4817_v6  ;;  %vm11033_vm13 = vcmp.lt.f32.partialorder %v4839_v17, 0.0004427343  ;;  %v4444_v9 = vmul.f32 1.442695, %v4342_v48  ;;  %v4869_v25 = vadd.f32 1.0, %v10960_v52 }
 0x4fe   :  { %v6705_v60 = vpop.eup %6704  ;;  %v5007_v26 = vsel %vm4279_vm8, %v10592_v47, %v4823_v45  ;;  %v4832_v22 = vsel %vm11003_vm12, %v4829_v30, %v4826_v57  ;;  %v4846_v42 = vadd.f32 1.0, %v4845_v34  ;;  %v4848_v27 = vand.u32 2147483647, %v10813_v62 }
 0x4ff   :  { %6249 = vmatmul.mubr.msk.f32.gmra.mxu0 %vm2414_vm7, %v5007_v26  ;;  %v5008_v31 = vsel %vm4280_vm10, %v10654_v32, %v4832_v22  ;;  %v4835_v12 = vmul.f32 0.6931472, %v6705_v60  ;;  %v4855_v13 = vadd.f32 1.0, %v4854_v36  ;;  %6714 = vpow2.f32 %v4444_v9 }
 0x500   :  { %6251 = vmatprep.mubr.msk.f32.mxu0 %vm2414_vm7, %v5008_v31  ;;  %v4863_v16 = vmul.f32 -0.5, %v10975_v2  ;;  %6716 = vlog2.f32 %v4869_v25  ;;  %v11051_v47 = vadd.f32 %v10637_v21, %v6165_v1  ;;  %v11054_v55 = vadd.f32 %v10637_v21, %v4201_v40 }
 0x501   :  { %v6707_v49 = vpop.eup %6706  ;;  %vm4281_vm0 = vcmp.gt.f32.partialorder %v10640_v20, 20.0  ;;  %v4841_v32 = vsel %vm11033_vm13, %v4838_v4, %v4835_v12  ;;  %v4847_v50 = vmul.f32 %v10813_v62, %v4846_v42  ;;  %v4857_v37 = vand.u32 2147483647, %v10785_v43 }
 0x502   :  { %v5009_v44 = vsel %vm4281_vm0, %v10640_v20, %v4841_v32  ;;  %v4844_v19 = vmul.f32 0.6931472, %v6707_v49  ;;  %vm4849_vm1 = vcmp.lt.f32.partialorder %v4848_v27, 0.0004427343  ;;  %v4345_v23 = vmin.f32 %v11051_v47, 20.0 }
 0x503   :  { %6252 = vmatmul.mubr.msk.f32.gmra.mxu0 %vm2414_vm7, %v5009_v44  ;;  %v4344_v35 = vmin.f32 %v11054_v55, 20.0  ;;  %vm4282_vm2 = vcmp.gt.f32.partialorder %v10691_v61, 20.0  ;;  %v4856_v18 = vmul.f32 %v10785_v43, %v4855_v13  ;;  %v4864_v14 = vadd.f32 1.0, %v4863_v16 }
 0x504   :  { %v6709_v51 = vpop.eup %6708  ;;  %v4850_v15 = vsel %vm4849_vm1, %v4847_v50, %v4844_v19  ;;  %v4450_v59 = vmul.f32 1.442695, %v4345_v23  ;;  %vm4858_vm3 = vcmp.lt.f32.partialorder %v4857_v37, 0.0004427343  ;;  %v4866_v38 = vand.u32 2147483647, %v10975_v2 }
 0x505   :  { %v5010_v0 = vsel %vm4282_vm2, %v10691_v61, %v4850_v15  ;;  %v4853_v62 = vmul.f32 0.6931472, %v6709_v51  ;;  %v4448_v56 = vmul.f32 1.442695, %v4344_v35  ;;  %v4872_v7 = vmul.f32 -0.5, %v10960_v52 }
 0x506   :  { %v6168_v20 = vpop.f32.mrf.mxu1  ;;  %6254 = vmatprep.mubr.msk.f32.mxu0 %vm2414_vm7, %v5010_v0  ;;  %vm4283_vm4 = vcmp.gt.f32.partialorder %v10669_v29, 20.0  ;;  %6718 = vpow2.f32 %v4450_v59  ;;  %v4865_v24 = vmul.f32 %v10975_v2, %v4864_v14  ;;  %vm4867_vm5 = vcmp.lt.f32.partialorder %v4866_v38, 0.0004427343 }
 0x507   :  { %v11072_v10 = vadd.f32 %v10637_v21, %v6168_v20  ;;  %v4859_v43 = vsel %vm4858_vm3, %v4856_v18, %v4853_v62  ;;  %6720 = vpow2.f32 %v4448_v56  ;;  %v4873_v58 = vadd.f32 1.0, %v4872_v7 }
 0x508   :  { %v4211_v46 = vpop.f32.mrf.mxu1  ;;  %v6711_v5 = vpop.eup %6710  ;;  %v5011_v17 = vsel %vm4283_vm4, %v10669_v29, %v4859_v43  ;;  %vm4284_vm6 = vcmp.gt.f32.partialorder %v10846_v41, 20.0  ;;  %v4875_v29 = vand.u32 2147483647, %v10960_v52  ;;  %vm4285_vm15 = vcmp.gt.f32.partialorder %v10828_v11, 20.0 }
 0x509   :  { %v11076_v61 = vadd.f32 %v10637_v21, %v4211_v46  ;;  %v4347_v34 = vmin.f32 %v11072_v10, 20.0  ;;  %v6713_v3 = vpop.eup %6712  ;;  %6255 = vmatmul.mubr.msk.f32.gmra.mxu0 %vm2414_vm7, %v5011_v17  ;;  %v4862_v1 = vmul.f32 0.6931472, %v6711_v5  ;;  %v4874_v4 = vmul.f32 %v10960_v52, %v4873_v58  ;;  %v6759_v58 = vld [vmem:[%s11459_s4] ss:$0 sm:$0xff] }
 0x50a   :  { %v4887_v36 = vadd.f32 1.0, %v6713_v3  ;;  %vm4876_vm14 = vcmp.lt.f32.partialorder %v4875_v29, 0.0004427343  ;;  %v4890_v9 = vmul.f32 -0.5, %v6713_v3  ;;  %v4893_v42 = vand.u32 2147483647, %v6713_v3 }
 0x50b   :  { %v4346_v63 = vmin.f32 %v11076_v61, 20.0  ;;  %v4454_v33 = vmul.f32 1.442695, %v4347_v34  ;;  %v4868_v39 = vsel %vm4867_vm5, %v4865_v24, %v4862_v1  ;;  %vm4286_vm10 = vcmp.gt.f32.partialorder %v11010_v28, 20.0 }
 0x50c   :  { %v6715_v6 = vpop.eup %6714  ;;  %v5012_v48 = vsel %vm4284_vm6, %v10846_v41, %v4868_v39  ;;  %6722 = vlog2.f32 %v4887_v36  ;;  %v4891_v22 = vadd.f32 1.0, %v4890_v9  ;;  %vm11096_vm8 = vcmp.lt.f32.partialorder %v4893_v42, 0.0004427343 }
 0x50d   :  { %v4452_v54 = vmul.f32 1.442695, %v4346_v63  ;;  %v6717_v57 = vpop.eup %6716  ;;  %6257 = vmatprep.mubr.msk.f32.mxu0 %vm2414_vm7, %v5012_v48  ;;  %v4878_v2 = vadd.f32 1.0, %v6715_v6  ;;  %6724 = vpow2.f32 %v4454_v33  ;;  %v4881_v40 = vmul.f32 -0.5, %v6715_v6 }
 0x50e   :  { %v4871_v30 = vmul.f32 0.6931472, %v6717_v57  ;;  %v4884_v12 = vand.u32 2147483647, %v6715_v6  ;;  %v4892_v32 = vmul.f32 %v6713_v3, %v4891_v22  ;;  %vm4287_vm11 = vcmp.gt.f32.partialorder %v10900_v53, 20.0 }
 0x50f   :  { %6726 = vpow2.f32 %v4452_v54  ;;  %v4882_v27 = vadd.f32 1.0, %v4881_v40  ;;  %vm4289_vm12 = vcmp.gt.f32.partialorder %v11051_v47, 20.0  ;;  %vm4288_vm1 = vcmp.gt.f32.partialorder %v11054_v55, 20.0 }
 0x510   :  { %6728 = vlog2.f32 %v4878_v2  ;;  %v4877_v45 = vsel %vm4876_vm14, %v4874_v4, %v4871_v30  ;;  %vm4885_vm9 = vcmp.lt.f32.partialorder %v4884_v12, 0.0004427343  ;;  %vm4290_vm4 = vcmp.gt.f32.partialorder %v11076_v61, 20.0 }
 0x511   :  { %v5013_v8 = vsel %vm4285_vm15, %v10828_v11, %v4877_v45  ;;  %v4883_v37 = vmul.f32 %v6715_v6, %v4882_v27  ;;  %vm4291_vm5 = vcmp.gt.f32.partialorder %v11072_v10, 20.0  ;;  %vm5552_vm6 = vcmask 23552  }
 0x512   :  { %6258 = vmatmul.mubr.msk.f32.gmra.mxu0 %vm2414_vm7, %v5013_v8 }
 0x513   :  { %v6719_v41 = vpop.eup %6718 }
 0x514   :  { %v6721_v25 = vpop.eup %6720  ;;  %v4905_v60 = vadd.f32 1.0, %v6719_v41  ;;  %v4908_v23 = vmul.f32 -0.5, %v6719_v41  ;;  %v4911_v59 = vand.u32 2147483647, %v6719_v41 }
 0x515   :  { %v4896_v26 = vadd.f32 1.0, %v6721_v25  ;;  %v4899_v51 = vmul.f32 -0.5, %v6721_v25  ;;  %v4902_v62 = vand.u32 2147483647, %v6721_v25 }
 0x516   :  { %6730 = vlog2.f32 %v4905_v60  ;;  %v4909_v20 = vadd.f32 1.0, %v4908_v23  ;;  %vm11115_vm0 = vcmp.lt.f32.partialorder %v4911_v59, 0.0004427343 }
 0x517   :  { %6732 = vlog2.f32 %v4896_v26  ;;  %v4900_v0 = vadd.f32 1.0, %v4899_v51  ;;  %vm4903_vm13 = vcmp.lt.f32.partialorder %v4902_v62, 0.0004427343 }
 0x518   :  { %v4910_v5 = vmul.f32 %v6719_v41, %v4909_v20 }
 0x519   :  { %v6723_v52 = vpop.eup %6722  ;;  %v4901_v34 = vmul.f32 %v6721_v25, %v4900_v0 }
 0x51a   :  { %v11091_v31 = vpop.eup %6724  ;;  %v4889_v13 = vmul.f32 0.6931472, %v6723_v52 }
 0x51b   :  { %v4923_v11 = vadd.f32 1.0, %v11091_v31  ;;  %v4926_v56 = vmul.f32 -0.5, %v11091_v31  ;;  %v4929_v29 = vand.u32 2147483647, %v11091_v31 }
 0x51c   :  { %v11093_v16 = vpop.eup %6726  ;;  %v4895_v35 = vsel %vm11096_vm8, %v4892_v32, %v4889_v13 }
 0x51d   :  { %v6729_v49 = vpop.eup %6728  ;;  %v4914_v19 = vadd.f32 1.0, %v11093_v16  ;;  %6734 = vlog2.f32 %v4923_v11  ;;  %v5015_v14 = vsel %vm4287_vm11, %v10900_v53, %v4895_v35  ;;  %v4917_v46 = vmul.f32 -0.5, %v11093_v16 }
 0x51e   :  { %v4880_v50 = vmul.f32 0.6931472, %v6729_v49  ;;  %v4920_v57 = vand.u32 2147483647, %v11093_v16  ;;  %vm4930_vm2 = vcmp.lt.f32.partialorder %v4929_v29, 0.0004427343 }
 0x51f   :  { %6736 = vlog2.f32 %v4914_v19  ;;  %v4918_v39 = vadd.f32 1.0, %v4917_v46 }
 0x520   :  { %v4886_v15 = vsel %vm4885_vm9, %v4883_v37, %v4880_v50  ;;  %vm4921_vm3 = vcmp.lt.f32.partialorder %v4920_v57, 0.0004427343 }
 0x521   :  { %v5014_v18 = vsel %vm4286_vm10, %v11010_v28, %v4886_v15  ;;  %v4919_v9 = vmul.f32 %v11093_v16, %v4918_v39 }
 0x522   :  { %6260 = vmatprep.mubr.msk.f32.mxu0 %vm2414_vm7, %v5014_v18  ;;  %v6171_v7 = vpop.f32.mrf.mxu1 }
 0x523   :  { %6261 = vmatmul.mubr.msk.f32.gmra.mxu0 %vm2414_vm7, %v5015_v14  ;;  %v6731_v38 = vpop.eup %6730  ;;  %v11113_v17 = vadd.f32 %v10637_v21, %v6171_v7  ;;  %v4927_v21 = vadd.f32 1.0, %v4926_v56 }
 0x524   :  { %v6733_v43 = vpop.eup %6732  ;;  %v4907_v28 = vmul.f32 0.6931472, %v6731_v38  ;;  %v4221_v1 = vpop.f32.mrf.mxu1 }
 0x525   :  { %v4898_v53 = vmul.f32 0.6931472, %v6733_v43  ;;  %v4349_v63 = vmin.f32 %v11113_v17, 20.0  ;;  %v11125_v36 = vadd.f32 %v6759_v58, %v4221_v1  ;;  %vm4293_vm9 = vcmp.gt.f32.partialorder %v11113_v17, 20.0 }
 0x526   :  { %v4913_v24 = vsel %vm11115_vm0, %v4910_v5, %v4907_v28 }
 0x527   :  { %v4904_v33 = vsel %vm4903_vm13, %v4901_v34, %v4898_v53  ;;  %v4458_v6 = vmul.f32 1.442695, %v4349_v63  ;;  %v4348_v48 = vmin.f32 %v11125_v36, 20.0  ;;  %v5017_v30 = vsel %vm4289_vm12, %v11051_v47, %v4913_v24 }
 0x528   :  { %v5016_v54 = vsel %vm4288_vm1, %v11054_v55, %v4904_v33  ;;  %v4928_v55 = vmul.f32 %v11091_v31, %v4927_v21  ;;  %vm4292_vm8 = vcmp.gt.f32.partialorder %v11125_v36, 20.0 }
 0x529   :  { %6263 = vmatprep.mubr.msk.f32.mxu0 %vm2414_vm7, %v5016_v54  ;;  %6738 = vpow2.f32 %v4458_v6  ;;  %v4456_v45 = vmul.f32 1.442695, %v4348_v48 }
 0x52a   :  { %v6735_v2 = vpop.eup %6734  ;;  %6264 = vmatmul.mubr.msk.f32.gmra.mxu0 %vm2414_vm7, %v5017_v30 }
 0x52b   :  { %v4925_v8 = vmul.f32 0.6931472, %v6735_v2  ;;  %6740 = vpow2.f32 %v4456_v45 }
 0x52c   :  { %v6737_v4 = vpop.eup %6736 }
 0x52d   :  { %v4916_v41 = vmul.f32 0.6931472, %v6737_v4  ;;  %v4931_v25 = vsel %vm4930_vm2, %v4928_v55, %v4925_v8 }
 0x52e   :  { %v5019_v60 = vsel %vm4291_vm5, %v11072_v10, %v4931_v25 }
 0x52f   :  { %v4922_v40 = vsel %vm4921_vm3, %v4919_v9, %v4916_v41 }
 0x530   :  { %v5018_v47 = vsel %vm4290_vm4, %v11076_v61, %v4922_v40  ;;  %v11153_v61 = vld [vmem:[%s11460_s6] ss:$0 sm:$0xff] }
 0x531   :  { %6266 = vmatprep.mubr.msk.f32.mxu0 %vm2414_vm7, %v5018_v47 }
 0x532   :  { %6267 = vmatmul.mubr.msk.f32.gmra.mxu0 %vm2414_vm7, %v5019_v60 }
 0x535   :  { %v6174_v22 = vpop.f32.mrf.mxu1 }
 0x536   :  { %v6739_v26 = vpop.eup %6738  ;;  %v11145_v27 = vadd.f32 %v6759_v58, %v6174_v22 }
 0x537   :  { %v4941_v42 = vadd.f32 1.0, %v6739_v26  ;;  %v4231_v31 = vpop.f32.mrf.mxu1  ;;  %v4944_v37 = vmul.f32 -0.5, %v6739_v26  ;;  %v4947_v15 = vand.u32 2147483647, %v6739_v26 }
 0x538   :  { %v6741_v52 = vpop.eup %6740  ;;  %v4351_v13 = vmin.f32 %v11145_v27, 20.0  ;;  %v11148_v16 = vadd.f32 %v6759_v58, %v4231_v31  ;;  %v6193_v49 = vpop.f32.mrf.mxu0  ;;  %vm4295_vm13 = vcmp.gt.f32.partialorder %v11145_v27, 20.0 }
 0x539   :  { %v4932_v12 = vadd.f32 1.0, %v6741_v52  ;;  %6742 = vlog2.f32 %v4941_v42  ;;  %v5279_v32 = vadd.f32 %v6193_v49, %v11153_v61  ;;  %v4935_v23 = vmul.f32 -0.5, %v6741_v52 }
 0x53a   :  { %v4462_v10 = vmul.f32 1.442695, %v4351_v13  ;;  %v4350_v11 = vmin.f32 %v11148_v16, 20.0  ;;  %v5273_v19 = vpop.f32.mrf.mxu0  ;;  %v4945_v35 = vadd.f32 1.0, %v4944_v37  ;;  %v4938_v14 = vand.u32 2147483647, %v6741_v52 }
 0x53b   :  { %6744 = vlog2.f32 %v4932_v12  ;;  %5554 = vst.msk [vmem:[%s11461_s7 + $0x8] sm:$0xff] %vm5552_vm6, %v5279_v32  ;;  %v5274_v50 = vadd.f32 %v11153_v61, %v5273_v19  ;;  %v4936_v51 = vadd.f32 1.0, %v4935_v23  ;;  %vm11166_vm14 = vcmp.lt.f32.partialorder %v4947_v15, 0.0004427343 }
 0x53c   :  { %6746 = vpow2.f32 %v4462_v10  ;;  %v4460_v44 = vmul.f32 1.442695, %v4350_v11  ;;  %v4946_v62 = vmul.f32 %v6739_v26, %v4945_v35  ;;  %vm4939_vm15 = vcmp.lt.f32.partialorder %v4938_v14, 0.0004427343 }
 0x53d   :  { %5553 = vst.msk [vmem:[%s11461_s7] sm:$0xff] %vm5552_vm6, %v5274_v50  ;;  %v4937_v38 = vmul.f32 %v6741_v52, %v4936_v51  ;;  %vm4294_vm12 = vcmp.gt.f32.partialorder %v11148_v16, 20.0 }
 0x53e   :  { %6748 = vpow2.f32 %v4460_v44 }
 0x545   :  { %v6196_v59 = vpop.f32.mrf.mxu0 }
 0x546   :  { %v6743_v18 = vpop.eup %6742  ;;  %v5289_v46 = vadd.f32 %v6196_v59, %v11153_v61 }
 0x547   :  { %v4943_v20 = vmul.f32 0.6931472, %v6743_v18  ;;  %v5283_v5 = vpop.f32.mrf.mxu0 }
 0x548   :  { %v6745_v0 = vpop.eup %6744  ;;  %5556 = vst.msk [vmem:[%s11461_s7 + $0x18] sm:$0xff] %vm5552_vm6, %v5289_v46  ;;  %v5284_v34 = vadd.f32 %v11153_v61, %v5283_v5 }
 0x549   :  { %v4934_v56 = vmul.f32 0.6931472, %v6745_v0  ;;  %v4949_v43 = vsel %vm11166_vm14, %v4946_v62, %v4943_v20  ;;  %v6747_v28 = vpop.eup %6746 }
 0x54a   :  { %v4959_v1 = vadd.f32 1.0, %v6747_v28  ;;  %v5021_v63 = vsel %vm4293_vm9, %v11113_v17, %v4949_v43  ;;  %5555 = vst.msk [vmem:[%s11461_s7 + $0x10] sm:$0xff] %vm5552_vm6, %v5284_v34  ;;  %v4962_v39 = vmul.f32 -0.5, %v6747_v28  ;;  %v4965_v2 = vand.u32 2147483647, %v6747_v28 }
 0x54b   :  { %v4940_v53 = vsel %vm4939_vm15, %v4937_v38, %v4934_v56  ;;  %v6749_v24 = vpop.eup %6748 }
 0x54c   :  { %v5020_v3 = vsel %vm4292_vm8, %v11125_v36, %v4940_v53  ;;  %v4950_v58 = vadd.f32 1.0, %v6749_v24  ;;  %6750 = vlog2.f32 %v4959_v1  ;;  %v4953_v29 = vmul.f32 -0.5, %v6749_v24 }
 0x54d   :  { %6269 = vmatprep.mubr.msk.f32.mxu0 %vm2414_vm7, %v5020_v3  ;;  %v6199_v21 = vpop.f32.mrf.mxu0  ;;  %v4963_v6 = vadd.f32 1.0, %v4962_v39  ;;  %v4956_v45 = vand.u32 2147483647, %v6749_v24  ;;  %vm4966_vm10 = vcmp.lt.f32.partialorder %v4965_v2, 0.0004427343 }
 0x54e   :  { %6270 = vmatmul.mubr.msk.f32.gmra.mxu0 %vm2414_vm7, %v5021_v63  ;;  %6752 = vlog2.f32 %v4950_v58  ;;  %v5299_v33 = vadd.f32 %v6199_v21, %v11153_v61  ;;  %v4954_v57 = vadd.f32 1.0, %v4953_v29 }
 0x54f   :  { %v5293_v36 = vpop.f32.mrf.mxu0  ;;  %v4964_v9 = vmul.f32 %v6747_v28, %v4963_v6  ;;  %vm4957_vm11 = vcmp.lt.f32.partialorder %v4956_v45, 0.0004427343 }
 0x550   :  { %5558 = vst.msk [vmem:[%s11461_s7 + $0x28] sm:$0xff] %vm5552_vm6, %v5299_v33  ;;  %v5294_v17 = vadd.f32 %v11153_v61, %v5293_v36  ;;  %v4955_v47 = vmul.f32 %v6749_v24, %v4954_v57 }
 0x552   :  { %5557 = vst.msk [vmem:[%s11461_s7 + $0x20] sm:$0xff] %vm5552_vm6, %v5294_v17 }
 0x554   :  { %v6202_v54 = vpop.f32.mrf.mxu0 }
 0x555   :  { %v5309_v48 = vadd.f32 %v6202_v54, %v11153_v61 }
 0x556   :  { %v5303_v4 = vpop.f32.mrf.mxu0 }
 0x557   :  { %5560 = vst.msk [vmem:[%s11461_s7 + $0x38] sm:$0xff] %vm5552_vm6, %v5309_v48  ;;  %v5304_v8 = vadd.f32 %v11153_v61, %v5303_v4 }
 0x559   :  { %v6751_v30 = vpop.eup %6750  ;;  %5559 = vst.msk [vmem:[%s11461_s7 + $0x30] sm:$0xff] %vm5552_vm6, %v5304_v8  ;;  %v6205_v25 = vpop.f32.mrf.mxu0 }
 0x55a   :  { %v4961_v55 = vmul.f32 0.6931472, %v6751_v30  ;;  %v5319_v60 = vadd.f32 %v6205_v25, %v11153_v61 }
 0x55b   :  { %v6753_v41 = vpop.eup %6752  ;;  %v5313_v22 = vpop.f32.mrf.mxu0 }
 0x55c   :  { %v4952_v40 = vmul.f32 0.6931472, %v6753_v41  ;;  %v4967_v26 = vsel %vm4966_vm10, %v4964_v9, %v4961_v55  ;;  %5562 = vst.msk [vmem:[%s11461_s7 + $0x48] sm:$0xff] %vm5552_vm6, %v5319_v60  ;;  %v5314_v52 = vadd.f32 %v11153_v61, %v5313_v22 }
 0x55d   :  { %v5023_v12 = vsel %vm4295_vm13, %v11145_v27, %v4967_v26 }
 0x55e   :  { %v4958_v42 = vsel %vm4957_vm11, %v4955_v47, %v4952_v40  ;;  %5561 = vst.msk [vmem:[%s11461_s7 + $0x40] sm:$0xff] %vm5552_vm6, %v5314_v52 }
 0x55f   :  { %v5022_v31 = vsel %vm4294_vm12, %v11148_v16, %v4958_v42 }
 0x560   :  { %6272 = vmatprep.mubr.msk.f32.mxu0 %vm2414_vm7, %v5022_v31 }
 0x561   :  { %6273 = vmatmul.mubr.msk.f32.gmra.mxu0 %vm2414_vm7, %v5023_v12 }
 0x563   :  { %v6208_v13 = vpop.f32.mrf.mxu0 }
 0x564   :  { %v5329_v10 = vadd.f32 %v6208_v13, %v11153_v61 }
 0x565   :  { %v5323_v11 = vpop.f32.mrf.mxu0 }
 0x566   :  { %5564 = vst.msk [vmem:[%s11461_s7 + $0x58] sm:$0xff] %vm5552_vm6, %v5329_v10  ;;  %v5324_v16 = vadd.f32 %v11153_v61, %v5323_v11 }
 0x568   :  { %5563 = vst.msk [vmem:[%s11461_s7 + $0x50] sm:$0xff] %vm5552_vm6, %v5324_v16 }
 0x56b   :  { %v6211_v27 = vpop.f32.mrf.mxu0 }
 0x56c   :  { %v5339_v49 = vadd.f32 %v6211_v27, %v11153_v61 }
 0x56d   :  { %v5333_v32 = vpop.f32.mrf.mxu0 }
 0x56e   :  { %5566 = vst.msk [vmem:[%s11461_s7 + $0x68] sm:$0xff] %vm5552_vm6, %v5339_v49  ;;  %v5334_v44 = vadd.f32 %v11153_v61, %v5333_v32 }
 0x570   :  { %5565 = vst.msk [vmem:[%s11461_s7 + $0x60] sm:$0xff] %vm5552_vm6, %v5334_v44 }
 0x573   :  { %v6214_v19 = vpop.f32.mrf.mxu0 }
 0x574   :  { %v5349_v50 = vadd.f32 %v6214_v19, %v11153_v61 }
 0x575   :  { %v5343_v37 = vpop.f32.mrf.mxu0 }
 0x576   :  { %5568 = vst.msk [vmem:[%s11461_s7 + $0x78] sm:$0xff] %vm5552_vm6, %v5349_v50  ;;  %v5344_v23 = vadd.f32 %v11153_v61, %v5343_v37 }
 0x578   :  { %5567 = vst.msk [vmem:[%s11461_s7 + $0x70] sm:$0xff] %vm5552_vm6, %v5344_v23 }
 0x579   :  { %v6217_v35 = vpop.f32.mrf.mxu0 }
 0x57a   :  { %v5359_v51 = vadd.f32 %v6217_v35, %v11153_v61 }
 0x57b   :  { %v5353_v15 = vpop.f32.mrf.mxu0 }
 0x57c   :  { %5570 = vst.msk [vmem:[%s11461_s7 + $0x88] sm:$0xff] %vm5552_vm6, %v5359_v51  ;;  %v5354_v18 = vadd.f32 %v11153_v61, %v5353_v15 }
 0x57e   :  { %5569 = vst.msk [vmem:[%s11461_s7 + $0x80] sm:$0xff] %vm5552_vm6, %v5354_v18 }
 0x581   :  { %v6220_v14 = vpop.f32.mrf.mxu0 }
 0x582   :  { %v5369_v20 = vadd.f32 %v6220_v14, %v11153_v61 }
 0x583   :  { %v5363_v0 = vpop.f32.mrf.mxu0 }
 0x584   :  { %5572 = vst.msk [vmem:[%s11461_s7 + $0x98] sm:$0xff] %vm5552_vm6, %v5369_v20  ;;  %v5364_v62 = vadd.f32 %v11153_v61, %v5363_v0 }
 0x586   :  { %5571 = vst.msk [vmem:[%s11461_s7 + $0x90] sm:$0xff] %vm5552_vm6, %v5364_v62 }
 0x589   :  { %v6223_v59 = vpop.f32.mrf.mxu0 }
 0x58a   :  { %v5379_v56 = vadd.f32 %v6223_v59, %v11153_v61 }
 0x58b   :  { %v5373_v38 = vpop.f32.mrf.mxu0 }
 0x58c   :  { %5574 = vst.msk [vmem:[%s11461_s7 + $0xa8] sm:$0xff] %vm5552_vm6, %v5379_v56  ;;  %v5374_v7 = vadd.f32 %v11153_v61, %v5373_v38 }
 0x58e   :  { %5573 = vst.msk [vmem:[%s11461_s7 + $0xa0] sm:$0xff] %vm5552_vm6, %v5374_v7 }
 0x592   :  { %v6226_v46 = vpop.f32.mrf.mxu0 }
 0x593   :  { %v5389_v43 = vadd.f32 %v6226_v46, %v11153_v61 }
 0x594   :  { %v5383_v28 = vpop.f32.mrf.mxu0 }
 0x595   :  { %5576 = vst.msk [vmem:[%s11461_s7 + $0xb8] sm:$0xff] %vm5552_vm6, %v5389_v43  ;;  %v5384_v5 = vadd.f32 %v11153_v61, %v5383_v28 }
 0x597   :  { %v6229_v53 = vpop.f32.mrf.mxu0  ;;  %5575 = vst.msk [vmem:[%s11461_s7 + $0xb0] sm:$0xff] %vm5552_vm6, %v5384_v5 }
 0x598   :  { %v5399_v34 = vadd.f32 %v6229_v53, %v11153_v61 }
 0x599   :  { %v5393_v3 = vpop.f32.mrf.mxu0 }
 0x59a   :  { %5578 = vst.msk [vmem:[%s11461_s7 + $0xc8] sm:$0xff] %vm5552_vm6, %v5399_v34  ;;  %v5394_v1 = vadd.f32 %v11153_v61, %v5393_v3 }
 0x59c   :  { %5577 = vst.msk [vmem:[%s11461_s7 + $0xc0] sm:$0xff] %vm5552_vm6, %v5394_v1  ;;  %v6232_v24 = vpop.f32.mrf.mxu0 }
 0x59d   :  { %v5409_v63 = vadd.f32 %v6232_v24, %v11153_v61 }
 0x59e   :  { %v5403_v58 = vpop.f32.mrf.mxu0 }
 0x59f   :  { %5580 = vst.msk [vmem:[%s11461_s7 + $0xd8] sm:$0xff] %vm5552_vm6, %v5409_v63  ;;  %v5404_v21 = vadd.f32 %v11153_v61, %v5403_v58 }
 0x5a1   :  { %v6235_v33 = vpop.f32.mrf.mxu0  ;;  %5579 = vst.msk [vmem:[%s11461_s7 + $0xd0] sm:$0xff] %vm5552_vm6, %v5404_v21 }
 0x5a2   :  { %v5419_v36 = vadd.f32 %v6235_v33, %v11153_v61 }
 0x5a3   :  { %v5413_v17 = vpop.f32.mrf.mxu0 }
 0x5a4   :  { %5582 = vst.msk [vmem:[%s11461_s7 + $0xe8] sm:$0xff] %vm5552_vm6, %v5419_v36  ;;  %v5414_v39 = vadd.f32 %v11153_v61, %v5413_v17 }
 0x5a5   :  { %v6238_v29 = vpop.f32.mrf.mxu0 }
 0x5a6   :  { %5581 = vst.msk [vmem:[%s11461_s7 + $0xe0] sm:$0xff] %vm5552_vm6, %v5414_v39  ;;  %v5429_v54 = vadd.f32 %v6238_v29, %v11153_v61 }
 0x5a7   :  { %v5423_v6 = vpop.f32.mrf.mxu0 }
 0x5a8   :  { %5584 = vst.msk [vmem:[%s11461_s7 + $0xf8] sm:$0xff] %vm5552_vm6, %v5429_v54  ;;  %v5424_v48 = vadd.f32 %v11153_v61, %v5423_v6 }
 0x5aa   :  { %5583 = vst.msk [vmem:[%s11461_s7 + $0xf0] sm:$0xff] %vm5552_vm6, %v5424_v48 }
 0x5b0   :  { %v6241_v57 = vpop.f32.mrf.mxu0 }
 0x5b1   :  { %v5439_v2 = vadd.f32 %v6241_v57, %v11153_v61 }
 0x5b2   :  { %v5433_v30 = vpop.f32.mrf.mxu0 }
 0x5b3   :  { %5586 = vst.msk [vmem:[%s11461_s7 + $0x108] sm:$0xff] %vm5552_vm6, %v5439_v2  ;;  %v5434_v4 = vadd.f32 %v11153_v61, %v5433_v30 }
 0x5b5   :  { %5585 = vst.msk [vmem:[%s11461_s7 + $0x100] sm:$0xff] %vm5552_vm6, %v5434_v4  ;;  %v6244_v45 = vpop.f32.mrf.mxu0 }
 0x5b6   :  { %v5449_v8 = vadd.f32 %v6244_v45, %v11153_v61 }
 0x5b7   :  { %v5443_v55 = vpop.f32.mrf.mxu0 }
 0x5b8   :  { %5588 = vst.msk [vmem:[%s11461_s7 + $0x118] sm:$0xff] %vm5552_vm6, %v5449_v8  ;;  %v5444_v41 = vadd.f32 %v11153_v61, %v5443_v55 }
 0x5ba   :  { %5587 = vst.msk [vmem:[%s11461_s7 + $0x110] sm:$0xff] %vm5552_vm6, %v5444_v41 }
 0x5bb   :  { %v6247_v9 = vpop.f32.mrf.mxu0 }
 0x5bc   :  { %v5459_v25 = vadd.f32 %v6247_v9, %v11153_v61 }
 0x5bd   :  { %v5453_v40 = vpop.f32.mrf.mxu0 }
 0x5be   :  { %5590 = vst.msk [vmem:[%s11461_s7 + $0x128] sm:$0xff] %vm5552_vm6, %v5459_v25  ;;  %v5454_v47 = vadd.f32 %v11153_v61, %v5453_v40 }
 0x5bf   :  { %v6250_v60 = vpop.f32.mrf.mxu0 }
 0x5c0   :  { %5589 = vst.msk [vmem:[%s11461_s7 + $0x120] sm:$0xff] %vm5552_vm6, %v5454_v47  ;;  %v5469_v26 = vadd.f32 %v6250_v60, %v11153_v61 }
 0x5c1   :  { %v5463_v22 = vpop.f32.mrf.mxu0 }
 0x5c2   :  { %5592 = vst.msk [vmem:[%s11461_s7 + $0x138] sm:$0xff] %vm5552_vm6, %v5469_v26  ;;  %v5464_v42 = vadd.f32 %v11153_v61, %v5463_v22 }
 0x5c3   :  { %v6253_v52 = vpop.f32.mrf.mxu0 }
 0x5c4   :  { %5591 = vst.msk [vmem:[%s11461_s7 + $0x130] sm:$0xff] %vm5552_vm6, %v5464_v42  ;;  %v5479_v31 = vadd.f32 %v6253_v52, %v11153_v61 }
 0x5c5   :  { %v5473_v12 = vpop.f32.mrf.mxu0 }
 0x5c6   :  { %5594 = vst.msk [vmem:[%s11461_s7 + $0x148] sm:$0xff] %vm5552_vm6, %v5479_v31  ;;  %v5474_v13 = vadd.f32 %v11153_v61, %v5473_v12 }
 0x5c8   :  { %5593 = vst.msk [vmem:[%s11461_s7 + $0x140] sm:$0xff] %vm5552_vm6, %v5474_v13 }
 0x5c9   :  { %v6256_v10 = vpop.f32.mrf.mxu0 }
 0x5ca   :  { %v5489_v11 = vadd.f32 %v6256_v10, %v11153_v61 }
 0x5cb   :  { %v5483_v16 = vpop.f32.mrf.mxu0 }
 0x5cc   :  { %5596 = vst.msk [vmem:[%s11461_s7 + $0x158] sm:$0xff] %vm5552_vm6, %v5489_v11  ;;  %v5484_v27 = vadd.f32 %v11153_v61, %v5483_v16 }
 0x5ce   :  { %5595 = vst.msk [vmem:[%s11461_s7 + $0x150] sm:$0xff] %vm5552_vm6, %v5484_v27 }
 0x5d2   :  { %v6259_v49 = vpop.f32.mrf.mxu0 }
 0x5d3   :  { %v5499_v32 = vadd.f32 %v6259_v49, %v11153_v61 }
 0x5d4   :  { %v5493_v44 = vpop.f32.mrf.mxu0 }
 0x5d5   :  { %5598 = vst.msk [vmem:[%s11461_s7 + $0x168] sm:$0xff] %vm5552_vm6, %v5499_v32  ;;  %v5494_v19 = vadd.f32 %v11153_v61, %v5493_v44 }
 0x5d7   :  { %5597 = vst.msk [vmem:[%s11461_s7 + $0x160] sm:$0xff] %vm5552_vm6, %v5494_v19 }
 0x5e3   :  { %v6262_v50 = vpop.f32.mrf.mxu0 }
 0x5e4   :  { %v5509_v37 = vadd.f32 %v6262_v50, %v11153_v61 }
 0x5e5   :  { %v5503_v23 = vpop.f32.mrf.mxu0 }
 0x5e6   :  { %5600 = vst.msk [vmem:[%s11461_s7 + $0x178] sm:$0xff] %vm5552_vm6, %v5509_v37  ;;  %v5504_v35 = vadd.f32 %v11153_v61, %v5503_v23 }
 0x5e8   :  { %5599 = vst.msk [vmem:[%s11461_s7 + $0x170] sm:$0xff] %vm5552_vm6, %v5504_v35 }
 0x5ea   :  { %v6265_v51 = vpop.f32.mrf.mxu0 }
 0x5eb   :  { %v5519_v15 = vadd.f32 %v6265_v51, %v11153_v61 }
 0x5ec   :  { %v5513_v18 = vpop.f32.mrf.mxu0 }
 0x5ed   :  { %5602 = vst.msk [vmem:[%s11461_s7 + $0x188] sm:$0xff] %vm5552_vm6, %v5519_v15  ;;  %v5514_v14 = vadd.f32 %v11153_v61, %v5513_v18 }
 0x5ef   :  { %5601 = vst.msk [vmem:[%s11461_s7 + $0x180] sm:$0xff] %vm5552_vm6, %v5514_v14 }
 0x5f2   :  { %v6268_v20 = vpop.f32.mrf.mxu0 }
 0x5f3   :  { %v5529_v0 = vadd.f32 %v6268_v20, %v11153_v61 }
 0x5f4   :  { %v5523_v62 = vpop.f32.mrf.mxu0 }
 0x5f5   :  { %5604 = vst.msk [vmem:[%s11461_s7 + $0x198] sm:$0xff] %vm5552_vm6, %v5529_v0  ;;  %v5524_v59 = vadd.f32 %v11153_v61, %v5523_v62 }
 0x5f7   :  { %5603 = vst.msk [vmem:[%s11461_s7 + $0x190] sm:$0xff] %vm5552_vm6, %v5524_v59 }
 0x60e   :  { %v6271_v56 = vpop.f32.mrf.mxu0 }
 0x60f   :  { %v5539_v38 = vadd.f32 %v6271_v56, %v11153_v61 }
 0x610   :  { %v5533_v7 = vpop.f32.mrf.mxu0 }
 0x611   :  { %5606 = vst.msk [vmem:[%s11461_s7 + $0x1a8] sm:$0xff] %vm5552_vm6, %v5539_v38  ;;  %v5534_v46 = vadd.f32 %v11153_v61, %v5533_v7 }
 0x613   :  { %5605 = vst.msk [vmem:[%s11461_s7 + $0x1a0] sm:$0xff] %vm5552_vm6, %v5534_v46 }
 0x621   :  { %v6274_v43 = vpop.f32.mrf.mxu0 }
 0x622   :  { %v5549_v28 = vadd.f32 %v6274_v43, %v11153_v61 }
 0x623   :  { %v5543_v5 = vpop.f32.mrf.mxu0 }
 0x624   :  { %5608 = vst.msk [vmem:[%s11461_s7 + $0x1b8] sm:$0xff] %vm5552_vm6, %v5549_v28  ;;  %v5544_v53 = vadd.f32 %v11153_v61, %v5543_v5 }
 0x626   :  { %5607 = vst.msk [vmem:[%s11461_s7 + $0x1b0] sm:$0xff] %vm5552_vm6, %v5544_v53 }

</bundles_post_ra>
